<compile_context>
chip_gen: v7x
topology: tpu7x:2x2x1
jax: 0.10.0
libtpu: 0.0.40
codegen_flags: <defaults>
</compile_context>

<pallas_src>
import numpy as np
import jax
import jax.numpy as jnp
from jax import lax
from jax.experimental import pallas as pl
from jax.experimental.pallas import tpu as pltpu

WIDTH = 32   # "width" argument of the torch module
BATCH = 2
SEQ = 8
CIN, CMID, COUT, K = 2, 10, 5, 5     # conv channel plan fixed by the module
PAD = (K - 1) // 2


def _round_up(n, m):
    return (n + m - 1) // m * m


# ------------------------------ fused kernel --------------------------------
def _fused_kernel(xc_ref, x0_ref, wih_ref, whh_ref, bg_ref,
                  t1_ref, b1_ref, t2_ref, b2_ref, o_ref,
                  apad_ref, z1p_ref):
    B, T, W = x0_ref.shape
    H4 = 4 * W
    nkh = t1_ref.shape[0]
    cin_w = apad_ref.shape[2]          # CIN * W
    cmid_w = t1_ref.shape[2]           # CMID * W padded to a multiple of 128
    cout_w = t2_ref.shape[2]           # COUT * W padded to a multiple of 128
    bf16 = jnp.bfloat16

    # ---------------- LSTM (time loop fully unrolled, T=8) ----------------
    # hoisted input projection + fused bias: one bf16 MXU matmul for all timesteps
    gx = jnp.dot(xc_ref[...].reshape(B * T, 2 * W).astype(bf16), wih_ref[...],
                 preferred_element_type=jnp.float32) + bg_ref[...]
    gx = gx.reshape(B, T, H4)
    whh = whh_ref[...]                                            # (W, 4W) bf16
    # TODO(synk): hold whh resident in the MXU across the recurrence with
    # pltpu.matmul_push_rhs / matmul_acc_lhs / matmul_pop instead of 8 re-pushes.
    h = jnp.zeros((B, W), jnp.float32)
    c = jnp.zeros((B, W), jnp.float32)
    hs = []
    for t in range(T):                                            # static unroll
        gates = gx[:, t, :] + jnp.dot(h.astype(bf16), whh,
                                      preferred_element_type=jnp.float32)
        sig = jax.nn.sigmoid(gates)       # one full-128-lane EUP op
        th = jnp.tanh(gates)              # one full-128-lane EUP op
        i_g = sig[:, 0:W]
        f_g = sig[:, W:2 * W]
        o_g = sig[:, 3 * W:4 * W]
        g_g = th[:, 2 * W:3 * W]
        c = f_g * c + i_g * g_g
        h = o_g * jnp.tanh(c)
        hs.append(h)
    hseq = jnp.stack(hs, axis=1)                                  # (B, T, W)

    # ---------------- conv1 (2->10, 5x5 'same') + tanh --------------------
    # channel 0 = LSTM output, channel 1 = p (= x0); channels folded into lanes.
    # 'same' padding lives in a VMEM scratch; each kh slab is a ref-offset read.
    zpad1 = jnp.zeros((B, PAD, cin_w), jnp.float32)
    apad_ref[:, 0:PAD, :] = zpad1
    apad_ref[:, PAD + T:PAD + T + PAD, :] = zpad1
    apad_ref[:, PAD:PAD + T, :] = jnp.concatenate([hseq, x0_ref[...]], axis=-1)
    y1 = jnp.zeros((B * T, cmid_w), jnp.float32) + b1_ref[...]
    for kh in range(nkh):
        lhs = apad_ref[:, kh:kh + T, :].reshape(B * T, cin_w).astype(bf16)
        y1 = y1 + jnp.dot(lhs, t1_ref[kh], preferred_element_type=jnp.float32)
    z1 = jnp.tanh(y1)                         # (B*T, cmid_w); padded lanes stay 0

    # ---------------- conv2 (10->5, 5x5 'same') + tanh --------------------
    zpad2 = jnp.zeros((B, PAD, cmid_w), jnp.float32)
    z1p_ref[:, 0:PAD, :] = zpad2
    z1p_ref[:, PAD + T:PAD + T + PAD, :] = zpad2
    z1p_ref[:, PAD:PAD + T, :] = z1.reshape(B, T, cmid_w)
    y2 = jnp.zeros((B * T, cout_w), jnp.float32) + b2_ref[...]
    for kh in range(nkh):
        lhs = z1p_ref[:, kh:kh + T, :].reshape(B * T, cmid_w).astype(bf16)
        y2 = y2 + jnp.dot(lhs, t2_ref[kh], preferred_element_type=jnp.float32)
    z2 = jnp.tanh(y2)                         # (B*T, cout_w); padded lanes stay 0

    # ---------------- sum over the COUT valid output channels --------------
    total = z2[:, 0:W]
    for co in range(1, COUT):
        total = total + z2[:, co * W:(co + 1) * W]
    o_ref[...] = total                                            # (B*T, W)


# ------------------- one-time parameter repacking (host) --------------------
def _banded_conv_weights(w, width, rows_pad, cols_pad):
    """(Cout, Cin, K, K) conv weight -> (K, rows_pad, cols_pad) width-banded matrices
    T[kh, ci*W + u, co*W + x] = w[co, ci, kh, u - x + PAD] (0 outside the band and
    outside the valid (Cin*W, Cout*W) block), so a 'same' conv over (T, W) becomes
    out = sum_kh  height-shifted_slab_kh @ T[kh]."""
    co_n, ci_n, kk, _ = w.shape
    t = np.zeros((kk, rows_pad, cols_pad), np.float32)
    xs = np.arange(width)
    for kh in range(kk):
        for kw in range(kk):
            u = xs + kw - PAD
            valid = (u >= 0) & (u < width)
            xv, uv = xs[valid], u[valid]
            for ci in range(ci_n):
                for co in range(co_n):
                    t[kh, ci * width + uv, co * width + xv] = w[co, ci, kh, kw]
    return t


def prepare_params(p):
    """One-time repack of torch-layout parameters into the fused-kernel layout:
    bf16 matmul weights, conv matrices / biases lane-padded to multiples of 128."""
    width = p["whh"].shape[1]
    cmid_pad = _round_up(CMID * width, 128)    # 320 -> 384
    cout_pad = _round_up(COUT * width, 128)    # 160 -> 256
    w1 = np.asarray(p["w1"], np.float32)
    w2 = np.asarray(p["w2"], np.float32)
    b1e = np.zeros((1, cmid_pad), np.float32)
    b1e[0, :CMID * width] = np.repeat(np.asarray(p["b1"], np.float32), width)
    b2e = np.zeros((1, cout_pad), np.float32)
    b2e[0, :COUT * width] = np.repeat(np.asarray(p["b2"], np.float32), width)
    return dict(
        wih_t=jnp.asarray(np.asarray(p["wih"], np.float32).T, jnp.bfloat16),   # (2W,4W)
        whh_t=jnp.asarray(np.asarray(p["whh"], np.float32).T, jnp.bfloat16),   # (W,4W)
        bg=jnp.asarray(np.asarray(p["b_ih"], np.float32)
                       + np.asarray(p["b_hh"], np.float32)).reshape(1, -1),    # (1,4W)
        t1=jnp.asarray(_banded_conv_weights(w1, width, CIN * width, cmid_pad),
                       jnp.bfloat16),                                          # (K,2W,384)
        b1e=jnp.asarray(b1e),                                                  # (1,384)
        t2=jnp.asarray(_banded_conv_weights(w2, width, cmid_pad, cout_pad),
                       jnp.bfloat16),                                          # (K,384,256)
        b2e=jnp.asarray(b2e),                                                  # (1,256)
    )


# ------------------------------ full forward --------------------------------
@jax.jit
def network_forward(x0, x1, kp):
    B, T, W = x0.shape
    xc = jnp.concatenate([x0, x1], axis=-1)        # hoisted; XLA fuses into producer
    vmem = pltpu.MemorySpace.VMEM
    cmid_pad = kp["t2"].shape[1]
    out = pl.pallas_call(
        _fused_kernel,
        out_shape=jax.ShapeDtypeStruct((B * T, W), jnp.float32),
        in_specs=[pl.BlockSpec(memory_space=vmem)] * 9,
        out_specs=pl.BlockSpec(memory_space=vmem),
        scratch_shapes=[
            pltpu.VMEM((B, T + 2 * PAD, CIN * W), jnp.float32),   # padded conv1 input
            pltpu.VMEM((B, T + 2 * PAD, cmid_pad), jnp.float32),  # padded conv2 input
        ],
    )(xc, x0, kp["wih_t"], kp["whh_t"], kp["bg"],
      kp["t1"], kp["b1e"], kp["t2"], kp["b2e"])
    return out.reshape(B, T, W)


# --------------------------- pure-JAX reference ------------------------------
def _lstm_ref(x, wih, whh, b_ih, b_hh):
    B, T, _ = x.shape
    H = whh.shape[1]

    def step(carry, xt):
        h, c = carry
        gates = xt @ wih.T + h @ whh.T + b_ih + b_hh
        i, f, g, o = jnp.split(gates, 4, axis=-1)
        c = jax.nn.sigmoid(f) * c + jax.nn.sigmoid(i) * jnp.tanh(g)
        h = jax.nn.sigmoid(o) * jnp.tanh(c)
        return (h, c), h

    (_, _), hs = lax.scan(step, (jnp.zeros((B, H)), jnp.zeros((B, H))),
                          jnp.swapaxes(x, 0, 1))
    return jnp.swapaxes(hs, 0, 1)


def _conv_ref(x, w, b):
    y = lax.conv_general_dilated(x, w, (1, 1), "SAME",
                                 dimension_numbers=("NCHW", "OIHW", "NCHW"))
    return y + b[None, :, None, None]


def network_ref(x0, x1, p):
    pr = x0[:, None]
    xcat = jnp.concatenate([x0, x1], axis=2)
    h = _lstm_ref(xcat, p["wih"], p["whh"], p["b_ih"], p["b_hh"])
    z = jnp.concatenate([h[:, None], pr], axis=1)
    z = jnp.tanh(_conv_ref(z, p["w1"], p["b1"]))
    z = jnp.tanh(_conv_ref(z, p["w2"], p["b2"]))
    return jnp.sum(z, axis=1)


# ------------------------------ parameters ----------------------------------
def init_params(key, width):
    ks = jax.random.split(key, 8)
    s = 1.0 / jnp.sqrt(width)

    def u(k, shape, scale):
        return jax.random.uniform(k, shape, jnp.float32, -scale, scale)

    return dict(
        wih=u(ks[0], (4 * width, 2 * width), s),
        whh=u(ks[1], (4 * width, width), s),
        b_ih=u(ks[2], (4 * width,), s),
        b_hh=u(ks[3], (4 * width,), s),
        w1=u(ks[4], (CMID, CIN, K, K), 0.2),
        b1=u(ks[5], (CMID,), 0.2),
        w2=u(ks[6], (COUT, CMID, K, K), 0.1),
        b2=u(ks[7], (COUT,), 0.1),
    )


if __name__ == "__main__":
    key = jax.random.PRNGKey(0)
    k0, k1, kkey = jax.random.split(key, 3)
    # Module input is a pair of tensors, each (batch, seq, width); they are
    # concatenated along the feature dim before the LSTM.
    x0 = jax.random.normal(k0, (BATCH, SEQ, WIDTH), jnp.float32)
    x1 = jax.random.normal(k1, (BATCH, SEQ, WIDTH), jnp.float32)
    params = init_params(kkey, WIDTH)
    kparams = prepare_params(params)          # one-time weight repack (bf16 + padding)

    out = network_forward(x0, x1, kparams)
    jax.block_until_ready(out)

    ref = network_ref(x0, x1, params)         # f32 reference
    assert out.shape == (BATCH, SEQ, WIDTH), out.shape
    # bf16 matmul weights/activations in the kernel -> looser tolerance vs f32 ref.
    max_err = float(jnp.max(jnp.abs(out - ref)))
    if not jnp.allclose(out, ref, atol=1e-1, rtol=1e-1):
        raise AssertionError(
            f"Pallas output mismatch vs pure-JAX reference (max abs err {max_err})")
    print("KERNEL_OK")
</pallas_src>

<mosaic_0001>
module attributes {stable_mosaic.version = 11 : i64} {
  func.func @_fused_kernel(%arg0: memref<2x8x64xf32, #tpu.memory_space<vmem>>, %arg1: memref<2x8x32xf32, #tpu.memory_space<vmem>>, %arg2: memref<64x128xbf16, #tpu.memory_space<vmem>>, %arg3: memref<32x128xbf16, #tpu.memory_space<vmem>>, %arg4: memref<1x128xf32, #tpu.memory_space<vmem>>, %arg5: memref<5x64x384xbf16, #tpu.memory_space<vmem>>, %arg6: memref<1x384xf32, #tpu.memory_space<vmem>>, %arg7: memref<5x384x256xbf16, #tpu.memory_space<vmem>>, %arg8: memref<1x256xf32, #tpu.memory_space<vmem>>, %arg9: memref<16x32xf32, #tpu.memory_space<vmem>>, %arg10: memref<2x12x64xf32, #tpu.memory_space<vmem>>, %arg11: memref<2x12x384xf32, #tpu.memory_space<vmem>>) attributes {dimension_semantics = [], scalar_prefetch = 0 : i64, scratch_operands = 2 : i64, tpu.core_type = #tpu.core_type<tc>} {
    %c0 = arith.constant 0 : index
    %c0_0 = arith.constant 0 : index
    %c0_1 = arith.constant 0 : index
    %0 = vector.load %arg0[%c0, %c0_0, %c0_1] : memref<2x8x64xf32, #tpu.memory_space<vmem>>, vector<2x8x64xf32>
    %1 = vector.shape_cast %0 : vector<2x8x64xf32> to vector<16x64xf32>
    %2 = arith.truncf %1 : vector<16x64xf32> to vector<16x64xbf16>
    %c0_2 = arith.constant 0 : index
    %c0_3 = arith.constant 0 : index
    %3 = vector.load %arg2[%c0_2, %c0_3] : memref<64x128xbf16, #tpu.memory_space<vmem>>, vector<64x128xbf16>
    %cst = arith.constant dense<0.000000e+00> : vector<16x128xf32>
    %4 = tpu.matmul %2, %3, %cst {dimension_numbers = #tpu.dot_dimension_numbers<[1], [0], [0], [1], [0, 0, 1, 1], [], []>} : vector<16x64xbf16>, vector<64x128xbf16>, vector<16x128xf32> -> vector<16x128xf32>
    %c0_4 = arith.constant 0 : index
    %c0_5 = arith.constant 0 : index
    %5 = vector.load %arg4[%c0_4, %c0_5] : memref<1x128xf32, #tpu.memory_space<vmem>>, vector<1x128xf32>
    %6 = vector.broadcast %5 : vector<1x128xf32> to vector<16x128xf32>
    %7 = arith.addf %4, %6 : vector<16x128xf32>
    %8 = vector.shape_cast %7 : vector<16x128xf32> to vector<2x8x128xf32>
    %c0_6 = arith.constant 0 : index
    %c0_7 = arith.constant 0 : index
    %9 = vector.load %arg3[%c0_6, %c0_7] : memref<32x128xbf16, #tpu.memory_space<vmem>>, vector<32x128xbf16>
    %cst_8 = arith.constant 0.000000e+00 : f32
    %10 = vector.broadcast %cst_8 : f32 to vector<2x32xf32>
    %cst_9 = arith.constant 0.000000e+00 : f32
    %11 = vector.broadcast %cst_9 : f32 to vector<2x32xf32>
    %12 = vector.extract_strided_slice %8 {offsets = [0, 0, 0], sizes = [2, 1, 128], strides = [1, 1, 1]} : vector<2x8x128xf32> to vector<2x1x128xf32>
    %13 = vector.shape_cast %12 : vector<2x1x128xf32> to vector<2x128xf32>
    %14 = arith.truncf %10 : vector<2x32xf32> to vector<2x32xbf16>
    %cst_10 = arith.constant dense<0.000000e+00> : vector<2x128xf32>
    %15 = tpu.matmul %14, %9, %cst_10 {dimension_numbers = #tpu.dot_dimension_numbers<[1], [0], [0], [1], [0, 0, 1, 1], [], []>} : vector<2x32xbf16>, vector<32x128xbf16>, vector<2x128xf32> -> vector<2x128xf32>
    %16 = arith.addf %13, %15 : vector<2x128xf32>
    %17 = arith.negf %16 : vector<2x128xf32>
    %18 = math.exp %17 : vector<2x128xf32>
    %cst_11 = arith.constant 1.000000e+00 : f32
    %19 = vector.broadcast %cst_11 : f32 to vector<2x128xf32>
    %20 = arith.addf %19, %18 : vector<2x128xf32>
    %21 = arith.divf %19, %20 : vector<2x128xf32>
    %22 = math.tanh %16 : vector<2x128xf32>
    %23 = vector.extract_strided_slice %21 {offsets = [0, 0], sizes = [2, 32], strides = [1, 1]} : vector<2x128xf32> to vector<2x32xf32>
    %24 = vector.extract_strided_slice %21 {offsets = [0, 32], sizes = [2, 32], strides = [1, 1]} : vector<2x128xf32> to vector<2x32xf32>
    %25 = vector.extract_strided_slice %21 {offsets = [0, 96], sizes = [2, 32], strides = [1, 1]} : vector<2x128xf32> to vector<2x32xf32>
    %26 = vector.extract_strided_slice %22 {offsets = [0, 64], sizes = [2, 32], strides = [1, 1]} : vector<2x128xf32> to vector<2x32xf32>
    %27 = arith.mulf %24, %11 : vector<2x32xf32>
    %28 = arith.mulf %23, %26 : vector<2x32xf32>
    %29 = arith.addf %27, %28 : vector<2x32xf32>
    %30 = math.tanh %29 : vector<2x32xf32>
    %31 = arith.mulf %25, %30 : vector<2x32xf32>
    %32 = vector.extract_strided_slice %8 {offsets = [0, 1, 0], sizes = [2, 1, 128], strides = [1, 1, 1]} : vector<2x8x128xf32> to vector<2x1x128xf32>
    %33 = vector.shape_cast %32 : vector<2x1x128xf32> to vector<2x128xf32>
    %34 = arith.truncf %31 : vector<2x32xf32> to vector<2x32xbf16>
    %cst_12 = arith.constant dense<0.000000e+00> : vector<2x128xf32>
    %35 = tpu.matmul %34, %9, %cst_12 {dimension_numbers = #tpu.dot_dimension_numbers<[1], [0], [0], [1], [0, 0, 1, 1], [], []>} : vector<2x32xbf16>, vector<32x128xbf16>, vector<2x128xf32> -> vector<2x128xf32>
    %36 = arith.addf %33, %35 : vector<2x128xf32>
    %37 = arith.negf %36 : vector<2x128xf32>
    %38 = math.exp %37 : vector<2x128xf32>
    %cst_13 = arith.constant 1.000000e+00 : f32
    %39 = vector.broadcast %cst_13 : f32 to vector<2x128xf32>
    %40 = arith.addf %39, %38 : vector<2x128xf32>
    %41 = arith.divf %39, %40 : vector<2x128xf32>
    %42 = math.tanh %36 : vector<2x128xf32>
    %43 = vector.extract_strided_slice %41 {offsets = [0, 0], sizes = [2, 32], strides = [1, 1]} : vector<2x128xf32> to vector<2x32xf32>
    %44 = vector.extract_strided_slice %41 {offsets = [0, 32], sizes = [2, 32], strides = [1, 1]} : vector<2x128xf32> to vector<2x32xf32>
    %45 = vector.extract_strided_slice %41 {offsets = [0, 96], sizes = [2, 32], strides = [1, 1]} : vector<2x128xf32> to vector<2x32xf32>
    %46 = vector.extract_strided_slice %42 {offsets = [0, 64], sizes = [2, 32], strides = [1, 1]} : vector<2x128xf32> to vector<2x32xf32>
    %47 = arith.mulf %44, %29 : vector<2x32xf32>
    %48 = arith.mulf %43, %46 : vector<2x32xf32>
    %49 = arith.addf %47, %48 : vector<2x32xf32>
    %50 = math.tanh %49 : vector<2x32xf32>
    %51 = arith.mulf %45, %50 : vector<2x32xf32>
    %52 = vector.extract_strided_slice %8 {offsets = [0, 2, 0], sizes = [2, 1, 128], strides = [1, 1, 1]} : vector<2x8x128xf32> to vector<2x1x128xf32>
    %53 = vector.shape_cast %52 : vector<2x1x128xf32> to vector<2x128xf32>
    %54 = arith.truncf %51 : vector<2x32xf32> to vector<2x32xbf16>
    %cst_14 = arith.constant dense<0.000000e+00> : vector<2x128xf32>
    %55 = tpu.matmul %54, %9, %cst_14 {dimension_numbers = #tpu.dot_dimension_numbers<[1], [0], [0], [1], [0, 0, 1, 1], [], []>} : vector<2x32xbf16>, vector<32x128xbf16>, vector<2x128xf32> -> vector<2x128xf32>
    %56 = arith.addf %53, %55 : vector<2x128xf32>
    %57 = arith.negf %56 : vector<2x128xf32>
    %58 = math.exp %57 : vector<2x128xf32>
    %cst_15 = arith.constant 1.000000e+00 : f32
    %59 = vector.broadcast %cst_15 : f32 to vector<2x128xf32>
    %60 = arith.addf %59, %58 : vector<2x128xf32>
    %61 = arith.divf %59, %60 : vector<2x128xf32>
    %62 = math.tanh %56 : vector<2x128xf32>
    %63 = vector.extract_strided_slice %61 {offsets = [0, 0], sizes = [2, 32], strides = [1, 1]} : vector<2x128xf32> to vector<2x32xf32>
    %64 = vector.extract_strided_slice %61 {offsets = [0, 32], sizes = [2, 32], strides = [1, 1]} : vector<2x128xf32> to vector<2x32xf32>
    %65 = vector.extract_strided_slice %61 {offsets = [0, 96], sizes = [2, 32], strides = [1, 1]} : vector<2x128xf32> to vector<2x32xf32>
    %66 = vector.extract_strided_slice %62 {offsets = [0, 64], sizes = [2, 32], strides = [1, 1]} : vector<2x128xf32> to vector<2x32xf32>
    %67 = arith.mulf %64, %49 : vector<2x32xf32>
    %68 = arith.mulf %63, %66 : vector<2x32xf32>
    %69 = arith.addf %67, %68 : vector<2x32xf32>
    %70 = math.tanh %69 : vector<2x32xf32>
    %71 = arith.mulf %65, %70 : vector<2x32xf32>
    %72 = vector.extract_strided_slice %8 {offsets = [0, 3, 0], sizes = [2, 1, 128], strides = [1, 1, 1]} : vector<2x8x128xf32> to vector<2x1x128xf32>
    %73 = vector.shape_cast %72 : vector<2x1x128xf32> to vector<2x128xf32>
    %74 = arith.truncf %71 : vector<2x32xf32> to vector<2x32xbf16>
    %cst_16 = arith.constant dense<0.000000e+00> : vector<2x128xf32>
    %75 = tpu.matmul %74, %9, %cst_16 {dimension_numbers = #tpu.dot_dimension_numbers<[1], [0], [0], [1], [0, 0, 1, 1], [], []>} : vector<2x32xbf16>, vector<32x128xbf16>, vector<2x128xf32> -> vector<2x128xf32>
    %76 = arith.addf %73, %75 : vector<2x128xf32>
    %77 = arith.negf %76 : vector<2x128xf32>
    %78 = math.exp %77 : vector<2x128xf32>
    %cst_17 = arith.constant 1.000000e+00 : f32
    %79 = vector.broadcast %cst_17 : f32 to vector<2x128xf32>
    %80 = arith.addf %79, %78 : vector<2x128xf32>
    %81 = arith.divf %79, %80 : vector<2x128xf32>
    %82 = math.tanh %76 : vector<2x128xf32>
    %83 = vector.extract_strided_slice %81 {offsets = [0, 0], sizes = [2, 32], strides = [1, 1]} : vector<2x128xf32> to vector<2x32xf32>
    %84 = vector.extract_strided_slice %81 {offsets = [0, 32], sizes = [2, 32], strides = [1, 1]} : vector<2x128xf32> to vector<2x32xf32>
    %85 = vector.extract_strided_slice %81 {offsets = [0, 96], sizes = [2, 32], strides = [1, 1]} : vector<2x128xf32> to vector<2x32xf32>
    %86 = vector.extract_strided_slice %82 {offsets = [0, 64], sizes = [2, 32], strides = [1, 1]} : vector<2x128xf32> to vector<2x32xf32>
    %87 = arith.mulf %84, %69 : vector<2x32xf32>
    %88 = arith.mulf %83, %86 : vector<2x32xf32>
    %89 = arith.addf %87, %88 : vector<2x32xf32>
    %90 = math.tanh %89 : vector<2x32xf32>
    %91 = arith.mulf %85, %90 : vector<2x32xf32>
    %92 = vector.extract_strided_slice %8 {offsets = [0, 4, 0], sizes = [2, 1, 128], strides = [1, 1, 1]} : vector<2x8x128xf32> to vector<2x1x128xf32>
    %93 = vector.shape_cast %92 : vector<2x1x128xf32> to vector<2x128xf32>
    %94 = arith.truncf %91 : vector<2x32xf32> to vector<2x32xbf16>
    %cst_18 = arith.constant dense<0.000000e+00> : vector<2x128xf32>
    %95 = tpu.matmul %94, %9, %cst_18 {dimension_numbers = #tpu.dot_dimension_numbers<[1], [0], [0], [1], [0, 0, 1, 1], [], []>} : vector<2x32xbf16>, vector<32x128xbf16>, vector<2x128xf32> -> vector<2x128xf32>
    %96 = arith.addf %93, %95 : vector<2x128xf32>
    %97 = arith.negf %96 : vector<2x128xf32>
    %98 = math.exp %97 : vector<2x128xf32>
    %cst_19 = arith.constant 1.000000e+00 : f32
    %99 = vector.broadcast %cst_19 : f32 to vector<2x128xf32>
    %100 = arith.addf %99, %98 : vector<2x128xf32>
    %101 = arith.divf %99, %100 : vector<2x128xf32>
    %102 = math.tanh %96 : vector<2x128xf32>
    %103 = vector.extract_strided_slice %101 {offsets = [0, 0], sizes = [2, 32], strides = [1, 1]} : vector<2x128xf32> to vector<2x32xf32>
    %104 = vector.extract_strided_slice %101 {offsets = [0, 32], sizes = [2, 32], strides = [1, 1]} : vector<2x128xf32> to vector<2x32xf32>
    %105 = vector.extract_strided_slice %101 {offsets = [0, 96], sizes = [2, 32], strides = [1, 1]} : vector<2x128xf32> to vector<2x32xf32>
    %106 = vector.extract_strided_slice %102 {offsets = [0, 64], sizes = [2, 32], strides = [1, 1]} : vector<2x128xf32> to vector<2x32xf32>
    %107 = arith.mulf %104, %89 : vector<2x32xf32>
    %108 = arith.mulf %103, %106 : vector<2x32xf32>
    %109 = arith.addf %107, %108 : vector<2x32xf32>
    %110 = math.tanh %109 : vector<2x32xf32>
    %111 = arith.mulf %105, %110 : vector<2x32xf32>
    %112 = vector.extract_strided_slice %8 {offsets = [0, 5, 0], sizes = [2, 1, 128], strides = [1, 1, 1]} : vector<2x8x128xf32> to vector<2x1x128xf32>
    %113 = vector.shape_cast %112 : vector<2x1x128xf32> to vector<2x128xf32>
    %114 = arith.truncf %111 : vector<2x32xf32> to vector<2x32xbf16>
    %cst_20 = arith.constant dense<0.000000e+00> : vector<2x128xf32>
    %115 = tpu.matmul %114, %9, %cst_20 {dimension_numbers = #tpu.dot_dimension_numbers<[1], [0], [0], [1], [0, 0, 1, 1], [], []>} : vector<2x32xbf16>, vector<32x128xbf16>, vector<2x128xf32> -> vector<2x128xf32>
    %116 = arith.addf %113, %115 : vector<2x128xf32>
    %117 = arith.negf %116 : vector<2x128xf32>
    %118 = math.exp %117 : vector<2x128xf32>
    %cst_21 = arith.constant 1.000000e+00 : f32
    %119 = vector.broadcast %cst_21 : f32 to vector<2x128xf32>
    %120 = arith.addf %119, %118 : vector<2x128xf32>
    %121 = arith.divf %119, %120 : vector<2x128xf32>
    %122 = math.tanh %116 : vector<2x128xf32>
    %123 = vector.extract_strided_slice %121 {offsets = [0, 0], sizes = [2, 32], strides = [1, 1]} : vector<2x128xf32> to vector<2x32xf32>
    %124 = vector.extract_strided_slice %121 {offsets = [0, 32], sizes = [2, 32], strides = [1, 1]} : vector<2x128xf32> to vector<2x32xf32>
    %125 = vector.extract_strided_slice %121 {offsets = [0, 96], sizes = [2, 32], strides = [1, 1]} : vector<2x128xf32> to vector<2x32xf32>
    %126 = vector.extract_strided_slice %122 {offsets = [0, 64], sizes = [2, 32], strides = [1, 1]} : vector<2x128xf32> to vector<2x32xf32>
    %127 = arith.mulf %124, %109 : vector<2x32xf32>
    %128 = arith.mulf %123, %126 : vector<2x32xf32>
    %129 = arith.addf %127, %128 : vector<2x32xf32>
    %130 = math.tanh %129 : vector<2x32xf32>
    %131 = arith.mulf %125, %130 : vector<2x32xf32>
    %132 = vector.extract_strided_slice %8 {offsets = [0, 6, 0], sizes = [2, 1, 128], strides = [1, 1, 1]} : vector<2x8x128xf32> to vector<2x1x128xf32>
    %133 = vector.shape_cast %132 : vector<2x1x128xf32> to vector<2x128xf32>
    %134 = arith.truncf %131 : vector<2x32xf32> to vector<2x32xbf16>
    %cst_22 = arith.constant dense<0.000000e+00> : vector<2x128xf32>
    %135 = tpu.matmul %134, %9, %cst_22 {dimension_numbers = #tpu.dot_dimension_numbers<[1], [0], [0], [1], [0, 0, 1, 1], [], []>} : vector<2x32xbf16>, vector<32x128xbf16>, vector<2x128xf32> -> vector<2x128xf32>
    %136 = arith.addf %133, %135 : vector<2x128xf32>
    %137 = arith.negf %136 : vector<2x128xf32>
    %138 = math.exp %137 : vector<2x128xf32>
    %cst_23 = arith.constant 1.000000e+00 : f32
    %139 = vector.broadcast %cst_23 : f32 to vector<2x128xf32>
    %140 = arith.addf %139, %138 : vector<2x128xf32>
    %141 = arith.divf %139, %140 : vector<2x128xf32>
    %142 = math.tanh %136 : vector<2x128xf32>
    %143 = vector.extract_strided_slice %141 {offsets = [0, 0], sizes = [2, 32], strides = [1, 1]} : vector<2x128xf32> to vector<2x32xf32>
    %144 = vector.extract_strided_slice %141 {offsets = [0, 32], sizes = [2, 32], strides = [1, 1]} : vector<2x128xf32> to vector<2x32xf32>
    %145 = vector.extract_strided_slice %141 {offsets = [0, 96], sizes = [2, 32], strides = [1, 1]} : vector<2x128xf32> to vector<2x32xf32>
    %146 = vector.extract_strided_slice %142 {offsets = [0, 64], sizes = [2, 32], strides = [1, 1]} : vector<2x128xf32> to vector<2x32xf32>
    %147 = arith.mulf %144, %129 : vector<2x32xf32>
    %148 = arith.mulf %143, %146 : vector<2x32xf32>
    %149 = arith.addf %147, %148 : vector<2x32xf32>
    %150 = math.tanh %149 : vector<2x32xf32>
    %151 = arith.mulf %145, %150 : vector<2x32xf32>
    %152 = vector.extract_strided_slice %8 {offsets = [0, 7, 0], sizes = [2, 1, 128], strides = [1, 1, 1]} : vector<2x8x128xf32> to vector<2x1x128xf32>
    %153 = vector.shape_cast %152 : vector<2x1x128xf32> to vector<2x128xf32>
    %154 = arith.truncf %151 : vector<2x32xf32> to vector<2x32xbf16>
    %cst_24 = arith.constant dense<0.000000e+00> : vector<2x128xf32>
    %155 = tpu.matmul %154, %9, %cst_24 {dimension_numbers = #tpu.dot_dimension_numbers<[1], [0], [0], [1], [0, 0, 1, 1], [], []>} : vector<2x32xbf16>, vector<32x128xbf16>, vector<2x128xf32> -> vector<2x128xf32>
    %156 = arith.addf %153, %155 : vector<2x128xf32>
    %157 = arith.negf %156 : vector<2x128xf32>
    %158 = math.exp %157 : vector<2x128xf32>
    %cst_25 = arith.constant 1.000000e+00 : f32
    %159 = vector.broadcast %cst_25 : f32 to vector<2x128xf32>
    %160 = arith.addf %159, %158 : vector<2x128xf32>
    %161 = arith.divf %159, %160 : vector<2x128xf32>
    %162 = math.tanh %156 : vector<2x128xf32>
    %163 = vector.extract_strided_slice %161 {offsets = [0, 0], sizes = [2, 32], strides = [1, 1]} : vector<2x128xf32> to vector<2x32xf32>
    %164 = vector.extract_strided_slice %161 {offsets = [0, 32], sizes = [2, 32], strides = [1, 1]} : vector<2x128xf32> to vector<2x32xf32>
    %165 = vector.extract_strided_slice %161 {offsets = [0, 96], sizes = [2, 32], strides = [1, 1]} : vector<2x128xf32> to vector<2x32xf32>
    %166 = vector.extract_strided_slice %162 {offsets = [0, 64], sizes = [2, 32], strides = [1, 1]} : vector<2x128xf32> to vector<2x32xf32>
    %167 = arith.mulf %164, %149 : vector<2x32xf32>
    %168 = arith.mulf %163, %166 : vector<2x32xf32>
    %169 = arith.addf %167, %168 : vector<2x32xf32>
    %170 = math.tanh %169 : vector<2x32xf32>
    %171 = arith.mulf %165, %170 : vector<2x32xf32>
    %172 = vector.shape_cast %31 : vector<2x32xf32> to vector<2x1x32xf32>
    %173 = vector.shape_cast %51 : vector<2x32xf32> to vector<2x1x32xf32>
    %174 = vector.shape_cast %71 : vector<2x32xf32> to vector<2x1x32xf32>
    %175 = vector.shape_cast %91 : vector<2x32xf32> to vector<2x1x32xf32>
    %176 = vector.shape_cast %111 : vector<2x32xf32> to vector<2x1x32xf32>
    %177 = vector.shape_cast %131 : vector<2x32xf32> to vector<2x1x32xf32>
    %178 = vector.shape_cast %151 : vector<2x32xf32> to vector<2x1x32xf32>
    %179 = vector.shape_cast %171 : vector<2x32xf32> to vector<2x1x32xf32>
    %180 = tpu.concatenate %172, %173, %174, %175, %176, %177, %178, %179 in 1 : vector<2x1x32xf32>, vector<2x1x32xf32>, vector<2x1x32xf32>, vector<2x1x32xf32>, vector<2x1x32xf32>, vector<2x1x32xf32>, vector<2x1x32xf32>, vector<2x1x32xf32> -> vector<2x8x32xf32>
    %cst_26 = arith.constant 0.000000e+00 : f32
    %181 = vector.broadcast %cst_26 : f32 to vector<2x2x64xf32>
    %c0_27 = arith.constant 0 : index
    %c0_28 = arith.constant 0 : index
    %c0_29 = arith.constant 0 : index
    %182 = vector.load %arg10[%c0_27, %c0_28, %c0_29] : memref<2x12x64xf32, #tpu.memory_space<vmem>>, vector<2x2x64xf32>
    tpu.vector_store %arg10[%c0_27, %c0_28, %c0_29], %181 {strides = array<i32>} : memref<2x12x64xf32, #tpu.memory_space<vmem>>, vector<2x2x64xf32>,
    %c0_30 = arith.constant 0 : index
    %c10 = arith.constant 10 : index
    %c0_31 = arith.constant 0 : index
    %183 = vector.load %arg10[%c0_30, %c10, %c0_31] : memref<2x12x64xf32, #tpu.memory_space<vmem>>, vector<2x2x64xf32>
    tpu.vector_store %arg10[%c0_30, %c10, %c0_31], %181 {strides = array<i32>} : memref<2x12x64xf32, #tpu.memory_space<vmem>>, vector<2x2x64xf32>,
    %c0_32 = arith.constant 0 : index
    %c0_33 = arith.constant 0 : index
    %c0_34 = arith.constant 0 : index
    %184 = vector.load %arg1[%c0_32, %c0_33, %c0_34] : memref<2x8x32xf32, #tpu.memory_space<vmem>>, vector<2x8x32xf32>
    %185 = tpu.concatenate %180, %184 in 2 : vector<2x8x32xf32>, vector<2x8x32xf32> -> vector<2x8x64xf32>
    %c0_35 = arith.constant 0 : index
    %c2 = arith.constant 2 : index
    %c0_36 = arith.constant 0 : index
    %186 = vector.load %arg10[%c0_35, %c2, %c0_36] : memref<2x12x64xf32, #tpu.memory_space<vmem>>, vector<2x8x64xf32>
    tpu.vector_store %arg10[%c0_35, %c2, %c0_36], %185 {strides = array<i32>} : memref<2x12x64xf32, #tpu.memory_space<vmem>>, vector<2x8x64xf32>,
    %cst_37 = arith.constant 0.000000e+00 : f32
    %187 = vector.broadcast %cst_37 : f32 to vector<16x384xf32>
    %c0_38 = arith.constant 0 : index
    %c0_39 = arith.constant 0 : index
    %188 = vector.load %arg6[%c0_38, %c0_39] : memref<1x384xf32, #tpu.memory_space<vmem>>, vector<1x384xf32>
    %189 = vector.broadcast %188 : vector<1x384xf32> to vector<16x384xf32>
    %190 = arith.addf %187, %189 : vector<16x384xf32>
    %c0_40 = arith.constant 0 : index
    %c0_41 = arith.constant 0 : index
    %c0_42 = arith.constant 0 : index
    %191 = vector.load %arg10[%c0_40, %c0_41, %c0_42] : memref<2x12x64xf32, #tpu.memory_space<vmem>>, vector<2x8x64xf32>
    %192 = vector.shape_cast %191 : vector<2x8x64xf32> to vector<16x64xf32>
    %193 = arith.truncf %192 : vector<16x64xf32> to vector<16x64xbf16>
    %c0_43 = arith.constant 0 : index
    %c0_44 = arith.constant 0 : index
    %c0_45 = arith.constant 0 : index
    %194 = vector.load %arg5[%c0_43, %c0_44, %c0_45] : memref<5x64x384xbf16, #tpu.memory_space<vmem>>, vector<1x64x384xbf16>
    %195 = vector.shape_cast %194 : vector<1x64x384xbf16> to vector<64x384xbf16>
    %cst_46 = arith.constant dense<0.000000e+00> : vector<16x384xf32>
    %196 = tpu.matmul %193, %195, %cst_46 {dimension_numbers = #tpu.dot_dimension_numbers<[1], [0], [0], [1], [0, 0, 1, 1], [], []>} : vector<16x64xbf16>, vector<64x384xbf16>, vector<16x384xf32> -> vector<16x384xf32>
    %197 = arith.addf %190, %196 : vector<16x384xf32>
    %c0_47 = arith.constant 0 : index
    %c1 = arith.constant 1 : index
    %c0_48 = arith.constant 0 : index
    %198 = vector.load %arg10[%c0_47, %c1, %c0_48] : memref<2x12x64xf32, #tpu.memory_space<vmem>>, vector<2x8x64xf32>
    %199 = vector.shape_cast %198 : vector<2x8x64xf32> to vector<16x64xf32>
    %200 = arith.truncf %199 : vector<16x64xf32> to vector<16x64xbf16>
    %c1_49 = arith.constant 1 : index
    %c0_50 = arith.constant 0 : index
    %c0_51 = arith.constant 0 : index
    %201 = vector.load %arg5[%c1_49, %c0_50, %c0_51] : memref<5x64x384xbf16, #tpu.memory_space<vmem>>, vector<1x64x384xbf16>
    %202 = vector.shape_cast %201 : vector<1x64x384xbf16> to vector<64x384xbf16>
    %cst_52 = arith.constant dense<0.000000e+00> : vector<16x384xf32>
    %203 = tpu.matmul %200, %202, %cst_52 {dimension_numbers = #tpu.dot_dimension_numbers<[1], [0], [0], [1], [0, 0, 1, 1], [], []>} : vector<16x64xbf16>, vector<64x384xbf16>, vector<16x384xf32> -> vector<16x384xf32>
    %204 = arith.addf %197, %203 : vector<16x384xf32>
    %c0_53 = arith.constant 0 : index
    %c2_54 = arith.constant 2 : index
    %c0_55 = arith.constant 0 : index
    %205 = vector.load %arg10[%c0_53, %c2_54, %c0_55] : memref<2x12x64xf32, #tpu.memory_space<vmem>>, vector<2x8x64xf32>
    %206 = vector.shape_cast %205 : vector<2x8x64xf32> to vector<16x64xf32>
    %207 = arith.truncf %206 : vector<16x64xf32> to vector<16x64xbf16>
    %c2_56 = arith.constant 2 : index
    %c0_57 = arith.constant 0 : index
    %c0_58 = arith.constant 0 : index
    %208 = vector.load %arg5[%c2_56, %c0_57, %c0_58] : memref<5x64x384xbf16, #tpu.memory_space<vmem>>, vector<1x64x384xbf16>
    %209 = vector.shape_cast %208 : vector<1x64x384xbf16> to vector<64x384xbf16>
    %cst_59 = arith.constant dense<0.000000e+00> : vector<16x384xf32>
    %210 = tpu.matmul %207, %209, %cst_59 {dimension_numbers = #tpu.dot_dimension_numbers<[1], [0], [0], [1], [0, 0, 1, 1], [], []>} : vector<16x64xbf16>, vector<64x384xbf16>, vector<16x384xf32> -> vector<16x384xf32>
    %211 = arith.addf %204, %210 : vector<16x384xf32>
    %c0_60 = arith.constant 0 : index
    %c3 = arith.constant 3 : index
    %c0_61 = arith.constant 0 : index
    %212 = vector.load %arg10[%c0_60, %c3, %c0_61] : memref<2x12x64xf32, #tpu.memory_space<vmem>>, vector<2x8x64xf32>
    %213 = vector.shape_cast %212 : vector<2x8x64xf32> to vector<16x64xf32>
    %214 = arith.truncf %213 : vector<16x64xf32> to vector<16x64xbf16>
    %c3_62 = arith.constant 3 : index
    %c0_63 = arith.constant 0 : index
    %c0_64 = arith.constant 0 : index
    %215 = vector.load %arg5[%c3_62, %c0_63, %c0_64] : memref<5x64x384xbf16, #tpu.memory_space<vmem>>, vector<1x64x384xbf16>
    %216 = vector.shape_cast %215 : vector<1x64x384xbf16> to vector<64x384xbf16>
    %cst_65 = arith.constant dense<0.000000e+00> : vector<16x384xf32>
    %217 = tpu.matmul %214, %216, %cst_65 {dimension_numbers = #tpu.dot_dimension_numbers<[1], [0], [0], [1], [0, 0, 1, 1], [], []>} : vector<16x64xbf16>, vector<64x384xbf16>, vector<16x384xf32> -> vector<16x384xf32>
    %218 = arith.addf %211, %217 : vector<16x384xf32>
    %c0_66 = arith.constant 0 : index
    %c4 = arith.constant 4 : index
    %c0_67 = arith.constant 0 : index
    %219 = vector.load %arg10[%c0_66, %c4, %c0_67] : memref<2x12x64xf32, #tpu.memory_space<vmem>>, vector<2x8x64xf32>
    %220 = vector.shape_cast %219 : vector<2x8x64xf32> to vector<16x64xf32>
    %221 = arith.truncf %220 : vector<16x64xf32> to vector<16x64xbf16>
    %c4_68 = arith.constant 4 : index
    %c0_69 = arith.constant 0 : index
    %c0_70 = arith.constant 0 : index
    %222 = vector.load %arg5[%c4_68, %c0_69, %c0_70] : memref<5x64x384xbf16, #tpu.memory_space<vmem>>, vector<1x64x384xbf16>
    %223 = vector.shape_cast %222 : vector<1x64x384xbf16> to vector<64x384xbf16>
    %cst_71 = arith.constant dense<0.000000e+00> : vector<16x384xf32>
    %224 = tpu.matmul %221, %223, %cst_71 {dimension_numbers = #tpu.dot_dimension_numbers<[1], [0], [0], [1], [0, 0, 1, 1], [], []>} : vector<16x64xbf16>, vector<64x384xbf16>, vector<16x384xf32> -> vector<16x384xf32>
    %225 = arith.addf %218, %224 : vector<16x384xf32>
    %226 = math.tanh %225 : vector<16x384xf32>
    %cst_72 = arith.constant 0.000000e+00 : f32
    %227 = vector.broadcast %cst_72 : f32 to vector<2x2x384xf32>
    %c0_73 = arith.constant 0 : index
    %c0_74 = arith.constant 0 : index
    %c0_75 = arith.constant 0 : index
    %228 = vector.load %arg11[%c0_73, %c0_74, %c0_75] : memref<2x12x384xf32, #tpu.memory_space<vmem>>, vector<2x2x384xf32>
    tpu.vector_store %arg11[%c0_73, %c0_74, %c0_75], %227 {strides = array<i32>} : memref<2x12x384xf32, #tpu.memory_space<vmem>>, vector<2x2x384xf32>,
    %c0_76 = arith.constant 0 : index
    %c10_77 = arith.constant 10 : index
    %c0_78 = arith.constant 0 : index
    %229 = vector.load %arg11[%c0_76, %c10_77, %c0_78] : memref<2x12x384xf32, #tpu.memory_space<vmem>>, vector<2x2x384xf32>
    tpu.vector_store %arg11[%c0_76, %c10_77, %c0_78], %227 {strides = array<i32>} : memref<2x12x384xf32, #tpu.memory_space<vmem>>, vector<2x2x384xf32>,
    %230 = vector.shape_cast %226 : vector<16x384xf32> to vector<2x8x384xf32>
    %c0_79 = arith.constant 0 : index
    %c2_80 = arith.constant 2 : index
    %c0_81 = arith.constant 0 : index
    %231 = vector.load %arg11[%c0_79, %c2_80, %c0_81] : memref<2x12x384xf32, #tpu.memory_space<vmem>>, vector<2x8x384xf32>
    tpu.vector_store %arg11[%c0_79, %c2_80, %c0_81], %230 {strides = array<i32>} : memref<2x12x384xf32, #tpu.memory_space<vmem>>, vector<2x8x384xf32>,
    %cst_82 = arith.constant 0.000000e+00 : f32
    %232 = vector.broadcast %cst_82 : f32 to vector<16x256xf32>
    %c0_83 = arith.constant 0 : index
    %c0_84 = arith.constant 0 : index
    %233 = vector.load %arg8[%c0_83, %c0_84] : memref<1x256xf32, #tpu.memory_space<vmem>>, vector<1x256xf32>
    %234 = vector.broadcast %233 : vector<1x256xf32> to vector<16x256xf32>
    %235 = arith.addf %232, %234 : vector<16x256xf32>
    %c0_85 = arith.constant 0 : index
    %c0_86 = arith.constant 0 : index
    %c0_87 = arith.constant 0 : index
    %236 = vector.load %arg11[%c0_85, %c0_86, %c0_87] : memref<2x12x384xf32, #tpu.memory_space<vmem>>, vector<2x8x384xf32>
    %237 = vector.shape_cast %236 : vector<2x8x384xf32> to vector<16x384xf32>
    %238 = arith.truncf %237 : vector<16x384xf32> to vector<16x384xbf16>
    %c0_88 = arith.constant 0 : index
    %c0_89 = arith.constant 0 : index
    %c0_90 = arith.constant 0 : index
    %239 = vector.load %arg7[%c0_88, %c0_89, %c0_90] : memref<5x384x256xbf16, #tpu.memory_space<vmem>>, vector<1x384x256xbf16>
    %240 = vector.shape_cast %239 : vector<1x384x256xbf16> to vector<384x256xbf16>
    %cst_91 = arith.constant dense<0.000000e+00> : vector<16x256xf32>
    %241 = tpu.matmul %238, %240, %cst_91 {dimension_numbers = #tpu.dot_dimension_numbers<[1], [0], [0], [1], [0, 0, 1, 1], [], []>} : vector<16x384xbf16>, vector<384x256xbf16>, vector<16x256xf32> -> vector<16x256xf32>
    %242 = arith.addf %235, %241 : vector<16x256xf32>
    %c0_92 = arith.constant 0 : index
    %c1_93 = arith.constant 1 : index
    %c0_94 = arith.constant 0 : index
    %243 = vector.load %arg11[%c0_92, %c1_93, %c0_94] : memref<2x12x384xf32, #tpu.memory_space<vmem>>, vector<2x8x384xf32>
    %244 = vector.shape_cast %243 : vector<2x8x384xf32> to vector<16x384xf32>
    %245 = arith.truncf %244 : vector<16x384xf32> to vector<16x384xbf16>
    %c1_95 = arith.constant 1 : index
    %c0_96 = arith.constant 0 : index
    %c0_97 = arith.constant 0 : index
    %246 = vector.load %arg7[%c1_95, %c0_96, %c0_97] : memref<5x384x256xbf16, #tpu.memory_space<vmem>>, vector<1x384x256xbf16>
    %247 = vector.shape_cast %246 : vector<1x384x256xbf16> to vector<384x256xbf16>
    %cst_98 = arith.constant dense<0.000000e+00> : vector<16x256xf32>
    %248 = tpu.matmul %245, %247, %cst_98 {dimension_numbers = #tpu.dot_dimension_numbers<[1], [0], [0], [1], [0, 0, 1, 1], [], []>} : vector<16x384xbf16>, vector<384x256xbf16>, vector<16x256xf32> -> vector<16x256xf32>
    %249 = arith.addf %242, %248 : vector<16x256xf32>
    %c0_99 = arith.constant 0 : index
    %c2_100 = arith.constant 2 : index
    %c0_101 = arith.constant 0 : index
    %250 = vector.load %arg11[%c0_99, %c2_100, %c0_101] : memref<2x12x384xf32, #tpu.memory_space<vmem>>, vector<2x8x384xf32>
    %251 = vector.shape_cast %250 : vector<2x8x384xf32> to vector<16x384xf32>
    %252 = arith.truncf %251 : vector<16x384xf32> to vector<16x384xbf16>
    %c2_102 = arith.constant 2 : index
    %c0_103 = arith.constant 0 : index
    %c0_104 = arith.constant 0 : index
    %253 = vector.load %arg7[%c2_102, %c0_103, %c0_104] : memref<5x384x256xbf16, #tpu.memory_space<vmem>>, vector<1x384x256xbf16>
    %254 = vector.shape_cast %253 : vector<1x384x256xbf16> to vector<384x256xbf16>
    %cst_105 = arith.constant dense<0.000000e+00> : vector<16x256xf32>
    %255 = tpu.matmul %252, %254, %cst_105 {dimension_numbers = #tpu.dot_dimension_numbers<[1], [0], [0], [1], [0, 0, 1, 1], [], []>} : vector<16x384xbf16>, vector<384x256xbf16>, vector<16x256xf32> -> vector<16x256xf32>
    %256 = arith.addf %249, %255 : vector<16x256xf32>
    %c0_106 = arith.constant 0 : index
    %c3_107 = arith.constant 3 : index
    %c0_108 = arith.constant 0 : index
    %257 = vector.load %arg11[%c0_106, %c3_107, %c0_108] : memref<2x12x384xf32, #tpu.memory_space<vmem>>, vector<2x8x384xf32>
    %258 = vector.shape_cast %257 : vector<2x8x384xf32> to vector<16x384xf32>
    %259 = arith.truncf %258 : vector<16x384xf32> to vector<16x384xbf16>
    %c3_109 = arith.constant 3 : index
    %c0_110 = arith.constant 0 : index
    %c0_111 = arith.constant 0 : index
    %260 = vector.load %arg7[%c3_109, %c0_110, %c0_111] : memref<5x384x256xbf16, #tpu.memory_space<vmem>>, vector<1x384x256xbf16>
    %261 = vector.shape_cast %260 : vector<1x384x256xbf16> to vector<384x256xbf16>
    %cst_112 = arith.constant dense<0.000000e+00> : vector<16x256xf32>
    %262 = tpu.matmul %259, %261, %cst_112 {dimension_numbers = #tpu.dot_dimension_numbers<[1], [0], [0], [1], [0, 0, 1, 1], [], []>} : vector<16x384xbf16>, vector<384x256xbf16>, vector<16x256xf32> -> vector<16x256xf32>
    %263 = arith.addf %256, %262 : vector<16x256xf32>
    %c0_113 = arith.constant 0 : index
    %c4_114 = arith.constant 4 : index
    %c0_115 = arith.constant 0 : index
    %264 = vector.load %arg11[%c0_113, %c4_114, %c0_115] : memref<2x12x384xf32, #tpu.memory_space<vmem>>, vector<2x8x384xf32>
    %265 = vector.shape_cast %264 : vector<2x8x384xf32> to vector<16x384xf32>
    %266 = arith.truncf %265 : vector<16x384xf32> to vector<16x384xbf16>
    %c4_116 = arith.constant 4 : index
    %c0_117 = arith.constant 0 : index
    %c0_118 = arith.constant 0 : index
    %267 = vector.load %arg7[%c4_116, %c0_117, %c0_118] : memref<5x384x256xbf16, #tpu.memory_space<vmem>>, vector<1x384x256xbf16>
    %268 = vector.shape_cast %267 : vector<1x384x256xbf16> to vector<384x256xbf16>
    %cst_119 = arith.constant dense<0.000000e+00> : vector<16x256xf32>
    %269 = tpu.matmul %266, %268, %cst_119 {dimension_numbers = #tpu.dot_dimension_numbers<[1], [0], [0], [1], [0, 0, 1, 1], [], []>} : vector<16x384xbf16>, vector<384x256xbf16>, vector<16x256xf32> -> vector<16x256xf32>
    %270 = arith.addf %263, %269 : vector<16x256xf32>
    %271 = math.tanh %270 : vector<16x256xf32>
    %272 = vector.extract_strided_slice %271 {offsets = [0, 0], sizes = [16, 32], strides = [1, 1]} : vector<16x256xf32> to vector<16x32xf32>
    %273 = vector.extract_strided_slice %271 {offsets = [0, 32], sizes = [16, 32], strides = [1, 1]} : vector<16x256xf32> to vector<16x32xf32>
    %274 = arith.addf %272, %273 : vector<16x32xf32>
    %275 = vector.extract_strided_slice %271 {offsets = [0, 64], sizes = [16, 32], strides = [1, 1]} : vector<16x256xf32> to vector<16x32xf32>
    %276 = arith.addf %274, %275 : vector<16x32xf32>
    %277 = vector.extract_strided_slice %271 {offsets = [0, 96], sizes = [16, 32], strides = [1, 1]} : vector<16x256xf32> to vector<16x32xf32>
    %278 = arith.addf %276, %277 : vector<16x32xf32>
    %279 = vector.extract_strided_slice %271 {offsets = [0, 128], sizes = [16, 32], strides = [1, 1]} : vector<16x256xf32> to vector<16x32xf32>
    %280 = arith.addf %278, %279 : vector<16x32xf32>
    %c0_120 = arith.constant 0 : index
    %c0_121 = arith.constant 0 : index
    %281 = vector.load %arg9[%c0_120, %c0_121] : memref<16x32xf32, #tpu.memory_space<vmem>>, vector<16x32xf32>
    tpu.vector_store %arg9[%c0_120, %c0_121], %280 {strides = array<i32>} : memref<16x32xf32, #tpu.memory_space<vmem>>, vector<16x32xf32>,
    return
  }
}

</mosaic_0001>

<bundles_post_ra>
// kernel: network_forward.1
= control target key start
LH: loop header
LB: loop body
LE: loop exit
PB: predicated region body
PF: predicated region fallthrough
CT: control target
= control target key end

     0   :  { %14 = vsyncpa [#allocation5], 0  ;;  %s6050_s0 = inlined_call_operand.vmem [shape: f32[2,8,64], index: 0, kind: input, shape index: {}]   ;;  %s6051_s1 = inlined_call_operand.vmem [shape: f32[2,8,32], index: 1, kind: input, shape index: {}]   ;;  %s6052_s2 = inlined_call_operand.vmem [shape: bf16[64,128], index: 2, kind: input, shape index: {}]   ;;  %s6053_s3 = inlined_call_operand.vmem [shape: bf16[32,128], index: 3, kind: input, shape index: {}]   ;;  %s6054_s4 = inlined_call_operand.vmem [shape: f32[1,128], index: 4, kind: input, shape index: {}]   ;;  %s6055_s5 = inlined_call_operand.hbm [shape: bf16[5,64,384], index: 5, kind: input, shape index: {}]   ;;  %s6056_s6 = inlined_call_operand.vmem [shape: f32[1,384], index: 6, kind: input, shape index: {}]   ;;  %s6057_s7 = inlined_call_operand.hbm [shape: bf16[5,384,256], index: 7, kind: input, shape index: {}]   ;;  %s6058_s8 = inlined_call_operand.vmem [shape: f32[1,256], index: 8, kind: input, shape index: {}]   ;;  %s6059_s9 = inlined_call_operand.hbm [shape: f32[16,32], index: 9, kind: output, shape index: {}]  }
   0x1   :  { %15 = vsyncpa [#allocation8], 0 }
   0x2   :  { %16 = vsyncpa [#allocation6], 0  ;;  %s5536_s30 = smov [#allocation4]   ;;  %s5464_s13 = scalar_lea.hbm %s6055_s5, 7680 }
   0x3   :  { %s32_s10 = sshll.u32 %s5536_s30, 4  ;;  %p5465_p0 = scmp.ne.s32.totalorder %s6055_s5, %s5464_s13  ;;  %s33_s10 = int_to_ptr.vmem [resolvable:$true] %s32_s10 }
   0x4   :  { %p5468_p1 = scmp.lt.u32.totalorder %s5464_s13, %s6055_s5 }
   0x6   :  { %p5470_p2 = pnand %p5468_p1, %p5465_p0 }
   0x8   :  { %5473 = shalt.err (!%p5470_p2)
}
   0x9   :  { %s5474_s18 = scalar_lea.vmem %s33_s10, 7680  ;;  %p5479_p4 = scmp.lt.s32.totalorder %s33_s10, %s33_s10 }
   0xa   :  { %p5475_p3 = scmp.ne.s32.totalorder %s33_s10, %s5474_s18  ;;  %p5480_p5 = scmp.lt.s32.totalorder %s5474_s18, %s5474_s18 }
   0xc   :  { %p5481_p6 = por %p5480_p5, %p5479_p4 }
   0xe   :  { %p5482_p7 = pnand %p5481_p6, %p5475_p3 }
  0x10   :  { %5485 = shalt.err (!%p5482_p7)
}
  0x11   :  { %s5537_s19 = smov 192   ;;  %s5538_s20 = smov 12  }
  0x12   :  { %38 = dma.hbm_to_vmem [thread:$0]  %s6055_s5, 7680, %s33_s10, [#allocation5], %s5537_s19, %s5537_s19, %s5538_s20  }
  0x13   :  { %s5539_s23 = smov [#allocation7]   ;;  %s5486_s27 = scalar_lea.hbm %s6057_s7, 30720 }
  0x14   :  { %s46_s24 = sshll.u32 %s5539_s23, 4  ;;  %p5487_p8 = scmp.ne.s32.totalorder %s6057_s7, %s5486_s27  ;;  %s47_s24 = int_to_ptr.vmem [resolvable:$true] %s46_s24 }
  0x15   :  { %p5490_p9 = scmp.lt.u32.totalorder %s5486_s27, %s6057_s7 }
  0x17   :  { %p5492_p10 = pnand %p5490_p9, %p5487_p8 }
  0x19   :  { %5495 = shalt.err (!%p5492_p10)
}
  0x1a   :  { %s5496_s12 = scalar_lea.vmem %s47_s24, 30720  ;;  %p5501_p12 = scmp.lt.s32.totalorder %s47_s24, %s47_s24 }
  0x1b   :  { %p5497_p11 = scmp.ne.s32.totalorder %s47_s24, %s5496_s12  ;;  %p5502_p13 = scmp.lt.s32.totalorder %s5496_s12, %s5496_s12 }
  0x1d   :  { %p5503_p0 = por %p5502_p13, %p5501_p12 }
  0x1f   :  { %p5504_p1 = pnand %p5503_p0, %p5497_p11 }
  0x21   :  { %5507 = shalt.err (!%p5504_p1)
}
  0x22   :  { %s5540_s5 = smov 128   ;;  %s5541_s10 = smov 8  }
  0x23   :  { %52 = dma.hbm_to_vmem [thread:$0]  %s6057_s7, 30720, %s47_s24, [#allocation8], %s5540_s5, %s5540_s5, %s5541_s10  }
  0x24   :  { %5530 = dma.done.wait [#allocation5], 7680  }
  0x25   :  { %5531 = vsyncadd [#allocation5], 4294959616 }
  0x26   :  { %5532 = dma.done.wait [#allocation8], 30720  }
  0x27   :  { %5533 = vsyncadd [#allocation8], 4294936576  ;;  %v5542_v0 = vmov 0.0   ;;  %vm5543_vm0 = vmmov 0   ;;  %v4868_v1 = vld [vmem:[%s6052_s2] sm:$0xff]   ;;  %v4869_v2 = vld [vmem:[%s6052_s2 + $0x8] sm:$0xff]  }
  0x28   :  { %4641 = vmatprep.subr.bf16.mxu1 %v5542_v0  ;;  %2031 = vst [vmem:[#allocation3] sm:$0x3] %v5542_v0  ;;  %2032 = vst [vmem:[#allocation3 + $0x8] sm:$0x3] %v5542_v0  ;;  %4649 = vmatprep.mubr.msk.bf16.mxu1 %vm5543_vm0, %v5542_v0  ;;  %v5654_v3 = vld [vmem:[%s6053_s3] sm:$0xff]   ;;  %v4870_v4 = vld [vmem:[%s6052_s2 + $0x10] sm:$0xff]  }
  0x29   :  { %2033 = vst [vmem:[#allocation3 + $0x10] sm:$0x3] %v5542_v0  ;;  %2034 = vst [vmem:[#allocation3 + $0x30] sm:$0x3] %v5542_v0  ;;  %4669 = vmatprep.subr.bf16.mxu0 %v5542_v0  ;;  %4673 = vmatprep.mubr.msk.bf16.mxu0 %vm5543_vm0, %v5542_v0  ;;  %v5663_v5 = vld [vmem:[%s6053_s3 + $0x8] sm:$0xff]   ;;  %v4871_v6 = vld [vmem:[%s6052_s2 + $0x18] sm:$0xff]  }
  0x2a   :  { %2035 = vst [vmem:[#allocation3 + $0x38] sm:$0x3] %v5542_v0  ;;  %2036 = vst [vmem:[#allocation3 + $0x40] sm:$0x3] %v5542_v0  ;;  %4642 = vmatpush3.bf16.msra.mxu1 %v4868_v1  ;;  %4670 = vmatpush3.bf16.msra.mxu0 %v5654_v3  ;;  %v62_v7 = vld [vmem:[%s6050_s0] sm:$0xff]  ;;  %v63_v8 = vld [vmem:[%s6050_s0 + $0x8] sm:$0xff] }
  0x2b   :  { %2037 = vst [vmem:[#allocation3 + $0x18] sm:$0xc] %v5542_v0  ;;  %2038 = vst [vmem:[#allocation3 + $0x20] sm:$0xc] %v5542_v0  ;;  %4643 = vmatprep.subr.bf16.mxu1 %v5542_v0  ;;  %4671 = vmatprep.subr.bf16.mxu0 %v5542_v0  ;;  %v64_v9 = vpack.c.bf16 %v63_v8, %v62_v7  ;;  %vm104_vm1 = vcmask 523264   ;;  %v5544_v10 = vmov 0  }
  0x2c   :  { %2039 = vst [vmem:[#allocation3 + $0x28] sm:$0xc] %v5542_v0  ;;  %2040 = vst [vmem:[#allocation3 + $0x48] sm:$0xc] %v5542_v0  ;;  %v4246_v15 = vld [vmem:[%s6054_s4] ss:$0 sm:$0xff] }
  0x2d   :  { %2041 = vst [vmem:[#allocation3 + $0x50] sm:$0xc] %v5542_v0  ;;  %2042 = vst [vmem:[#allocation3 + $0x58] sm:$0xc] %v5542_v0  ;;  %s5545_s30 = smov 64   ;;  %s5546_s4 = smov 32  }
  0x2e   :  { %4644 = vmatpush3.bf16.msra.mxu1 %v4869_v2  ;;  %4672 = vmatpush3.bf16.msra.mxu0 %v5663_v5  ;;  %vm270_vm2 = vcmask 1041409   ;;  %vm165_vm3 = vcmask 261120   ;;  %vm1073_vm4 = vcmask 1040384   ;;  %vm1076_vm5 = vcmask 1041408   ;;  %s5548_s19 = smov [#allocation9]  }
  0x2f   :  { %4645 = vmatprep.subr.bf16.mxu1 %v5542_v0  ;;  %4685 = vmatprep.subr.bf16.mxu0 %v5542_v0  ;;  %vm1079_vm6 = vcmask 1042432   ;;  %vm1082_vm7 = vcmask 1043456   ;;  %vm1085_vm8 = vcmask 1044480   ;;  %vm1088_vm9 = vcmask 1045504   ;;  %s4233_s20 = sshll.u32 %s5548_s19, 4  ;;  %s4234_s20 = int_to_ptr.vmem [resolvable:$true] %s4233_s20 }
  0x30   :  { %vm1094_vm10 = vcmask 517120   ;;  %vm1091_vm11 = vcmask 1046528   ;;  %s5508_s21 = scalar_lea.vmem %s4234_s20, 256  ;;  %p5513_p3 = scmp.lt.s32.totalorder %s4234_s20, %s4234_s20 }
  0x31   :  { %1095 = vst.msk [vmem:[#allocation2] sm:$0x3] %vm1094_vm10, %v5542_v0  ;;  %1096 = vst.msk [vmem:[#allocation2 + $0x10] sm:$0x3] %vm1094_vm10, %v5542_v0  ;;  %p5509_p2 = scmp.ne.s32.totalorder %s4234_s20, %s5508_s21  ;;  %p5514_p4 = scmp.lt.s32.totalorder %s5508_s21, %s5508_s21 }
  0x32   :  { %4646 = vmatpush3.bf16.msra.mxu1 %v4870_v4  ;;  %1097 = vst.msk [vmem:[#allocation2 + $0xa] sm:$0x3] %vm1094_vm10, %v5542_v0  ;;  %1098 = vst.msk [vmem:[#allocation2 + $0x1a] sm:$0x3] %vm1094_vm10, %v5542_v0 }
  0x33   :  { %4647 = vmatprep.subr.bf16.mxu1 %v5542_v0  ;;  %p5515_p5 = por %p5514_p4, %p5513_p3 }
  0x35   :  { %p5516_p6 = pnand %p5515_p5, %p5509_p2 }
  0x36   :  { %4648 = vmatpush3.bf16.msra.mxu1 %v4871_v6 }
  0x37   :  { %4653 = vmatprep.subr.bf16.mxu1 %v5542_v0 }
  0x39   :  { %4650 = vmatmul.mubr.msk.bf16.vlgmr.msra.gmra.mrb[0].mxu1 %vm104_vm1, %v64_v9 }
  0x3a   :  { %4654 = vmatpush3.bf16.msra.mxu1 %v5654_v3  ;;  %4657 = vmatprep.mubr.msk.bf16.mxu1 %vm5543_vm0, %v5542_v0 }
  0x3b   :  { %4655 = vmatprep.subr.bf16.mxu1 %v5542_v0 }
  0x3e   :  { %4656 = vmatpush3.bf16.msra.mxu1 %v5663_v5 }
  0x3f   :  { %4661 = vmatprep.subr.bf16.mxu1 %v5542_v0 }
  0x41   :  { %4658 = vmatmul.mubr.bf16.vlgmr.msra.gmra.mrb[4].mxu1 %v5544_v10 }
  0x42   :  { %4662 = vmatpush3.bf16.msra.mxu1 %v5654_v3  ;;  %4665 = vmatprep.mubr.msk.bf16.mxu1 %vm5543_vm0, %v5542_v0 }
  0x43   :  { %4663 = vmatprep.subr.bf16.mxu1 %v5542_v0 }
  0x46   :  { %4664 = vmatpush3.bf16.msra.mxu1 %v5663_v5 }
  0x47   :  { %4677 = vmatprep.subr.bf16.mxu1 %v5542_v0 }
 0x10c   :  { %v142_v11 = vpop.f32.mrb[0].mxu1 }
 0x10d   :  { %v4651_v12 = vpop.f32.mrb[1].mxu1  ;;  %v5700_v23 = vadd.f32 %v4246_v15, %v142_v11 }
 0x10e   :  { %v145_v13 = vpop.f32.mrb[2].mxu1 }
 0x10f   :  { %v4652_v14 = vpop.f32.mrb[3].mxu1  ;;  %v5697_v17 = vadd.f32 %v4246_v15, %v145_v13 }
 0x114   :  { %v203_v16 = vpop.f32.mrb[4].mxu1 }
 0x115   :  { %v210_v18 = vrot.slane %v203_v16, 1  ;;  %v4659_v19 = vpop.f32.mrb[5].mxu1  ;;  %v213_v24 = vadd.f32 %v203_v16, %v5700_v23 }
 0x116   :  { %v206_v20 = vpop.f32.mrb[6].mxu1 }
 0x117   :  { %v214_v21 = vadd.f32 %v210_v18, %v5697_v17  ;;  %v4660_v22 = vpop.f32.mrb[7].mxu1  ;;  %v4254_v28 = vmul.f32 -1.442695, %v213_v24 }
 0x119   :  { %5314 = vtanh.f32 %v214_v21  ;;  %v4255_v27 = vmul.f32 -1.442695, %v214_v21 }
 0x11a   :  { %5316 = vtanh.f32 %v213_v24 }
 0x11b   :  { %5318 = vpow2.f32 %v4255_v27 }
 0x11c   :  { %5320 = vpow2.f32 %v4254_v28 }
 0x123   :  { %v5315_v25 = vpop.eup %5314 }
 0x124   :  { %235 = vrot.lane.b32.xlu0 %v5315_v25, %s5545_s30  ;;  %v5317_v26 = vpop.eup %5316 }
 0x125   :  { %v5319_v29 = vpop.eup %5318 }
 0x126   :  { %v222_v30 = vadd.f32 1.0, %v5319_v29  ;;  %v5321_v31 = vpop.eup %5320 }
 0x127   :  { %v221_v32 = vadd.f32 1.0, %v5321_v31 }
 0x128   :  { %233 = vrot.lane.b32.xlu0 %v5317_v26, %s5545_s30  ;;  %5322 = vrcp.f32 %v222_v30 }
 0x129   :  { %5324 = vrcp.f32 %v221_v32 }
 0x132   :  { %v5323_v33 = vpop.eup %5322 }
 0x133   :  { %v5325_v36 = vpop.eup %5324  ;;  %v230_v39 = vmul.f32 0.0, %v5323_v33 }
 0x134   :  { %v229_v42 = vmul.f32 0.0, %v5325_v36 }
 0x196   :  { %v236_v34 = vpop.permute.xlu0 %235 }
 0x197   :  { %v240_v35 = vmul.f32 %v5323_v33, %v236_v34 }
 0x199   :  { %245 = vrot.lane.b32.xlu1 %v240_v35, %s5546_s4 }
 0x19a   :  { %v234_v37 = vpop.permute.xlu0 %233 }
 0x19b   :  { %v239_v38 = vmul.f32 %v5325_v36, %v234_v37 }
 0x19d   :  { %243 = vrot.lane.b32.xlu1 %v239_v38, %s5546_s4 }
 0x20b   :  { %v246_v40 = vpop.permute.xlu1 %245 }
 0x20c   :  { %v5707_v41 = vadd.f32 %v246_v40, %v230_v39 }
 0x20e   :  { %5326 = vtanh.f32 %v5707_v41  ;;  %v341_v21 = vrot.slane %v5707_v41, 7 }
 0x20f   :  { %v244_v43 = vpop.permute.xlu1 %243 }
 0x210   :  { %v5710_v44 = vadd.f32 %v244_v43, %v229_v42 }
 0x212   :  { %5328 = vtanh.f32 %v5710_v44  ;;  %v340_v24 = vrot.slane %v5710_v44, 7 }
 0x218   :  { %v5327_v45 = vpop.eup %5326 }
 0x219   :  { %257 = vrot.lane.b32.xlu0 %v5327_v45, %s5545_s30 }
 0x21c   :  { %v5329_v46 = vpop.eup %5328 }
 0x21d   :  { %255 = vrot.lane.b32.xlu1 %v5329_v46, %s5545_s30 }
 0x28b   :  { %v258_v47 = vpop.permute.xlu0 %257 }
 0x28c   :  { %v5715_v48 = vmul.f32 %v5323_v33, %v258_v47 }
 0x28e   :  { %v264_v49 = vpack.c.bf16 %v5715_v48, %v5715_v48 }
 0x28f   :  { %v256_v50 = vpop.permute.xlu1 %255 }
 0x290   :  { %v268_v51 = vunpack.c.l.b16 %v264_v49  ;;  %v5719_v52 = vmul.f32 %v5325_v36, %v256_v50 }
 0x292   :  { %v263_v53 = vpack.c.bf16 %v5719_v52, %v5719_v52  ;;  %v269_v54 = vrot.slane %v268_v51, 7 }
 0x294   :  { %v267_v55 = vunpack.c.l.b16 %v263_v53 }
 0x296   :  { %v271_v56 = vsel %vm270_vm2, %v269_v54, %v267_v55 }
 0x297   :  { %v272_v57 = vpack.c.b16 %v271_v56, %v271_v56 }
 0x299   :  { %273 = vrot.lane.b32.xlu0 %v272_v57, %s5546_s4 }
 0x30b   :  { %v274_v58 = vpop.permute.xlu0 %273 }
 0x30c   :  { %4666 = vmatmul.mubr.msk.bf16.vlgmr.msra.gmra.mrb[8].mxu1 %vm165_vm3, %v274_v58 }
 0x30d   :  { %4678 = vmatpush3.bf16.msra.mxu1 %v5654_v3  ;;  %4681 = vmatprep.mubr.msk.bf16.mxu1 %vm5543_vm0, %v5542_v0 }
 0x30e   :  { %4679 = vmatprep.subr.bf16.mxu1 %v5542_v0 }
 0x311   :  { %4680 = vmatpush3.bf16.msra.mxu1 %v5663_v5 }
 0x312   :  { %4693 = vmatprep.subr.bf16.mxu1 %v5542_v0 }
 0x3df   :  { %v312_v59 = vpop.f32.mrb[8].mxu1 }
 0x3e0   :  { %v319_v60 = vrot.slane %v312_v59, 7  ;;  %v323_v61 = vadd.f32 %v312_v59, %v5697_v17  ;;  %v4667_v62 = vpop.f32.mrb[9].mxu1 }
 0x3e1   :  { %v315_v63 = vpop.f32.mrb[10].mxu1 }
 0x3e2   :  { %v322_v1 = vadd.f32 %v319_v60, %v5700_v23  ;;  %5330 = vtanh.f32 %v323_v61  ;;  %v4668_v2 = vpop.f32.mrb[11].mxu1  ;;  %v4258_v7 = vmul.f32 -1.442695, %v323_v61 }
 0x3e4   :  { %5332 = vtanh.f32 %v322_v1  ;;  %v4257_v8 = vmul.f32 -1.442695, %v322_v1 }
 0x3e5   :  { %5334 = vpow2.f32 %v4258_v7 }
 0x3e6   :  { %5336 = vpow2.f32 %v4257_v8 }
 0x3ec   :  { %v5331_v4 = vpop.eup %5330 }
 0x3ed   :  { %350 = vrot.lane.b32.xlu0 %v5331_v4, %s5545_s30 }
 0x3ee   :  { %v5333_v6 = vpop.eup %5332 }
 0x3ef   :  { %348 = vrot.lane.b32.xlu1 %v5333_v6, %s5545_s30  ;;  %v5335_v9 = vpop.eup %5334 }
 0x3f0   :  { %v5337_v11 = vpop.eup %5336  ;;  %v331_v12 = vadd.f32 1.0, %v5335_v9 }
 0x3f1   :  { %v330_v13 = vadd.f32 1.0, %v5337_v11 }
 0x3f2   :  { %5338 = vrcp.f32 %v331_v12 }
 0x3f3   :  { %5340 = vrcp.f32 %v330_v13 }
 0x3fc   :  { %v5339_v14 = vpop.eup %5338 }
 0x3fd   :  { %v5341_v18 = vpop.eup %5340  ;;  %v345_v22 = vmul.f32 %v5339_v14, %v341_v21 }
 0x3fe   :  { %v344_v27 = vmul.f32 %v5341_v18, %v340_v24 }
 0x45f   :  { %v351_v15 = vpop.permute.xlu0 %350 }
 0x460   :  { %v355_v16 = vmul.f32 %v5339_v14, %v351_v15 }
 0x461   :  { %v349_v19 = vpop.permute.xlu1 %348 }
 0x462   :  { %360 = vrot.lane.b32.xlu0 %v355_v16, %s5546_s4  ;;  %v354_v20 = vmul.f32 %v5341_v18, %v349_v19 }
 0x464   :  { %358 = vrot.lane.b32.xlu1 %v354_v20, %s5546_s4 }
 0x4d4   :  { %v361_v25 = vpop.permute.xlu0 %360 }
 0x4d5   :  { %v5740_v26 = vadd.f32 %v361_v25, %v345_v22 }
 0x4d6   :  { %v359_v28 = vpop.permute.xlu1 %358 }
 0x4d7   :  { %5342 = vtanh.f32 %v5740_v26  ;;  %v364_v29 = vadd.f32 %v359_v28, %v344_v27  ;;  %v456_v6 = vrot.slane %v5740_v26, 7 }
 0x4d9   :  { %5344 = vtanh.f32 %v364_v29  ;;  %v455_v4 = vrot.slane %v364_v29, 7 }
 0x4e1   :  { %v5343_v30 = vpop.eup %5342 }
 0x4e2   :  { %372 = vrot.lane.b32.xlu0 %v5343_v30, %s5545_s30 }
 0x4e3   :  { %v5345_v31 = vpop.eup %5344 }
 0x4e4   :  { %370 = vrot.lane.b32.xlu1 %v5345_v31, %s5545_s30 }
 0x554   :  { %v373_v32 = vpop.permute.xlu0 %372 }
 0x555   :  { %v5745_v33 = vmul.f32 %v5339_v14, %v373_v32 }
 0x556   :  { %v371_v34 = vpop.permute.xlu1 %370 }
 0x557   :  { %v5747_v35 = vmul.f32 %v5341_v18, %v371_v34  ;;  %v379_v36 = vpack.c.bf16 %v5745_v33, %v5745_v33  ;;  %v1075_v22 = vsel %vm1073_vm4, %v5715_v48, %v5745_v33  ;;  %v5791_v48 = vld [vmem:[%s6053_s3] sm:$0xff]   ;;  %v5800_v33 = vld [vmem:[%s6053_s3 + $0x8] sm:$0xff]  }
 0x559   :  { %v378_v37 = vpack.c.bf16 %v5747_v35, %v5747_v35  ;;  %v383_v39 = vunpack.c.l.b16 %v379_v36  ;;  %v1074_v20 = vsel %vm1073_vm4, %v5719_v52, %v5747_v35 }
 0x55b   :  { %v382_v38 = vunpack.c.l.b16 %v378_v37 }
 0x55d   :  { %v384_v40 = vrot.slane %v382_v38, 1 }
 0x55f   :  { %v385_v41 = vsel %vm270_vm2, %v383_v39, %v384_v40 }
 0x560   :  { %v386_v42 = vpack.c.b16 %v385_v41, %v385_v41 }
 0x562   :  { %387 = vrot.lane.b32.xlu1 %v386_v42, %s5546_s4 }
 0x5d4   :  { %v388_v43 = vpop.permute.xlu1 %387 }
 0x5d5   :  { %4674 = vmatmul.mubr.msk.bf16.vlgmr.msra.gmra.mrb[0].mxu0 %vm165_vm3, %v388_v43 }
 0x5d6   :  { %4686 = vmatpush3.bf16.msra.mxu0 %v5654_v3  ;;  %4689 = vmatprep.mubr.msk.bf16.mxu0 %vm5543_vm0, %v5542_v0 }
 0x5d7   :  { %4687 = vmatprep.subr.bf16.mxu0 %v5542_v0 }
 0x5da   :  { %4688 = vmatpush3.bf16.msra.mxu0 %v5663_v5 }
 0x5db   :  { %4701 = vmatprep.subr.bf16.mxu0 %v5542_v0 }
 0x6a8   :  { %v426_v44 = vpop.f32.mrb[0].mxu0 }
 0x6a9   :  { %v433_v45 = vrot.slane %v426_v44, 6  ;;  %v434_v46 = vrot.slane %v426_v44, 7  ;;  %v4675_v47 = vpop.f32.mrb[1].mxu0 }
 0x6aa   :  { %v429_v49 = vpop.f32.mrb[2].mxu0 }
 0x6ab   :  { %v437_v50 = vadd.f32 %v433_v45, %v5700_v23  ;;  %v438_v51 = vadd.f32 %v434_v46, %v5697_v17  ;;  %v4676_v53 = vpop.f32.mrb[3].mxu0 }
 0x6ad   :  { %5346 = vtanh.f32 %v437_v50  ;;  %v4260_v5 = vmul.f32 -1.442695, %v437_v50  ;;  %v4261_v55 = vmul.f32 -1.442695, %v438_v51 }
 0x6ae   :  { %5348 = vtanh.f32 %v438_v51 }
 0x6af   :  { %5350 = vpow2.f32 %v4260_v5 }
 0x6b0   :  { %5352 = vpow2.f32 %v4261_v55 }
 0x6b7   :  { %v5347_v3 = vpop.eup %5346 }
 0x6b8   :  { %v5349_v54 = vpop.eup %5348  ;;  %463 = vrot.lane.b32.xlu0 %v5347_v3, %s5545_s30 }
 0x6b9   :  { %465 = vrot.lane.b32.xlu1 %v5349_v54, %s5545_s30  ;;  %v5351_v56 = vpop.eup %5350 }
 0x6ba   :  { %v5353_v57 = vpop.eup %5352  ;;  %v445_v58 = vadd.f32 1.0, %v5351_v56 }
 0x6bb   :  { %v446_v59 = vadd.f32 1.0, %v5353_v57 }
 0x6bc   :  { %5354 = vrcp.f32 %v445_v58 }
 0x6bd   :  { %5356 = vrcp.f32 %v446_v59 }
 0x6c6   :  { %v5355_v60 = vpop.eup %5354 }
 0x6c7   :  { %v5357_v62 = vpop.eup %5356  ;;  %v459_v7 = vmul.f32 %v5355_v60, %v455_v4 }
 0x6c8   :  { %v460_v8 = vmul.f32 %v5357_v62, %v456_v6 }
 0x72a   :  { %v464_v61 = vpop.permute.xlu0 %463 }
 0x72b   :  { %v466_v63 = vpop.permute.xlu1 %465  ;;  %v469_v1 = vmul.f32 %v5355_v60, %v464_v61 }
 0x72c   :  { %v470_v2 = vmul.f32 %v5357_v62, %v466_v63 }
 0x72d   :  { %473 = vrot.lane.b32.xlu0 %v469_v1, %s5546_s4 }
 0x72e   :  { %475 = vrot.lane.b32.xlu1 %v470_v2, %s5546_s4 }
 0x79f   :  { %v474_v9 = vpop.permute.xlu0 %473 }
 0x7a0   :  { %v476_v11 = vpop.permute.xlu1 %475  ;;  %v5769_v12 = vadd.f32 %v474_v9, %v459_v7 }
 0x7a1   :  { %v5771_v13 = vadd.f32 %v476_v11, %v460_v8 }
 0x7a2   :  { %5358 = vtanh.f32 %v5769_v12  ;;  %v571_v57 = vrot.slane %v5769_v12, 7 }
 0x7a3   :  { %5360 = vtanh.f32 %v5771_v13  ;;  %v572_v58 = vrot.slane %v5771_v13, 7 }
 0x7ac   :  { %v5359_v14 = vpop.eup %5358 }
 0x7ad   :  { %v5361_v15 = vpop.eup %5360  ;;  %485 = vrot.lane.b32.xlu0 %v5359_v14, %s5545_s30 }
 0x7ae   :  { %487 = vrot.lane.b32.xlu1 %v5361_v15, %s5545_s30 }
 0x81f   :  { %v486_v16 = vpop.permute.xlu0 %485 }
 0x820   :  { %v488_v18 = vpop.permute.xlu1 %487  ;;  %v491_v19 = vmul.f32 %v5355_v60, %v486_v16 }
 0x821   :  { %v492_v21 = vmul.f32 %v5357_v62, %v488_v18 }
 0x822   :  { %v493_v24 = vpack.c.bf16 %v491_v19, %v491_v19  ;;  %v5781_v25 = vsel %vm1076_vm5, %v1074_v20, %v491_v19 }
 0x823   :  { %v494_v26 = vpack.c.bf16 %v492_v21, %v492_v21  ;;  %v5783_v27 = vsel %vm1076_vm5, %v1075_v22, %v492_v21 }
 0x824   :  { %v497_v28 = vunpack.c.l.b16 %v493_v24 }
 0x825   :  { %v498_v29 = vunpack.c.l.b16 %v494_v26 }
 0x826   :  { %v499_v30 = vrot.slane %v497_v28, 2 }
 0x827   :  { %v500_v31 = vrot.slane %v498_v29, 1 }
 0x829   :  { %v501_v32 = vsel %vm270_vm2, %v500_v31, %v499_v30 }
 0x82a   :  { %v502_v34 = vpack.c.b16 %v501_v32, %v501_v32 }
 0x82c   :  { %503 = vrot.lane.b32.xlu0 %v502_v34, %s5546_s4 }
 0x89e   :  { %v504_v52 = vpop.permute.xlu0 %503 }
 0x89f   :  { %4682 = vmatmul.mubr.msk.bf16.vlgmr.msra.gmra.mrb[12].mxu1 %vm165_vm3, %v504_v52 }
 0x8a0   :  { %4694 = vmatpush3.bf16.msra.mxu1 %v5791_v48  ;;  %4697 = vmatprep.mubr.msk.bf16.mxu1 %vm5543_vm0, %v5542_v0 }
 0x8a1   :  { %4695 = vmatprep.subr.bf16.mxu1 %v5542_v0 }
 0x8a4   :  { %4696 = vmatpush3.bf16.msra.mxu1 %v5800_v33 }
 0x8a5   :  { %4709 = vmatprep.subr.bf16.mxu1 %v5542_v0 }
 0x972   :  { %v542_v35 = vpop.f32.mrb[12].mxu1 }
 0x973   :  { %v549_v36 = vrot.slane %v542_v35, 5  ;;  %v550_v37 = vrot.slane %v542_v35, 6  ;;  %v4683_v38 = vpop.f32.mrb[13].mxu1 }
 0x974   :  { %v545_v39 = vpop.f32.mrb[14].mxu1 }
 0x975   :  { %v553_v40 = vadd.f32 %v549_v36, %v5700_v23  ;;  %v554_v41 = vadd.f32 %v550_v37, %v5697_v17  ;;  %v4684_v42 = vpop.f32.mrb[15].mxu1 }
 0x977   :  { %5362 = vtanh.f32 %v553_v40  ;;  %v4263_v45 = vmul.f32 -1.442695, %v553_v40  ;;  %v4264_v46 = vmul.f32 -1.442695, %v554_v41 }
 0x978   :  { %5364 = vtanh.f32 %v554_v41 }
 0x979   :  { %5366 = vpow2.f32 %v4263_v45 }
 0x97a   :  { %5368 = vpow2.f32 %v4264_v46 }
 0x981   :  { %v5363_v43 = vpop.eup %5362 }
 0x982   :  { %v5365_v44 = vpop.eup %5364  ;;  %579 = vrot.lane.b32.xlu1 %v5363_v43, %s5545_s30 }
 0x983   :  { %581 = vrot.lane.b32.xlu0 %v5365_v44, %s5545_s30  ;;  %v5367_v47 = vpop.eup %5366 }
 0x984   :  { %v5369_v49 = vpop.eup %5368  ;;  %v561_v50 = vadd.f32 1.0, %v5367_v47 }
 0x985   :  { %v562_v51 = vadd.f32 1.0, %v5369_v49 }
 0x986   :  { %5370 = vrcp.f32 %v561_v50 }
 0x987   :  { %5372 = vrcp.f32 %v562_v51 }
 0x990   :  { %v5371_v53 = vpop.eup %5370 }
 0x991   :  { %v5373_v54 = vpop.eup %5372  ;;  %v575_v59 = vmul.f32 %v5371_v53, %v571_v57 }
 0x992   :  { %v576_v60 = vmul.f32 %v5373_v54, %v572_v58 }
 0x9f4   :  { %v580_v3 = vpop.permute.xlu1 %579 }
 0x9f5   :  { %v582_v5 = vpop.permute.xlu0 %581  ;;  %v585_v55 = vmul.f32 %v5371_v53, %v580_v3 }
 0x9f6   :  { %v586_v56 = vmul.f32 %v5373_v54, %v582_v5 }
 0x9f7   :  { %589 = vrot.lane.b32.xlu1 %v585_v55, %s5546_s4 }
 0x9f8   :  { %591 = vrot.lane.b32.xlu0 %v586_v56, %s5546_s4 }
 0xa69   :  { %v590_v61 = vpop.permute.xlu1 %589 }
 0xa6a   :  { %v592_v62 = vpop.permute.xlu0 %591  ;;  %v5812_v63 = vadd.f32 %v590_v61, %v575_v59 }
 0xa6b   :  { %v5814_v1 = vadd.f32 %v592_v62, %v576_v60 }
 0xa6c   :  { %5374 = vtanh.f32 %v5812_v63  ;;  %v687_v46 = vrot.slane %v5812_v63, 7 }
 0xa6d   :  { %5376 = vtanh.f32 %v5814_v1  ;;  %v688_v47 = vrot.slane %v5814_v1, 7 }
 0xa76   :  { %v5375_v2 = vpop.eup %5374 }
 0xa77   :  { %v5377_v4 = vpop.eup %5376  ;;  %601 = vrot.lane.b32.xlu1 %v5375_v2, %s5545_s30 }
 0xa78   :  { %603 = vrot.lane.b32.xlu0 %v5377_v4, %s5545_s30 }
 0xae9   :  { %v602_v6 = vpop.permute.xlu1 %601 }
 0xaea   :  { %v604_v7 = vpop.permute.xlu0 %603  ;;  %v607_v8 = vmul.f32 %v5371_v53, %v602_v6 }
 0xaeb   :  { %v608_v9 = vmul.f32 %v5373_v54, %v604_v7 }
 0xaec   :  { %v609_v11 = vpack.c.bf16 %v607_v8, %v607_v8  ;;  %v5821_v12 = vsel %vm1079_vm6, %v5781_v25, %v607_v8 }
 0xaed   :  { %v610_v13 = vpack.c.bf16 %v608_v9, %v608_v9  ;;  %v5824_v14 = vsel %vm1079_vm6, %v5783_v27, %v608_v9 }
 0xaee   :  { %v613_v15 = vunpack.c.l.b16 %v609_v11 }
 0xaef   :  { %v614_v16 = vunpack.c.l.b16 %v610_v13 }
 0xaf0   :  { %v615_v18 = vrot.slane %v613_v15, 3 }
 0xaf1   :  { %v616_v19 = vrot.slane %v614_v16, 2 }
 0xaf3   :  { %v617_v20 = vsel %vm270_vm2, %v616_v19, %v615_v18 }
 0xaf4   :  { %v618_v21 = vpack.c.b16 %v617_v20, %v617_v20 }
 0xaf6   :  { %619 = vrot.lane.b32.xlu1 %v618_v21, %s5546_s4 }
 0xb68   :  { %v620_v22 = vpop.permute.xlu1 %619 }
 0xb69   :  { %4690 = vmatmul.mubr.msk.bf16.vlgmr.msra.gmra.mrb[4].mxu0 %vm165_vm3, %v620_v22 }
 0xb6a   :  { %4702 = vmatpush3.bf16.msra.mxu0 %v5791_v48  ;;  %4705 = vmatprep.mubr.msk.bf16.mxu0 %vm5543_vm0, %v5542_v0 }
 0xb6b   :  { %4703 = vmatprep.subr.bf16.mxu0 %v5542_v0 }
 0xb6e   :  { %4704 = vmatpush3.bf16.msra.mxu0 %v5800_v33 }
 0xc3c   :  { %v658_v24 = vpop.f32.mrb[4].mxu0 }
 0xc3d   :  { %v665_v25 = vrot.slane %v658_v24, 4  ;;  %v666_v26 = vrot.slane %v658_v24, 5  ;;  %v4691_v27 = vpop.f32.mrb[5].mxu0 }
 0xc3e   :  { %v661_v28 = vpop.f32.mrb[6].mxu0 }
 0xc3f   :  { %v669_v29 = vadd.f32 %v665_v25, %v5700_v23  ;;  %v670_v30 = vadd.f32 %v666_v26, %v5697_v17  ;;  %v4692_v31 = vpop.f32.mrb[7].mxu0 }
 0xc41   :  { %5378 = vtanh.f32 %v669_v29  ;;  %v4266_v52 = vmul.f32 -1.442695, %v669_v29  ;;  %v4267_v35 = vmul.f32 -1.442695, %v670_v30 }
 0xc42   :  { %5380 = vtanh.f32 %v670_v30 }
 0xc43   :  { %5382 = vpow2.f32 %v4266_v52 }
 0xc44   :  { %5384 = vpow2.f32 %v4267_v35 }
 0xc4b   :  { %v5379_v32 = vpop.eup %5378 }
 0xc4c   :  { %v5381_v34 = vpop.eup %5380  ;;  %695 = vrot.lane.b32.xlu0 %v5379_v32, %s5545_s30 }
 0xc4d   :  { %697 = vrot.lane.b32.xlu1 %v5381_v34, %s5545_s30  ;;  %v5383_v36 = vpop.eup %5382 }
 0xc4e   :  { %v5385_v37 = vpop.eup %5384  ;;  %v677_v38 = vadd.f32 1.0, %v5383_v36 }
 0xc4f   :  { %v678_v39 = vadd.f32 1.0, %v5385_v37 }
 0xc50   :  { %5386 = vrcp.f32 %v677_v38 }
 0xc51   :  { %5388 = vrcp.f32 %v678_v39 }
 0xc5a   :  { %v5387_v40 = vpop.eup %5386 }
 0xc5b   :  { %v5389_v42 = vpop.eup %5388  ;;  %v691_v49 = vmul.f32 %v5387_v40, %v687_v46 }
 0xc5c   :  { %v692_v50 = vmul.f32 %v5389_v42, %v688_v47 }
 0xcbe   :  { %v696_v41 = vpop.permute.xlu0 %695 }
 0xcbf   :  { %v698_v43 = vpop.permute.xlu1 %697  ;;  %v701_v44 = vmul.f32 %v5387_v40, %v696_v41 }
 0xcc0   :  { %v702_v45 = vmul.f32 %v5389_v42, %v698_v43 }
 0xcc1   :  { %705 = vrot.lane.b32.xlu0 %v701_v44, %s5546_s4 }
 0xcc2   :  { %707 = vrot.lane.b32.xlu1 %v702_v45, %s5546_s4 }
 0xd33   :  { %v706_v51 = vpop.permute.xlu0 %705 }
 0xd34   :  { %v708_v53 = vpop.permute.xlu1 %707  ;;  %v5842_v3 = vadd.f32 %v706_v51, %v691_v49 }
 0xd35   :  { %v5844_v54 = vadd.f32 %v708_v53, %v692_v50 }
 0xd36   :  { %5390 = vtanh.f32 %v5842_v3  ;;  %v803_v34 = vrot.slane %v5842_v3, 7 }
 0xd37   :  { %5392 = vtanh.f32 %v5844_v54  ;;  %v804_v52 = vrot.slane %v5844_v54, 7 }
 0xd40   :  { %v5391_v5 = vpop.eup %5390 }
 0xd41   :  { %v5393_v55 = vpop.eup %5392  ;;  %717 = vrot.lane.b32.xlu0 %v5391_v5, %s5545_s30 }
 0xd42   :  { %719 = vrot.lane.b32.xlu1 %v5393_v55, %s5545_s30 }
 0xdb3   :  { %v718_v56 = vpop.permute.xlu0 %717 }
 0xdb4   :  { %v720_v57 = vpop.permute.xlu1 %719  ;;  %v723_v58 = vmul.f32 %v5387_v40, %v718_v56 }
 0xdb5   :  { %v724_v59 = vmul.f32 %v5389_v42, %v720_v57 }
 0xdb6   :  { %v725_v60 = vpack.c.bf16 %v723_v58, %v723_v58  ;;  %v5852_v61 = vsel %vm1082_vm7, %v5821_v12, %v723_v58 }
 0xdb7   :  { %v726_v62 = vpack.c.bf16 %v724_v59, %v724_v59  ;;  %v5856_v63 = vsel %vm1082_vm7, %v5824_v14, %v724_v59 }
 0xdb8   :  { %v729_v1 = vunpack.c.l.b16 %v725_v60 }
 0xdb9   :  { %v730_v2 = vunpack.c.l.b16 %v726_v62 }
 0xdba   :  { %v731_v4 = vrot.slane %v729_v1, 4 }
 0xdbb   :  { %v732_v6 = vrot.slane %v730_v2, 3 }
 0xdbd   :  { %v733_v7 = vsel %vm270_vm2, %v732_v6, %v731_v4 }
 0xdbe   :  { %v734_v8 = vpack.c.b16 %v733_v7, %v733_v7 }
 0xdc0   :  { %735 = vrot.lane.b32.xlu0 %v734_v8, %s5546_s4 }
 0xe32   :  { %v736_v9 = vpop.permute.xlu0 %735 }
 0xe33   :  { %4698 = vmatmul.mubr.msk.bf16.vlgmr.msra.gmra.mrb[16].mxu1 %vm165_vm3, %v736_v9 }
 0xe34   :  { %4710 = vmatpush3.bf16.msra.mxu1 %v5791_v48  ;;  %4713 = vmatprep.mubr.msk.bf16.mxu1 %vm5543_vm0, %v5542_v0 }
 0xe35   :  { %4711 = vmatprep.subr.bf16.mxu1 %v5542_v0 }
 0xe38   :  { %4712 = vmatpush3.bf16.msra.mxu1 %v5800_v33 }
 0xe39   :  { %4717 = vmatprep.subr.bf16.mxu1 %v5542_v0 }
 0xf06   :  { %v774_v11 = vpop.f32.mrb[16].mxu1 }
 0xf07   :  { %v781_v12 = vrot.slane %v774_v11, 3  ;;  %v782_v13 = vrot.slane %v774_v11, 4  ;;  %v4699_v14 = vpop.f32.mrb[17].mxu1 }
 0xf08   :  { %v777_v15 = vpop.f32.mrb[18].mxu1 }
 0xf09   :  { %v785_v16 = vadd.f32 %v781_v12, %v5700_v23  ;;  %v786_v18 = vadd.f32 %v782_v13, %v5697_v17  ;;  %v4700_v19 = vpop.f32.mrb[19].mxu1 }
 0xf0b   :  { %5394 = vtanh.f32 %v785_v16  ;;  %v4269_v33 = vmul.f32 -1.442695, %v785_v16  ;;  %v4270_v21 = vmul.f32 -1.442695, %v786_v18 }
 0xf0c   :  { %5396 = vtanh.f32 %v786_v18 }
 0xf0d   :  { %5398 = vpow2.f32 %v4269_v33 }
 0xf0e   :  { %5400 = vpow2.f32 %v4270_v21 }
 0xf15   :  { %v5395_v48 = vpop.eup %5394 }
 0xf16   :  { %v5397_v20 = vpop.eup %5396  ;;  %811 = vrot.lane.b32.xlu1 %v5395_v48, %s5545_s30 }
 0xf17   :  { %813 = vrot.lane.b32.xlu0 %v5397_v20, %s5545_s30  ;;  %v5399_v22 = vpop.eup %5398 }
 0xf18   :  { %v5401_v24 = vpop.eup %5400  ;;  %v793_v25 = vadd.f32 1.0, %v5399_v22 }
 0xf19   :  { %v794_v26 = vadd.f32 1.0, %v5401_v24 }
 0xf1a   :  { %5402 = vrcp.f32 %v793_v25 }
 0xf1b   :  { %5404 = vrcp.f32 %v794_v26 }
 0xf24   :  { %v5403_v27 = vpop.eup %5402 }
 0xf25   :  { %v5405_v29 = vpop.eup %5404  ;;  %v807_v35 = vmul.f32 %v5403_v27, %v803_v34 }
 0xf26   :  { %v808_v36 = vmul.f32 %v5405_v29, %v804_v52 }
 0xf88   :  { %v812_v28 = vpop.permute.xlu1 %811 }
 0xf89   :  { %v814_v30 = vpop.permute.xlu0 %813  ;;  %v817_v31 = vmul.f32 %v5403_v27, %v812_v28 }
 0xf8a   :  { %v818_v32 = vmul.f32 %v5405_v29, %v814_v30 }
 0xf8b   :  { %821 = vrot.lane.b32.xlu1 %v817_v31, %s5546_s4 }
 0xf8c   :  { %823 = vrot.lane.b32.xlu0 %v818_v32, %s5546_s4 }
 0xffd   :  { %v822_v37 = vpop.permute.xlu1 %821 }
 0xffe   :  { %v824_v38 = vpop.permute.xlu0 %823  ;;  %v827_v39 = vadd.f32 %v822_v37, %v807_v35 }
 0xfff   :  { %v828_v40 = vadd.f32 %v824_v38, %v808_v36 }
0x1000   :  { %5406 = vtanh.f32 %v827_v39  ;;  %v919_v20 = vrot.slane %v827_v39, 7 }
0x1001   :  { %5408 = vtanh.f32 %v828_v40  ;;  %v920_v33 = vrot.slane %v828_v40, 7 }
0x100a   :  { %v5407_v41 = vpop.eup %5406 }
0x100b   :  { %v5409_v42 = vpop.eup %5408  ;;  %833 = vrot.lane.b32.xlu1 %v5407_v41, %s5545_s30 }
0x100c   :  { %835 = vrot.lane.b32.xlu0 %v5409_v42, %s5545_s30 }
0x107d   :  { %v834_v43 = vpop.permute.xlu1 %833 }
0x107e   :  { %v836_v44 = vpop.permute.xlu0 %835  ;;  %v839_v45 = vmul.f32 %v5403_v27, %v834_v43 }
0x107f   :  { %v840_v46 = vmul.f32 %v5405_v29, %v836_v44 }
0x1080   :  { %v841_v47 = vpack.c.bf16 %v839_v45, %v839_v45  ;;  %v5879_v49 = vsel %vm1085_vm8, %v5852_v61, %v839_v45 }
0x1081   :  { %v842_v50 = vpack.c.bf16 %v840_v46, %v840_v46  ;;  %v5883_v51 = vsel %vm1085_vm8, %v5856_v63, %v840_v46 }
0x1082   :  { %v845_v53 = vunpack.c.l.b16 %v841_v47 }
0x1083   :  { %v846_v3 = vunpack.c.l.b16 %v842_v50 }
0x1084   :  { %v847_v54 = vrot.slane %v845_v53, 5 }
0x1085   :  { %v848_v5 = vrot.slane %v846_v3, 4 }
0x1087   :  { %v849_v55 = vsel %vm270_vm2, %v848_v5, %v847_v54 }
0x1088   :  { %v850_v56 = vpack.c.b16 %v849_v55, %v849_v55 }
0x108a   :  { %851 = vrot.lane.b32.xlu1 %v850_v56, %s5546_s4 }
0x10fc   :  { %v852_v57 = vpop.permute.xlu1 %851 }
0x10fd   :  { %4706 = vmatmul.mubr.msk.bf16.vlgmr.msra.gmra.mrb[8].mxu0 %vm165_vm3, %v852_v57 }
0x10fe   :  { %1259 = vmatprep.mubr.bf16.mxu0 %v5544_v10 }
0x11d0   :  { %v890_v58 = vpop.f32.mrb[8].mxu0 }
0x11d1   :  { %v897_v59 = vrot.slane %v890_v58, 2  ;;  %v898_v60 = vrot.slane %v890_v58, 3  ;;  %v4707_v61 = vpop.f32.mrb[9].mxu0 }
0x11d2   :  { %v893_v62 = vpop.f32.mrb[10].mxu0 }
0x11d3   :  { %v901_v63 = vadd.f32 %v897_v59, %v5700_v23  ;;  %v902_v1 = vadd.f32 %v898_v60, %v5697_v17  ;;  %v4708_v2 = vpop.f32.mrb[11].mxu0 }
0x11d5   :  { %5410 = vtanh.f32 %v901_v63  ;;  %v4272_v7 = vmul.f32 -1.442695, %v901_v63  ;;  %v4273_v8 = vmul.f32 -1.442695, %v902_v1 }
0x11d6   :  { %5412 = vtanh.f32 %v902_v1 }
0x11d7   :  { %5414 = vpow2.f32 %v4272_v7 }
0x11d8   :  { %5416 = vpow2.f32 %v4273_v8 }
0x11df   :  { %v5411_v4 = vpop.eup %5410 }
0x11e0   :  { %v5413_v6 = vpop.eup %5412  ;;  %927 = vrot.lane.b32.xlu0 %v5411_v4, %s5545_s30 }
0x11e1   :  { %929 = vrot.lane.b32.xlu1 %v5413_v6, %s5545_s30  ;;  %v5415_v9 = vpop.eup %5414 }
0x11e2   :  { %v5417_v11 = vpop.eup %5416  ;;  %v909_v12 = vadd.f32 1.0, %v5415_v9 }
0x11e3   :  { %v910_v13 = vadd.f32 1.0, %v5417_v11 }
0x11e4   :  { %5418 = vrcp.f32 %v909_v12 }
0x11e5   :  { %5420 = vrcp.f32 %v910_v13  ;;  %v4874_v13 = vld [vmem:[#allocation4] ss:$12 sps:$4 sm:$0xff]  }
0x11ee   :  { %v5419_v14 = vpop.eup %5418 }
0x11ef   :  { %v5421_v16 = vpop.eup %5420  ;;  %v923_v21 = vmul.f32 %v5419_v14, %v919_v20  ;;  %v4881_v20 = vld [vmem:[#allocation4 + $0x20] ss:$12 sps:$4 sm:$0xff]  }
0x11f0   :  { %v924_v22 = vmul.f32 %v5421_v16, %v920_v33  ;;  %v4884_v33 = vld [vmem:[#allocation4 + $0x34] ss:$12 sps:$4 sm:$0xff]  }
0x1252   :  { %v928_v15 = vpop.permute.xlu0 %927 }
0x1253   :  { %v930_v18 = vpop.permute.xlu1 %929  ;;  %v933_v19 = vmul.f32 %v5419_v14, %v928_v15  ;;  %v4877_v15 = vld [vmem:[#allocation4 + $0x8] ss:$12 sps:$4 sm:$0xff]  }
0x1254   :  { %v934_v48 = vmul.f32 %v5421_v16, %v930_v18 }
0x1255   :  { %937 = vrot.lane.b32.xlu0 %v933_v19, %s5546_s4  ;;  %v4878_v19 = vld [vmem:[#allocation4 + $0x18] ss:$12 sps:$4 sm:$0xff]  }
0x1256   :  { %939 = vrot.lane.b32.xlu1 %v934_v48, %s5546_s4  ;;  %v4880_v48 = vld [vmem:[#allocation4 + $0x1c] ss:$12 sps:$4 sm:$0xff]  }
0x12c7   :  { %v938_v24 = vpop.permute.xlu0 %937 }
0x12c8   :  { %v940_v25 = vpop.permute.xlu1 %939  ;;  %v943_v26 = vadd.f32 %v938_v24, %v923_v21  ;;  %v4882_v21 = vld [vmem:[#allocation4 + $0x30] ss:$12 sps:$4 sm:$0xff]   ;;  %v4888_v24 = vld [vmem:[#allocation4 + $0x4c] ss:$12 sps:$4 sm:$0xff]  }
0x12c9   :  { %v944_v27 = vadd.f32 %v940_v25, %v924_v22  ;;  %v4885_v22 = vld [vmem:[#allocation4 + $0x38] ss:$12 sps:$4 sm:$0xff]   ;;  %v4886_v25 = vld [vmem:[#allocation4 + $0x48] ss:$12 sps:$4 sm:$0xff]  }
0x12ca   :  { %5422 = vtanh.f32 %v943_v26  ;;  %v1035_v2 = vrot.slane %v943_v26, 7  ;;  %v4889_v26 = vld [vmem:[#allocation4 + $0x50] ss:$12 sps:$4 sm:$0xff]  }
0x12cb   :  { %5424 = vtanh.f32 %v944_v27  ;;  %v1036_v4 = vrot.slane %v944_v27, 7 }
0x12d4   :  { %v5423_v28 = vpop.eup %5422 }
0x12d5   :  { %v5425_v29 = vpop.eup %5424  ;;  %949 = vrot.lane.b32.xlu0 %v5423_v28, %s5545_s30  ;;  %v4892_v28 = vld [vmem:[#allocation4 + $0x64] ss:$12 sps:$4 sm:$0xff]  }
0x12d6   :  { %951 = vrot.lane.b32.xlu1 %v5425_v29, %s5545_s30 }
0x1347   :  { %v950_v30 = vpop.permute.xlu0 %949 }
0x1348   :  { %v952_v31 = vpop.permute.xlu1 %951  ;;  %v955_v32 = vmul.f32 %v5419_v14, %v950_v30  ;;  %v4876_v14 = vld [vmem:[#allocation4 + $0x4] ss:$12 sps:$4 sm:$0xff]  }
0x1349   :  { %v956_v34 = vmul.f32 %v5421_v16, %v952_v31  ;;  %1227 = vmatprep.subr.bf16.mxu0 %v4876_v14 }
0x134a   :  { %v957_v52 = vpack.c.bf16 %v955_v32, %v955_v32  ;;  %v5899_v35 = vsel %vm1088_vm9, %v5879_v49, %v955_v32  ;;  %1228 = vmatpush1.bf16.msra.mxu0 %v4874_v13  ;;  %v4925_v13 = vld [vmem:[#allocation4 + $0x128] ss:$12 sps:$4 sm:$0xff]  }
0x134b   :  { %v958_v36 = vpack.c.bf16 %v956_v34, %v956_v34  ;;  %v5903_v37 = vsel %vm1088_vm9, %v5883_v51, %v956_v34  ;;  %1229 = vmatprep.subr.bf16.mxu0 %v4880_v48  ;;  %v4930_v48 = vld [vmem:[#allocation4 + $0x150] ss:$12 sps:$4 sm:$0xff]  }
0x134c   :  { %v961_v38 = vunpack.c.l.b16 %v957_v52  ;;  %v1099_v52 = vld [vmem:[%s6051_s1] sm:$0xff] }
0x134d   :  { %v962_v39 = vunpack.c.l.b16 %v958_v36 }
0x134e   :  { %v963_v40 = vrot.slane %v961_v38, 6  ;;  %1230 = vmatpush1.bf16.msra.mxu0 %v4878_v19  ;;  %v4932_v19 = vld [vmem:[#allocation4 + $0x154] ss:$12 sps:$4 sm:$0xff]  }
0x134f   :  { %v964_v41 = vrot.slane %v962_v39, 5  ;;  %1231 = vmatprep.subr.bf16.mxu0 %v4884_v33  ;;  %v4936_v33 = vld [vmem:[#allocation4 + $0x16c] ss:$12 sps:$4 sm:$0xff]  }
0x1351   :  { %v965_v42 = vsel %vm270_vm2, %v964_v41, %v963_v40 }
0x1352   :  { %v966_v43 = vpack.c.b16 %v965_v42, %v965_v42  ;;  %1232 = vmatpush1.bf16.msra.mxu0 %v4882_v21  ;;  %v4934_v21 = vld [vmem:[#allocation4 + $0x168] ss:$12 sps:$4 sm:$0xff]  }
0x1353   :  { %1233 = vmatprep.subr.bf16.mxu0 %v4888_v24  ;;  %v4940_v24 = vld [vmem:[#allocation4 + $0x184] ss:$12 sps:$4 sm:$0xff]  }
0x1354   :  { %967 = vrot.lane.b32.xlu0 %v966_v43, %s5546_s4  ;;  %v4890_v43 = vld [vmem:[#allocation4 + $0x60] ss:$12 sps:$4 sm:$0xff]  }
0x1356   :  { %1234 = vmatpush1.bf16.msra.mxu0 %v4886_v25 }
0x1357   :  { %1404 = vmatprep.subr.bf16.mxu0 %v4892_v28  ;;  %v4941_v28 = vld [vmem:[#allocation4 + $0x188] ss:$12 sps:$4 sm:$0xff]  }
0x13c6   :  { %v968_v44 = vpop.permute.xlu0 %967 }
0x13c7   :  { %4714 = vmatmul.mubr.msk.bf16.vlgmr.msra.gmra.mrb[20].mxu1 %vm165_vm3, %v968_v44 }
0x13c8   :  { %4725 = vmatprep.mubr.msk.bf16.mxu1 %vm5543_vm0, %v5542_v0  ;;  %4718 = vmatpush3.bf16.msra.mxu1 %v4877_v15  ;;  %v4928_v15 = vld [vmem:[#allocation4 + $0x13c] ss:$12 sps:$4 sm:$0xff]  }
0x13c9   :  { %4719 = vmatprep.subr.bf16.mxu1 %v5542_v0 }
0x13cc   :  { %4720 = vmatpush3.bf16.msra.mxu1 %v4881_v20  ;;  %v4933_v20 = vld [vmem:[#allocation4 + $0x158] ss:$12 sps:$4 sm:$0xff]  }
0x13cd   :  { %4721 = vmatprep.subr.bf16.mxu1 %v5542_v0 }
0x13d0   :  { %4722 = vmatpush3.bf16.msra.mxu1 %v4885_v22  ;;  %v4937_v22 = vld [vmem:[#allocation4 + $0x170] ss:$12 sps:$4 sm:$0xff]  }
0x13d1   :  { %4723 = vmatprep.subr.bf16.mxu1 %v5542_v0 }
0x13d4   :  { %4724 = vmatpush3.bf16.msra.mxu1 %v4889_v26 }
0x13d5   :  { %4729 = vmatprep.subr.bf16.mxu1 %v5542_v0 }
0x149a   :  { %v1006_v45 = vpop.f32.mrb[20].mxu1 }
0x149b   :  { %v1013_v46 = vrot.slane %v1006_v45, 1  ;;  %v1014_v47 = vrot.slane %v1006_v45, 2  ;;  %v4715_v49 = vpop.f32.mrb[21].mxu1  ;;  %v4893_v45 = vld [vmem:[#allocation4 + $0x68] ss:$12 sps:$4 sm:$0xff]  }
0x149c   :  { %v1009_v50 = vpop.f32.mrb[22].mxu1  ;;  %v4894_v49 = vld [vmem:[#allocation4 + $0x78] ss:$12 sps:$4 sm:$0xff]  }
0x149d   :  { %v1017_v51 = vadd.f32 %v1013_v46, %v5700_v23  ;;  %v1018_v53 = vadd.f32 %v1014_v47, %v5697_v17  ;;  %v4716_v3 = vpop.f32.mrb[23].mxu1  ;;  %v4896_v47 = vld [vmem:[#allocation4 + $0x7c] ss:$12 sps:$4 sm:$0xff]   ;;  %v4897_v50 = vld [vmem:[#allocation4 + $0x80] ss:$12 sps:$4 sm:$0xff]  }
0x149e   :  { %v4901_v3 = vld [vmem:[#allocation4 + $0x98] ss:$12 sps:$4 sm:$0xff]  }
0x149f   :  { %5426 = vtanh.f32 %v1017_v51  ;;  %v4275_v55 = vmul.f32 -1.442695, %v1017_v51  ;;  %v4276_v56 = vmul.f32 -1.442695, %v1018_v53  ;;  %v4900_v51 = vld [vmem:[#allocation4 + $0x94] ss:$12 sps:$4 sm:$0xff]  }
0x14a0   :  { %5428 = vtanh.f32 %v1018_v53  ;;  %v4898_v53 = vld [vmem:[#allocation4 + $0x90] ss:$12 sps:$4 sm:$0xff]  }
0x14a1   :  { %5430 = vpow2.f32 %v4275_v55  ;;  %v4905_v55 = vld [vmem:[#allocation4 + $0xb0] ss:$12 sps:$4 sm:$0xff]  }
0x14a2   :  { %5432 = vpow2.f32 %v4276_v56  ;;  %v4908_v56 = vld [vmem:[#allocation4 + $0xc4] ss:$12 sps:$4 sm:$0xff]  }
0x14a9   :  { %v5427_v54 = vpop.eup %5426 }
0x14aa   :  { %v5429_v5 = vpop.eup %5428  ;;  %1043 = vrot.lane.b32.xlu1 %v5427_v54, %s5545_s30  ;;  %v4904_v54 = vld [vmem:[#allocation4 + $0xac] ss:$12 sps:$4 sm:$0xff]  }
0x14ab   :  { %1045 = vrot.lane.b32.xlu0 %v5429_v5, %s5545_s30  ;;  %v5431_v57 = vpop.eup %5430  ;;  %v4902_v5 = vld [vmem:[#allocation4 + $0xa8] ss:$12 sps:$4 sm:$0xff]  }
0x14ac   :  { %v5433_v58 = vpop.eup %5432  ;;  %v1025_v59 = vadd.f32 1.0, %v5431_v57 }
0x14ad   :  { %v1026_v60 = vadd.f32 1.0, %v5433_v58 }
0x14ae   :  { %5434 = vrcp.f32 %v1025_v59  ;;  %v4906_v59 = vld [vmem:[#allocation4 + $0xc0] ss:$12 sps:$4 sm:$0xff]  }
0x14af   :  { %5436 = vrcp.f32 %v1026_v60  ;;  %v4909_v60 = vld [vmem:[#allocation4 + $0xc8] ss:$12 sps:$4 sm:$0xff]  }
0x14b8   :  { %v5435_v17 = vpop.eup %5434 }
0x14b9   :  { %v5437_v61 = vpop.eup %5436  ;;  %v1039_v6 = vmul.f32 %v5435_v17, %v1035_v2  ;;  %v4917_v2 = vld [vmem:[#allocation4 + $0xf8] ss:$12 sps:$4 sm:$0xff]  }
0x14ba   :  { %v1040_v7 = vmul.f32 %v5437_v61, %v1036_v4  ;;  %v4920_v4 = vld [vmem:[#allocation4 + $0x10c] ss:$12 sps:$4 sm:$0xff]  }
0x151c   :  { %v1044_v23 = vpop.permute.xlu1 %1043 }
0x151d   :  { %v1046_v62 = vpop.permute.xlu0 %1045  ;;  %v1049_v63 = vmul.f32 %v5435_v17, %v1044_v23  ;;  %v4912_v23 = vld [vmem:[#allocation4 + $0xdc] ss:$12 sps:$4 sm:$0xff]  }
0x151e   :  { %v1050_v1 = vmul.f32 %v5437_v61, %v1046_v62  ;;  %v4913_v62 = vld [vmem:[#allocation4 + $0xe0] ss:$12 sps:$4 sm:$0xff]  }
0x151f   :  { %1053 = vrot.lane.b32.xlu1 %v1049_v63, %s5546_s4  ;;  %v4916_v63 = vld [vmem:[#allocation4 + $0xf4] ss:$12 sps:$4 sm:$0xff]  }
0x1520   :  { %1055 = vrot.lane.b32.xlu0 %v1050_v1, %s5546_s4  ;;  %v4914_v1 = vld [vmem:[#allocation4 + $0xf0] ss:$12 sps:$4 sm:$0xff]  }
0x1591   :  { %v1054_v8 = vpop.permute.xlu1 %1053 }
0x1592   :  { %v1056_v9 = vpop.permute.xlu0 %1055  ;;  %v1059_v11 = vadd.f32 %v1054_v8, %v1039_v6  ;;  %v4918_v6 = vld [vmem:[#allocation4 + $0x108] ss:$12 sps:$4 sm:$0xff]   ;;  %v4924_v8 = vld [vmem:[#allocation4 + $0x124] ss:$12 sps:$4 sm:$0xff]  }
0x1593   :  { %v1060_v12 = vadd.f32 %v1056_v9, %v1040_v7  ;;  %v4921_v7 = vld [vmem:[#allocation4 + $0x110] ss:$12 sps:$4 sm:$0xff]  }
0x1594   :  { %5438 = vtanh.f32 %v1059_v11 }
0x1595   :  { %5440 = vtanh.f32 %v1060_v12  ;;  %v4922_v12 = vld [vmem:[#allocation4 + $0x120] ss:$12 sps:$4 sm:$0xff]  }
0x159e   :  { %v5439_v16 = vpop.eup %5438 }
0x159f   :  { %v5441_v18 = vpop.eup %5440  ;;  %1065 = vrot.lane.b32.xlu1 %v5439_v16, %s5545_s30  ;;  %v4926_v16 = vld [vmem:[#allocation4 + $0x138] ss:$12 sps:$4 sm:$0xff]  }
0x15a0   :  { %1067 = vrot.lane.b32.xlu0 %v5441_v18, %s5545_s30  ;;  %v4929_v18 = vld [vmem:[#allocation4 + $0x140] ss:$12 sps:$4 sm:$0xff]  }
0x1611   :  { %v1066_v27 = vpop.permute.xlu1 %1065 }
0x1612   :  { %v1068_v29 = vpop.permute.xlu0 %1067  ;;  %v1071_v30 = vmul.f32 %v5435_v17, %v1066_v27  ;;  %v4938_v27 = vld [vmem:[#allocation4 + $0x180] ss:$12 sps:$4 sm:$0xff]  }
0x1613   :  { %v1072_v31 = vmul.f32 %v5437_v61, %v1068_v29  ;;  %v4910_v61 = vld [vmem:[#allocation4 + $0xd8] ss:$12 sps:$4 sm:$0xff]  }
0x1614   :  { %v1092_v32 = vsel %vm1091_vm11, %v5899_v35, %v1071_v30  ;;  %v1100_v35 = vld [vmem:[%s6051_s1 + $0x8] sm:$0xff] }
0x1615   :  { %v1093_v34 = vsel %vm1091_vm11, %v5903_v37, %v1072_v31  ;;  %1103 = vrot.lane.b32.xlu1 %v1092_v32, %s5546_s4  ;;  %v4944_v30 = vld [vmem:[#allocation4 + $0x19c] ss:$12 sps:$4 sm:$0xff]   ;;  %v4942_v31 = vld [vmem:[#allocation4 + $0x198] ss:$12 sps:$4 sm:$0xff]   ;;  %v4945_v32 = vld [vmem:[#allocation4 + $0x1a0] ss:$12 sps:$4 sm:$0xff]  }
0x1616   :  { %1105 = vrot.lane.b32.xlu0 %v1093_v34, %s5546_s4  ;;  %v4948_v34 = vld [vmem:[#allocation4 + $0x1b4] ss:$12 sps:$4 sm:$0xff]  }
0x1619   :  { %1111 = vrot.lane.b32.xlu1 %v1099_v52, %s5546_s4  ;;  %v4946_v52 = vld [vmem:[#allocation4 + $0x1b0] ss:$12 sps:$4 sm:$0xff]  }
0x161a   :  { %1113 = vrot.lane.b32.xlu0 %v1100_v35, %s5546_s4  ;;  %v4949_v35 = vld [vmem:[#allocation4 + $0x1b8] ss:$12 sps:$4 sm:$0xff]  }
0x1687   :  { %v1104_v36 = vpop.permute.xlu1 %1103 }
0x1688   :  { %v1106_v37 = vpop.permute.xlu0 %1105 }
0x168b   :  { %v1112_v38 = vpop.permute.xlu1 %1111 }
0x168c   :  { %v1114_v39 = vpop.permute.xlu0 %1113  ;;  %v1117_v40 = vsel %vm165_vm3, %v1104_v36, %v1112_v38  ;;  %v4952_v36 = vld [vmem:[#allocation4 + $0x1cc] ss:$12 sps:$4 sm:$0xff]   ;;  %v4953_v38 = vld [vmem:[#allocation4 + $0x1d0] ss:$12 sps:$4 sm:$0xff]  }
0x168d   :  { %v1118_v41 = vsel %vm165_vm3, %v1106_v37, %v1114_v39  ;;  %1119 = vst.msk [vmem:[#allocation2 + $0x2] sm:$0xff] %vm104_vm1, %v1117_v40  ;;  %v4950_v37 = vld [vmem:[#allocation4 + $0x1c8] ss:$12 sps:$4 sm:$0xff]   ;;  %v4956_v39 = vld [vmem:[#allocation7 + $0x4] ss:$8 sps:$4 sm:$0xff]  }
0x168e   :  { %1120 = vst.msk [vmem:[#allocation2 + $0x12] sm:$0xff] %vm104_vm1, %v1118_v41  ;;  %v4983_v40 = vld [vmem:[#allocation7 + $0x284] ss:$8 sps:$4 sm:$0xff]  }
0x1694   :  { %v1141_v42 = vld [vmem:[#allocation2] sm:$0xff] }
0x1695   :  { %v1142_v44 = vld [vmem:[#allocation2 + $0x10] sm:$0xff]  ;;  %v1317_v57 = vld [vmem:[#allocation2 + $0x1] sm:$0xff] }
0x1696   :  { %v1143_v46 = vpack.c.bf16 %v1142_v44, %v1141_v42  ;;  %v1318_v58 = vld [vmem:[#allocation2 + $0x11] sm:$0xff]  ;;  %v1494_v9 = vld [vmem:[#allocation2 + $0x2] sm:$0xff] }
0x1697   :  { %v1319_v17 = vpack.c.bf16 %v1318_v58, %v1317_v57  ;;  %v1495_v11 = vld [vmem:[#allocation2 + $0x12] sm:$0xff]  ;;  %v1671_v25 = vld [vmem:[#allocation2 + $0x3] sm:$0xff] }
0x1698   :  { %4289 = vmatmul.mubr.msk.bf16.vlgmr.msra.gmra.mrb[12].mxu0 %vm104_vm1, %v1143_v46  ;;  %4726 = vmatmul.mubr.msk.bf16.vlgmr.msra.gmra.mrb[24].mxu1 %vm104_vm1, %v1143_v46  ;;  %v1496_v14 = vpack.c.bf16 %v1495_v11, %v1494_v9  ;;  %v1672_v26 = vld [vmem:[#allocation2 + $0x13] sm:$0xff]  ;;  %v1848_v41 = vld [vmem:[#allocation2 + $0x4] sm:$0xff] }
0x1699   :  { %1405 = vmatpush1.bf16.msra.mxu0 %v4890_v43  ;;  %4730 = vmatpush3.bf16.msra.mxu1 %v4893_v45  ;;  %v1673_v29 = vpack.c.bf16 %v1672_v26, %v1671_v25  ;;  %v1849_v42 = vld [vmem:[#allocation2 + $0x14] sm:$0xff]  ;;  %v4954_v43 = vld [vmem:[#allocation7] ss:$8 sps:$4 sm:$0xff]   ;;  %v5004_v11 = vld [vmem:[#allocation7 + $0xc4] ss:$8 sps:$4 sm:$0xff]  }
0x169a   :  { %1406 = vmatprep.subr.bf16.mxu0 %v4896_v47  ;;  %4731 = vmatprep.subr.bf16.mxu1 %v5542_v0  ;;  %v4981_v44 = vld [vmem:[#allocation7 + $0x280] ss:$8 sps:$4 sm:$0xff]   ;;  %v1850_v45 = vpack.c.bf16 %v1849_v42, %v1848_v41  ;;  %v4959_v46 = vld [vmem:[#allocation7 + $0x14] ss:$8 sps:$4 sm:$0xff]   ;;  %v4957_v47 = vld [vmem:[#allocation7 + $0x10] ss:$8 sps:$4 sm:$0xff]  }
0x169b   :  { %1436 = vmatprep.mubr.bf16.mxu0 %v5544_v10  ;;  %4737 = vmatprep.mubr.msk.bf16.mxu1 %vm5543_vm0, %v5542_v0  ;;  %v4977_v57 = vld [vmem:[#allocation7 + $0x74] ss:$8 sps:$4 sm:$0xff]   ;;  %v4975_v58 = vld [vmem:[#allocation7 + $0x70] ss:$8 sps:$4 sm:$0xff]  }
0x169c   :  { %v4999_v9 = vld [vmem:[#allocation7 + $0x2b0] ss:$8 sps:$4 sm:$0xff]  }
0x169d   :  { %1407 = vmatpush1.bf16.msra.mxu0 %v4894_v49  ;;  %4732 = vmatpush3.bf16.msra.mxu1 %v4897_v50  ;;  %v4960_v49 = vld [vmem:[#allocation7 + $0x20] ss:$8 sps:$4 sm:$0xff]   ;;  %v4965_v50 = vld [vmem:[#allocation7 + $0x34] ss:$8 sps:$4 sm:$0xff]   ;;  %v5020_v25 = vld [vmem:[#allocation7 + $0xf0] ss:$8 sps:$4 sm:$0xff]  }
0x169e   :  { %1408 = vmatprep.subr.bf16.mxu0 %v4900_v51  ;;  %4733 = vmatprep.subr.bf16.mxu1 %v5542_v0  ;;  %v4963_v51 = vld [vmem:[#allocation7 + $0x30] ss:$8 sps:$4 sm:$0xff]  }
0x169f   :  { %v5023_v26 = vld [vmem:[#allocation7 + $0x2f0] ss:$8 sps:$4 sm:$0xff]  }
0x16a1   :  { %1409 = vmatpush1.bf16.msra.mxu0 %v4898_v53  ;;  %4734 = vmatpush3.bf16.msra.mxu1 %v4901_v3  ;;  %v4968_v53 = vld [vmem:[#allocation7 + $0x44] ss:$8 sps:$4 sm:$0xff]   ;;  %v4966_v3 = vld [vmem:[#allocation7 + $0x40] ss:$8 sps:$4 sm:$0xff]  }
0x16a2   :  { %1410 = vmatprep.subr.bf16.mxu0 %v4904_v54  ;;  %4735 = vmatprep.subr.bf16.mxu1 %v5542_v0  ;;  %v4971_v54 = vld [vmem:[#allocation7 + $0x54] ss:$8 sps:$4 sm:$0xff]  }
0x16a5   :  { %1411 = vmatpush1.bf16.msra.mxu0 %v4902_v5  ;;  %4736 = vmatpush3.bf16.msra.mxu1 %v4905_v55  ;;  %v4969_v5 = vld [vmem:[#allocation7 + $0x50] ss:$8 sps:$4 sm:$0xff]   ;;  %v4974_v55 = vld [vmem:[#allocation7 + $0x64] ss:$8 sps:$4 sm:$0xff]  }
0x16a6   :  { %1581 = vmatprep.subr.bf16.mxu0 %v4908_v56  ;;  %4741 = vmatprep.subr.bf16.mxu1 %v5542_v0  ;;  %v4972_v56 = vld [vmem:[#allocation7 + $0x60] ss:$8 sps:$4 sm:$0xff]  }
0x16a8   :  { %4303 = vmatmul.mubr.msk.bf16.vlgmr.msra.gmra.mrb[12].mxu0 %vm104_vm1, %v1319_v17  ;;  %4738 = vmatmul.mubr.msk.bf16.vlgmr.msra.gmra.mrb[24].mxu1 %vm104_vm1, %v1319_v17  ;;  %v4986_v17 = vld [vmem:[#allocation7 + $0x94] ss:$8 sps:$4 sm:$0xff]  }
0x16a9   :  { %1582 = vmatpush1.bf16.msra.mxu0 %v4906_v59  ;;  %4742 = vmatpush3.bf16.msra.mxu1 %v4909_v60  ;;  %v4980_v59 = vld [vmem:[#allocation7 + $0x84] ss:$8 sps:$4 sm:$0xff]   ;;  %v4978_v60 = vld [vmem:[#allocation7 + $0x80] ss:$8 sps:$4 sm:$0xff]  }
0x16aa   :  { %1583 = vmatprep.subr.bf16.mxu0 %v4912_v23  ;;  %4743 = vmatprep.subr.bf16.mxu1 %v5542_v0  ;;  %v4984_v23 = vld [vmem:[#allocation7 + $0x90] ss:$8 sps:$4 sm:$0xff]  }
0x16ab   :  { %1613 = vmatprep.mubr.bf16.mxu0 %v5544_v10  ;;  %4749 = vmatprep.mubr.msk.bf16.mxu1 %vm5543_vm0, %v5542_v0 }
0x16ad   :  { %1584 = vmatpush1.bf16.msra.mxu0 %v4910_v61  ;;  %4744 = vmatpush3.bf16.msra.mxu1 %v4913_v62  ;;  %v4989_v61 = vld [vmem:[#allocation7 + $0x294] ss:$8 sps:$4 sm:$0xff]   ;;  %v4987_v62 = vld [vmem:[#allocation7 + $0x290] ss:$8 sps:$4 sm:$0xff]  }
0x16ae   :  { %1585 = vmatprep.subr.bf16.mxu0 %v4916_v63  ;;  %4745 = vmatprep.subr.bf16.mxu1 %v5542_v0  ;;  %v4992_v63 = vld [vmem:[#allocation7 + $0xa4] ss:$8 sps:$4 sm:$0xff]  }
0x16b1   :  { %1586 = vmatpush1.bf16.msra.mxu0 %v4914_v1  ;;  %4746 = vmatpush3.bf16.msra.mxu1 %v4917_v2  ;;  %v4990_v1 = vld [vmem:[#allocation7 + $0xa0] ss:$8 sps:$4 sm:$0xff]   ;;  %v4995_v2 = vld [vmem:[#allocation7 + $0x2a4] ss:$8 sps:$4 sm:$0xff]  }
0x16b2   :  { %1587 = vmatprep.subr.bf16.mxu0 %v4920_v4  ;;  %4747 = vmatprep.subr.bf16.mxu1 %v5542_v0  ;;  %v4993_v4 = vld [vmem:[#allocation7 + $0x2a0] ss:$8 sps:$4 sm:$0xff]  }
0x16b5   :  { %1588 = vmatpush1.bf16.msra.mxu0 %v4918_v6  ;;  %4748 = vmatpush3.bf16.msra.mxu1 %v4921_v7  ;;  %v4998_v6 = vld [vmem:[#allocation7 + $0xb4] ss:$8 sps:$4 sm:$0xff]   ;;  %v4996_v7 = vld [vmem:[#allocation7 + $0xb0] ss:$8 sps:$4 sm:$0xff]  }
0x16b6   :  { %1758 = vmatprep.subr.bf16.mxu0 %v4924_v8  ;;  %4753 = vmatprep.subr.bf16.mxu1 %v5542_v0  ;;  %v5001_v8 = vld [vmem:[#allocation7 + $0x2b4] ss:$8 sps:$4 sm:$0xff]  }
0x16b8   :  { %4317 = vmatmul.mubr.msk.bf16.vlgmr.msra.gmra.mrb[12].mxu0 %vm104_vm1, %v1496_v14  ;;  %4750 = vmatmul.mubr.msk.bf16.vlgmr.msra.gmra.mrb[24].mxu1 %vm104_vm1, %v1496_v14  ;;  %v5005_v14 = vld [vmem:[#allocation7 + $0x2c0] ss:$8 sps:$4 sm:$0xff]  }
0x16b9   :  { %1759 = vmatpush1.bf16.msra.mxu0 %v4922_v12  ;;  %4754 = vmatpush3.bf16.msra.mxu1 %v4925_v13  ;;  %v5002_v12 = vld [vmem:[#allocation7 + $0xc0] ss:$8 sps:$4 sm:$0xff]   ;;  %v5007_v13 = vld [vmem:[#allocation7 + $0x2c4] ss:$8 sps:$4 sm:$0xff]  }
0x16ba   :  { %1760 = vmatprep.subr.bf16.mxu0 %v4928_v15  ;;  %4755 = vmatprep.subr.bf16.mxu1 %v5542_v0  ;;  %v5010_v15 = vld [vmem:[#allocation7 + $0xd4] ss:$8 sps:$4 sm:$0xff]  }
0x16bb   :  { %1790 = vmatprep.mubr.bf16.mxu0 %v5544_v10  ;;  %4761 = vmatprep.mubr.msk.bf16.mxu1 %vm5543_vm0, %v5542_v0 }
0x16bd   :  { %1761 = vmatpush1.bf16.msra.mxu0 %v4926_v16  ;;  %4756 = vmatpush3.bf16.msra.mxu1 %v4929_v18  ;;  %v5008_v16 = vld [vmem:[#allocation7 + $0xd0] ss:$8 sps:$4 sm:$0xff]   ;;  %v5013_v18 = vld [vmem:[#allocation7 + $0x2d4] ss:$8 sps:$4 sm:$0xff]  }
0x16be   :  { %1762 = vmatprep.subr.bf16.mxu0 %v4932_v19  ;;  %4757 = vmatprep.subr.bf16.mxu1 %v5542_v0  ;;  %v5011_v19 = vld [vmem:[#allocation7 + $0x2d0] ss:$8 sps:$4 sm:$0xff]  }
0x16c1   :  { %1763 = vmatpush1.bf16.msra.mxu0 %v4930_v48  ;;  %4758 = vmatpush3.bf16.msra.mxu1 %v4933_v20  ;;  %v5014_v48 = vld [vmem:[#allocation7 + $0xe0] ss:$8 sps:$4 sm:$0xff]   ;;  %v5016_v20 = vld [vmem:[#allocation7 + $0xe4] ss:$8 sps:$4 sm:$0xff]  }
0x16c2   :  { %1764 = vmatprep.subr.bf16.mxu0 %v4936_v33  ;;  %4759 = vmatprep.subr.bf16.mxu1 %v5542_v0  ;;  %v5017_v33 = vld [vmem:[#allocation7 + $0x2e0] ss:$8 sps:$4 sm:$0xff]  }
0x16c5   :  { %1765 = vmatpush1.bf16.msra.mxu0 %v4934_v21  ;;  %4760 = vmatpush3.bf16.msra.mxu1 %v4937_v22  ;;  %v5019_v21 = vld [vmem:[#allocation7 + $0x2e4] ss:$8 sps:$4 sm:$0xff]   ;;  %v5022_v22 = vld [vmem:[#allocation7 + $0xf4] ss:$8 sps:$4 sm:$0xff]  }
0x16c6   :  { %1935 = vmatprep.subr.bf16.mxu0 %v4940_v24  ;;  %4765 = vmatprep.subr.bf16.mxu1 %v5542_v0  ;;  %v5025_v24 = vld [vmem:[#allocation7 + $0x2f4] ss:$8 sps:$4 sm:$0xff]  }
0x16c8   :  { %4331 = vmatmul.mubr.msk.bf16.vlgmr.msra.gmra.mrb[12].mxu0 %vm104_vm1, %v1673_v29  ;;  %4762 = vmatmul.mubr.msk.bf16.vlgmr.msra.gmra.mrb[24].mxu1 %vm104_vm1, %v1673_v29  ;;  %v1123_v29 = vlaneseq }
0x16c9   :  { %1936 = vmatpush1.bf16.msra.mxu0 %v4938_v27  ;;  %4766 = vmatpush3.bf16.msra.mxu1 %v4941_v28  ;;  %v5028_v27 = vld [vmem:[#allocation7 + $0x104] ss:$8 sps:$4 sm:$0xff]  }
0x16ca   :  { %1937 = vmatprep.subr.bf16.mxu0 %v4944_v30  ;;  %4767 = vmatprep.subr.bf16.mxu1 %v5542_v0  ;;  %v5031_v28 = vld [vmem:[#allocation7 + $0x404] ss:$8 sps:$4 sm:$0xff]   ;;  %v5982_v30 = vshrl.u32 %v1123_v29, 7  ;;  %v5049_v29 = vld [vmem:[#allocation7 + $0x434] ss:$8 sps:$4 sm:$0xff]  }
0x16cb   :  { %1967 = vmatprep.mubr.bf16.mxu0 %v5544_v10  ;;  %4773 = vmatprep.mubr.msk.bf16.mxu1 %vm5543_vm0, %v5542_v0 }
0x16cd   :  { %1938 = vmatpush1.bf16.msra.mxu0 %v4942_v31  ;;  %4768 = vmatpush3.bf16.msra.mxu1 %v4945_v32  ;;  %v1125_v31 = vsub.s32 0, %v5982_v30  ;;  %v1133_v32 = vsub.s32 2, %v5982_v30 }
0x16ce   :  { %1939 = vmatprep.subr.bf16.mxu0 %v4948_v34  ;;  %4769 = vmatprep.subr.bf16.mxu1 %v5542_v0  ;;  %v1121_v34 = vld [vmem:[%s6056_s6] sm:$0x7] }
0x16d1   :  { %1940 = vmatpush1.bf16.msra.mxu0 %v4946_v52  ;;  %4770 = vmatpush3.bf16.msra.mxu1 %v4949_v35  ;;  %v1129_v52 = vsub.s32 1, %v5982_v30  ;;  %v1126_v35 = vrot.slane %v1121_v34, %v1125_v31 }
0x16d2   :  { %1941 = vmatprep.subr.bf16.mxu0 %v4952_v36  ;;  %4771 = vmatprep.subr.bf16.mxu1 %v5542_v0  ;;  %v4962_v0 = vld [vmem:[#allocation7 + $0x24] ss:$8 sps:$4 sm:$0xff]   ;;  %v1134_v36 = vrot.slane %v1121_v34, %v1133_v32  ;;  %v5044_v32 = vld [vmem:[#allocation7 + $0x130] ss:$8 sps:$4 sm:$0xff]  }
0x16d5   :  { %1942 = vmatpush1.bf16.msra.mxu0 %v4950_v37  ;;  %4772 = vmatpush3.bf16.msra.mxu1 %v4953_v38  ;;  %v1130_v37 = vrot.slane %v1121_v34, %v1129_v52  ;;  %v5047_v34 = vld [vmem:[#allocation7 + $0x430] ss:$8 sps:$4 sm:$0xff]  }
0x16d6   :  { %2384 = vmatprep.subr.bf16.mxu1 %v4956_v39  ;;  %2857 = vmatprep.subr.bf16.mxu0 %v4983_v40 }
0x16d8   :  { %4345 = vmatmul.mubr.msk.bf16.vlgmr.msra.gmra.mrb[12].mxu0 %vm104_vm1, %v1850_v45  ;;  %4774 = vmatmul.mubr.msk.bf16.vlgmr.msra.gmra.mrb[24].mxu1 %vm104_vm1, %v1850_v45 }
0x16d9   :  { %2385 = vmatpush1.bf16.msra.mxu1 %v4954_v43  ;;  %2858 = vmatpush1.bf16.msra.mxu0 %v4981_v44 }
0x16da   :  { %2386 = vmatprep.subr.bf16.mxu1 %v4959_v46  ;;  %2889 = vmatprep.mubr.bf16.mxu0 %v5544_v10 }
0x16db   :  { %2859 = vmatprep.subr.bf16.mxu0 %v4989_v61 }
0x16dd   :  { %2387 = vmatpush1.bf16.msra.mxu1 %v4957_v47  ;;  %2860 = vmatpush1.bf16.msra.mxu0 %v4987_v62 }
0x16de   :  { %2388 = vmatprep.subr.bf16.mxu1 %v4962_v0  ;;  %2861 = vmatprep.subr.bf16.mxu0 %v4995_v2 }
0x16e1   :  { %2389 = vmatpush1.bf16.msra.mxu1 %v4960_v49  ;;  %2862 = vmatpush1.bf16.msra.mxu0 %v4993_v4 }
0x16e2   :  { %2390 = vmatprep.subr.bf16.mxu1 %v4965_v50  ;;  %2863 = vmatprep.subr.bf16.mxu0 %v5001_v8 }
0x16e5   :  { %2391 = vmatpush1.bf16.msra.mxu1 %v4963_v51  ;;  %2864 = vmatpush1.bf16.msra.mxu0 %v4999_v9 }
0x16e6   :  { %2392 = vmatprep.subr.bf16.mxu1 %v4968_v53  ;;  %2865 = vmatprep.subr.bf16.mxu0 %v5007_v13  ;;  %v5026_v13 = vld [vmem:[#allocation7 + $0x100] ss:$8 sps:$4 sm:$0xff]  }
0x16e9   :  { %2393 = vmatpush1.bf16.msra.mxu1 %v4966_v3  ;;  %2866 = vmatpush1.bf16.msra.mxu0 %v5005_v14 }
0x16ea   :  { %2394 = vmatprep.subr.bf16.mxu1 %v4971_v54  ;;  %2867 = vmatprep.subr.bf16.mxu0 %v5013_v18 }
0x16ed   :  { %2395 = vmatpush1.bf16.msra.mxu1 %v4969_v5  ;;  %2868 = vmatpush1.bf16.msra.mxu0 %v5011_v19 }
0x16ee   :  { %2396 = vmatprep.subr.bf16.mxu1 %v4974_v55  ;;  %2869 = vmatprep.subr.bf16.mxu0 %v5019_v21  ;;  %v5032_v21 = vld [vmem:[#allocation7 + $0x110] ss:$8 sps:$4 sm:$0xff]  }
0x16f1   :  { %2397 = vmatpush1.bf16.msra.mxu1 %v4972_v56  ;;  %2870 = vmatpush1.bf16.msra.mxu0 %v5017_v33  ;;  %v5037_v33 = vld [vmem:[#allocation7 + $0x414] ss:$8 sps:$4 sm:$0xff]  }
0x16f2   :  { %2398 = vmatprep.subr.bf16.mxu1 %v4977_v57  ;;  %2871 = vmatprep.subr.bf16.mxu0 %v5025_v24  ;;  %v5040_v24 = vld [vmem:[#allocation7 + $0x124] ss:$8 sps:$4 sm:$0xff]  }
0x16f5   :  { %2399 = vmatpush1.bf16.msra.mxu1 %v4975_v58  ;;  %2872 = vmatpush1.bf16.msra.mxu0 %v5023_v26  ;;  %v5038_v26 = vld [vmem:[#allocation7 + $0x120] ss:$8 sps:$4 sm:$0xff]  }
0x16f6   :  { %2400 = vmatprep.subr.bf16.mxu1 %v4980_v59  ;;  %3287 = vmatprep.subr.bf16.mxu0 %v5031_v28  ;;  %v5046_v28 = vld [vmem:[#allocation7 + $0x134] ss:$8 sps:$4 sm:$0xff]  }
0x16f9   :  { %2401 = vmatpush1.bf16.msra.mxu1 %v4978_v60 }
0x16fa   :  { %2402 = vmatprep.subr.bf16.mxu1 %v4986_v17 }
0x16fd   :  { %2403 = vmatpush1.bf16.msra.mxu1 %v4984_v23 }
0x16fe   :  { %2404 = vmatprep.subr.bf16.mxu1 %v4992_v63 }
0x1701   :  { %2405 = vmatpush1.bf16.msra.mxu1 %v4990_v1 }
0x1702   :  { %2406 = vmatprep.subr.bf16.mxu1 %v4998_v6 }
0x1705   :  { %2407 = vmatpush1.bf16.msra.mxu1 %v4996_v7 }
0x1706   :  { %2408 = vmatprep.subr.bf16.mxu1 %v5004_v11 }
0x1709   :  { %2409 = vmatpush1.bf16.msra.mxu1 %v5002_v12 }
0x170a   :  { %2410 = vmatprep.subr.bf16.mxu1 %v5010_v15 }
0x170d   :  { %2411 = vmatpush1.bf16.msra.mxu1 %v5008_v16  ;;  %v5029_v16 = vld [vmem:[#allocation7 + $0x400] ss:$8 sps:$4 sm:$0xff]  }
0x170e   :  { %2412 = vmatprep.subr.bf16.mxu1 %v5016_v20 }
0x1711   :  { %2413 = vmatpush1.bf16.msra.mxu1 %v5014_v48  ;;  %v5034_v48 = vld [vmem:[#allocation7 + $0x114] ss:$8 sps:$4 sm:$0xff]  }
0x1712   :  { %2414 = vmatprep.subr.bf16.mxu1 %v5022_v22  ;;  %v5035_v22 = vld [vmem:[#allocation7 + $0x410] ss:$8 sps:$4 sm:$0xff]  }
0x1715   :  { %2415 = vmatpush1.bf16.msra.mxu1 %v5020_v25  ;;  %v5043_v25 = vld [vmem:[#allocation7 + $0x424] ss:$8 sps:$4 sm:$0xff]  }
0x1716   :  { %2427 = vmatprep.subr.bf16.mxu1 %v5028_v27  ;;  %v5041_v27 = vld [vmem:[#allocation7 + $0x420] ss:$8 sps:$4 sm:$0xff]  }
0x17ab   :  { %v1969_v38 = vpop.f32.mrb[12].mxu0  ;;  %v2012_v39 = vpop.f32.mrb[24].mxu1 }
0x17ac   :  { %v4777_v40 = vadd.f32 %v1969_v38, %v1126_v35  ;;  %v4781_v41 = vadd.f32 %v2012_v39, %v1134_v36  ;;  %v1971_v42 = vpop.f32.mrb[13].mxu0  ;;  %v4775_v43 = vpop.f32.mrb[25].mxu1  ;;  %v5053_v38 = vld [vmem:[#allocation7 + $0x440] ss:$8 sps:$4 sm:$0xff]   ;;  %v5058_v39 = vld [vmem:[#allocation7 + $0x154] ss:$8 sps:$4 sm:$0xff]  }
0x17ad   :  { %v4778_v44 = vadd.f32 %v1971_v42, %v1130_v37  ;;  %v1973_v45 = vpop.f32.mrb[14].mxu0  ;;  %v2015_v46 = vpop.f32.mrb[26].mxu1  ;;  %v5059_v42 = vld [vmem:[#allocation7 + $0x450] ss:$8 sps:$4 sm:$0xff]   ;;  %v5064_v43 = vld [vmem:[#allocation7 + $0x164] ss:$8 sps:$4 sm:$0xff]  }
0x17ae   :  { %5442 = vtanh.f32 %v4777_v40  ;;  %v4779_v47 = vadd.f32 %v1973_v45, %v1126_v35  ;;  %v4782_v0 = vadd.f32 %v2015_v46, %v1134_v36  ;;  %v1975_v49 = vpop.f32.mrb[15].mxu0  ;;  %v4776_v50 = vpop.f32.mrb[27].mxu1  ;;  %v5052_v35 = vld [vmem:[#allocation7 + $0x144] ss:$8 sps:$4 sm:$0xff]   ;;  %v5061_v40 = vld [vmem:[#allocation7 + $0x454] ss:$8 sps:$4 sm:$0xff]  }
0x17af   :  { %5444 = vtanh.f32 %v4781_v41  ;;  %v4780_v51 = vadd.f32 %v1975_v49, %v1130_v37  ;;  %v5055_v36 = vld [vmem:[#allocation7 + $0x444] ss:$8 sps:$4 sm:$0xff]   ;;  %v5050_v37 = vld [vmem:[#allocation7 + $0x140] ss:$8 sps:$4 sm:$0xff]   ;;  %v5056_v41 = vld [vmem:[#allocation7 + $0x150] ss:$8 sps:$4 sm:$0xff]  }
0x17b0   :  { %5446 = vtanh.f32 %v4778_v44  ;;  %v5067_v44 = vld [vmem:[#allocation7 + $0x464] ss:$8 sps:$4 sm:$0xff]   ;;  %v5062_v45 = vld [vmem:[#allocation7 + $0x160] ss:$8 sps:$4 sm:$0xff]  }
0x17b1   :  { %5448 = vtanh.f32 %v4779_v47  ;;  %v5065_v46 = vld [vmem:[#allocation7 + $0x460] ss:$8 sps:$4 sm:$0xff]   ;;  %v5070_v47 = vld [vmem:[#allocation7 + $0x174] ss:$8 sps:$4 sm:$0xff]  }
0x17b2   :  { %5450 = vtanh.f32 %v4782_v0  ;;  %v5073_v0 = vld [vmem:[#allocation7 + $0x474] ss:$8 sps:$4 sm:$0xff]  }
0x17b3   :  { %5452 = vtanh.f32 %v4780_v51 }
0x17b8   :  { %v5443_v53 = vpop.eup %5442 }
0x17b9   :  { %v5445_v3 = vpop.eup %5444  ;;  %v2049_v54 = vrot.slane %v5443_v53, 6 }
0x17ba   :  { %v5447_v5 = vpop.eup %5446  ;;  %v2051_v55 = vrot.slane %v5445_v3, 6 }
0x17bb   :  { %v5449_v56 = vpop.eup %5448  ;;  %2061 = vst [vmem:[#allocation3] sm:$0xfc] %v2049_v54  ;;  %2064 = vst [vmem:[#allocation3 + $0x18] sm:$0x3] %v2049_v54  ;;  %v2050_v57 = vrot.slane %v5447_v5, 6 }
0x17bc   :  { %v5451_v58 = vpop.eup %5450  ;;  %2063 = vst [vmem:[#allocation3 + $0x10] sm:$0xfc] %v2051_v55  ;;  %2066 = vst [vmem:[#allocation3 + $0x28] sm:$0x3] %v2051_v55  ;;  %v2052_v59 = vrot.slane %v5449_v56, 6 }
0x17bd   :  { %v5453_v60 = vpop.eup %5452  ;;  %2062 = vst [vmem:[#allocation3 + $0x8] sm:$0xfc] %v2050_v57  ;;  %2065 = vst [vmem:[#allocation3 + $0x20] sm:$0x3] %v2050_v57  ;;  %v2054_v17 = vrot.slane %v5451_v58, 6 }
0x17be   :  { %2067 = vst [vmem:[#allocation3 + $0x30] sm:$0xfc] %v2052_v59  ;;  %2070 = vst [vmem:[#allocation3 + $0x48] sm:$0x3] %v2052_v59  ;;  %v2053_v23 = vrot.slane %v5453_v60, 6 }
0x17bf   :  { %2069 = vst [vmem:[#allocation3 + $0x40] sm:$0xfc] %v2054_v17  ;;  %2072 = vst [vmem:[#allocation3 + $0x58] sm:$0x3] %v2054_v17  ;;  %v5068_v54 = vld [vmem:[#allocation7 + $0x170] ss:$8 sps:$4 sm:$0xff]  }
0x17c0   :  { %2068 = vst [vmem:[#allocation3 + $0x38] sm:$0xfc] %v2053_v23  ;;  %2071 = vst [vmem:[#allocation3 + $0x50] sm:$0x3] %v2053_v23  ;;  %v5071_v57 = vld [vmem:[#allocation7 + $0x470] ss:$8 sps:$4 sm:$0xff]  }
0x17c2   :  { %v2087_v14 = vld [vmem:[#allocation3] sm:$0xff] }
0x17c3   :  { %v2476_v61 = vld [vmem:[#allocation3 + $0x10] sm:$0xfe]  ;;  %v2479_v62 = vld [vmem:[#allocation3 + $0x28] sm:$0x1] }
0x17c4   :  { %v2504_v63 = vrot.slane %v2476_v61, 1  ;;  %v2505_v1 = vrot.slane %v2479_v62, 1  ;;  %v2088_v7 = vld [vmem:[#allocation3 + $0x8] sm:$0xff]  ;;  %v2478_v5 = vld [vmem:[#allocation3 + $0x20] sm:$0x1] }
0x17c5   :  { %v2090_v2 = vld [vmem:[#allocation3 + $0x30] sm:$0xff]  ;;  %v2475_v51 = vld [vmem:[#allocation3 + $0x8] sm:$0xfe] }
0x17c6   :  { %v2482_v4 = vld [vmem:[#allocation3 + $0x40] sm:$0xfe]  ;;  %v2485_v6 = vld [vmem:[#allocation3 + $0x58] sm:$0x1]  ;;  %v2093_v15 = vpack.c.bf16 %v2090_v2, %v2087_v14  ;;  %v2506_v18 = vsel %vm1091_vm11, %v2504_v63, %v2505_v1  ;;  %v2906_v60 = vld [vmem:[#allocation3 + $0x10] sm:$0xfc] }
0x17c7   :  { %v2091_v8 = vld [vmem:[#allocation3 + $0x38] sm:$0xff]  ;;  %v2513_v9 = vrot.slane %v2482_v4, 1  ;;  %v2514_v11 = vrot.slane %v2485_v6, 1  ;;  %v2484_v50 = vld [vmem:[#allocation3 + $0x50] sm:$0x1]  ;;  %v2501_v2 = vrot.slane %v2475_v51, 1 }
0x17c8   :  { %v2094_v12 = vpack.c.bf16 %v2091_v8, %v2088_v7  ;;  %v2481_v49 = vld [vmem:[#allocation3 + $0x38] sm:$0xfe]  ;;  %v2912_v53 = vld [vmem:[#allocation3 + $0x40] sm:$0xfc]  ;;  %v3344_v56 = vld [vmem:[#allocation3 + $0x50] sm:$0x7] }
0x17c9   :  { %v2515_v19 = vsel %vm1091_vm11, %v2513_v9, %v2514_v11  ;;  %v2915_v3 = vld [vmem:[#allocation3 + $0x58] sm:$0x3]  ;;  %v3341_v55 = vld [vmem:[#allocation3 + $0x38] sm:$0xf8]  ;;  %v2510_v58 = vrot.slane %v2481_v49, 1  ;;  %v2511_v59 = vrot.slane %v2484_v50, 1 }
0x17ca   :  { %2416 = vmatprep.mubr.bf16.mxu1 %v2094_v12  ;;  %v2524_v20 = vpack.c.bf16 %v2515_v19, %v2506_v18  ;;  %v2909_v17 = vld [vmem:[#allocation3 + $0x28] sm:$0x3]  ;;  %v2943_v23 = vrot.slane %v2912_v53, 2  ;;  %v2944_v61 = vrot.slane %v2915_v3, 2  ;;  %v3335_v62 = vld [vmem:[#allocation3 + $0x8] sm:$0xf8] }
0x17cb   :  { %2417 = vmatmul.mubr.bf16.vlgmr.msra.gmra.mrb[28].mxu1 %v2093_v15  ;;  %v3338_v63 = vld [vmem:[#allocation3 + $0x20] sm:$0x7]  ;;  %v5076_v1 = vld [vmem:[#allocation7 + $0x184] ss:$8 sps:$4 sm:$0xff]   ;;  %v2502_v4 = vrot.slane %v2478_v5, 1  ;;  %v3370_v6 = vrot.slane %v3341_v55, 3 }
0x17cc   :  { %2428 = vmatpush1.bf16.msra.mxu1 %v5026_v13  ;;  %2890 = vmatmul.mubr.bf16.vlgmr.msra.gmra.mrb[16].mxu0 %v2524_v20  ;;  %v3371_v7 = vrot.slane %v3344_v56, 3  ;;  %v2092_v8 = vld [vmem:[#allocation3 + $0x40] sm:$0xff]  ;;  %v2934_v9 = vrot.slane %v2906_v60, 2  ;;  %v2935_v11 = vrot.slane %v2909_v17, 2  ;;  %v2512_v13 = vsel %vm1091_vm11, %v2510_v58, %v2511_v59  ;;  %v5104_v49 = vld [vmem:[#allocation7 + $0x1d0] ss:$8 sps:$4 sm:$0xff]  }
0x17cd   :  { %3288 = vmatpush1.bf16.msra.mxu0 %v5029_v16  ;;  %2429 = vmatprep.subr.bf16.mxu1 %v5034_v48  ;;  %v5079_v12 = vld [vmem:[#allocation7 + $0x484] ss:$8 sps:$4 sm:$0xff]   ;;  %v3361_v14 = vrot.slane %v3335_v62, 3  ;;  %v3362_v15 = vrot.slane %v3338_v63, 3  ;;  %v2089_v16 = vld [vmem:[#allocation3 + $0x10] sm:$0xff]  ;;  %v2945_v19 = vsel %vm1088_vm9, %v2943_v23, %v2944_v61  ;;  %v2503_v20 = vsel %vm1091_vm11, %v2501_v2, %v2502_v4 }
0x17ce   :  { %3289 = vmatprep.subr.bf16.mxu0 %v5037_v33  ;;  %2459 = vmatprep.mubr.bf16.mxu1 %v5544_v10  ;;  %v5074_v18 = vld [vmem:[#allocation7 + $0x180] ss:$8 sps:$4 sm:$0xff]   ;;  %v2095_v48 = vpack.c.bf16 %v2092_v8, %v2089_v16  ;;  %v3372_v33 = vsel %vm1085_vm8, %v3370_v6, %v3371_v7  ;;  %v5112_v50 = vld [vmem:[#allocation7 + $0x1e4] ss:$8 sps:$4 sm:$0xff]   ;;  %v5107_v51 = vld [vmem:[#allocation7 + $0x4d0] ss:$8 sps:$4 sm:$0xff]  }
0x17cf   :  { %3319 = vmatprep.mubr.bf16.mxu0 %v5544_v10  ;;  %v5115_v53 = vld [vmem:[#allocation7 + $0x4e4] ss:$8 sps:$4 sm:$0xff]   ;;  %v5110_v3 = vld [vmem:[#allocation7 + $0x1e0] ss:$8 sps:$4 sm:$0xff]   ;;  %v5121_v55 = vld [vmem:[#allocation7 + $0x4f4] ss:$8 sps:$4 sm:$0xff]  }
0x17d0   :  { %2430 = vmatpush1.bf16.msra.mxu1 %v5032_v21  ;;  %v5082_v21 = vld [vmem:[#allocation7 + $0x194] ss:$8 sps:$4 sm:$0xff]   ;;  %v5113_v5 = vld [vmem:[#allocation7 + $0x4e0] ss:$8 sps:$4 sm:$0xff]   ;;  %v5116_v56 = vld [vmem:[#allocation7 + $0x1f0] ss:$8 sps:$4 sm:$0xff]  }
0x17d1   :  { %3290 = vmatpush1.bf16.msra.mxu0 %v5035_v22  ;;  %2431 = vmatprep.subr.bf16.mxu1 %v5040_v24  ;;  %v2523_v22 = vpack.c.bf16 %v2512_v13, %v2503_v20  ;;  %v2936_v24 = vsel %vm1088_vm9, %v2934_v9, %v2935_v11  ;;  %v5119_v58 = vld [vmem:[#allocation7 + $0x4f0] ss:$8 sps:$4 sm:$0xff]   ;;  %v5127_v59 = vld [vmem:[#allocation7 + $0x504] ss:$8 sps:$4 sm:$0xff]   ;;  %v5122_v60 = vld [vmem:[#allocation7 + $0x200] ss:$8 sps:$4 sm:$0xff]  }
0x17d2   :  { %3291 = vmatprep.subr.bf16.mxu0 %v5043_v25  ;;  %v5077_v25 = vld [vmem:[#allocation7 + $0x480] ss:$8 sps:$4 sm:$0xff]   ;;  %v5130_v17 = vld [vmem:[#allocation7 + $0x214] ss:$8 sps:$4 sm:$0xff]   ;;  %v5128_v62 = vld [vmem:[#allocation7 + $0x210] ss:$8 sps:$4 sm:$0xff]  }
0x17d3   :  { %v5125_v23 = vld [vmem:[#allocation7 + $0x500] ss:$8 sps:$4 sm:$0xff]   ;;  %v5133_v61 = vld [vmem:[#allocation7 + $0x514] ss:$8 sps:$4 sm:$0xff]   ;;  %v5136_v63 = vld [vmem:[#allocation7 + $0x224] ss:$8 sps:$4 sm:$0xff]  }
0x17d4   :  { %2432 = vmatpush1.bf16.msra.mxu1 %v5038_v26  ;;  %v2954_v26 = vpack.c.bf16 %v2945_v19, %v2936_v24  ;;  %v5139_v2 = vld [vmem:[#allocation7 + $0x524] ss:$8 sps:$4 sm:$0xff]   ;;  %v5134_v4 = vld [vmem:[#allocation7 + $0x220] ss:$8 sps:$4 sm:$0xff]   ;;  %v5142_v6 = vld [vmem:[#allocation7 + $0x234] ss:$8 sps:$4 sm:$0xff]  }
0x17d5   :  { %3292 = vmatpush1.bf16.msra.mxu0 %v5041_v27  ;;  %2433 = vmatprep.subr.bf16.mxu1 %v5046_v28  ;;  %v3363_v27 = vsel %vm1085_vm8, %v3361_v14, %v3362_v15  ;;  %v5085_v28 = vld [vmem:[#allocation7 + $0x494] ss:$8 sps:$4 sm:$0xff]   ;;  %v5137_v7 = vld [vmem:[#allocation7 + $0x520] ss:$8 sps:$4 sm:$0xff]   ;;  %v5140_v9 = vld [vmem:[#allocation7 + $0x230] ss:$8 sps:$4 sm:$0xff]  }
0x17d6   :  { %3293 = vmatprep.subr.bf16.mxu0 %v5049_v29  ;;  %v3383_v29 = vpack.c.bf16 %v3372_v33, %v3363_v27  ;;  %v5145_v8 = vld [vmem:[#allocation7 + $0x534] ss:$8 sps:$4 sm:$0xff]   ;;  %v5148_v11 = vld [vmem:[#allocation7 + $0x244] ss:$8 sps:$4 sm:$0xff]   ;;  %v5146_v14 = vld [vmem:[#allocation7 + $0x240] ss:$8 sps:$4 sm:$0xff]  }
0x17d7   :  { %v5151_v13 = vld [vmem:[#allocation7 + $0x544] ss:$8 sps:$4 sm:$0xff]   ;;  %v5154_v15 = vld [vmem:[#allocation7 + $0x254] ss:$8 sps:$4 sm:$0xff]   ;;  %v5149_v16 = vld [vmem:[#allocation7 + $0x540] ss:$8 sps:$4 sm:$0xff]  }
0x17d8   :  { %2434 = vmatpush1.bf16.msra.mxu1 %v5044_v32  ;;  %v5080_v32 = vld [vmem:[#allocation7 + $0x190] ss:$8 sps:$4 sm:$0xff]   ;;  %v5158_v33 = vld [vmem:[#allocation7 + $0x260] ss:$8 sps:$4 sm:$0xff]  }
0x17d9   :  { %3294 = vmatpush1.bf16.msra.mxu0 %v5047_v34  ;;  %2435 = vmatprep.subr.bf16.mxu1 %v5052_v35  ;;  %v5088_v34 = vld [vmem:[#allocation7 + $0x1a4] ss:$8 sps:$4 sm:$0xff]   ;;  %v5083_v35 = vld [vmem:[#allocation7 + $0x490] ss:$8 sps:$4 sm:$0xff]  }
0x17da   :  { %3295 = vmatprep.subr.bf16.mxu0 %v5055_v36  ;;  %v5091_v36 = vld [vmem:[#allocation7 + $0x4a4] ss:$8 sps:$4 sm:$0xff]   ;;  %v5152_v19 = vld [vmem:[#allocation7 + $0x250] ss:$8 sps:$4 sm:$0xff]  }
0x17db   :  { %v5155_v20 = vld [vmem:[#allocation7 + $0x550] ss:$8 sps:$4 sm:$0xff]   ;;  %v2474_v27 = vld [vmem:[#allocation3] sm:$0xfe] }
0x17dc   :  { %2436 = vmatpush1.bf16.msra.mxu1 %v5050_v37  ;;  %v5086_v37 = vld [vmem:[#allocation7 + $0x1a0] ss:$8 sps:$4 sm:$0xff]   ;;  %v2480_v24 = vld [vmem:[#allocation3 + $0x30] sm:$0xfe] }
0x17dd   :  { %3296 = vmatpush1.bf16.msra.mxu0 %v5053_v38  ;;  %2437 = vmatprep.subr.bf16.mxu1 %v5058_v39  ;;  %v5094_v38 = vld [vmem:[#allocation7 + $0x1b4] ss:$8 sps:$4 sm:$0xff]   ;;  %v5089_v39 = vld [vmem:[#allocation7 + $0x4a0] ss:$8 sps:$4 sm:$0xff]  }
0x17de   :  { %3297 = vmatprep.subr.bf16.mxu0 %v5061_v40  ;;  %v5097_v40 = vld [vmem:[#allocation7 + $0x4b4] ss:$8 sps:$4 sm:$0xff]  }
0x17e0   :  { %2438 = vmatpush1.bf16.msra.mxu1 %v5056_v41  ;;  %v5092_v41 = vld [vmem:[#allocation7 + $0x1b0] ss:$8 sps:$4 sm:$0xff]  }
0x17e1   :  { %3298 = vmatpush1.bf16.msra.mxu0 %v5059_v42  ;;  %2439 = vmatprep.subr.bf16.mxu1 %v5064_v43  ;;  %v5100_v42 = vld [vmem:[#allocation7 + $0x1c4] ss:$8 sps:$4 sm:$0xff]   ;;  %v5095_v43 = vld [vmem:[#allocation7 + $0x4b0] ss:$8 sps:$4 sm:$0xff]  }
0x17e2   :  { %3299 = vmatprep.subr.bf16.mxu0 %v5067_v44  ;;  %v5103_v44 = vld [vmem:[#allocation7 + $0x4c4] ss:$8 sps:$4 sm:$0xff]  }
0x17e4   :  { %2440 = vmatpush1.bf16.msra.mxu1 %v5062_v45  ;;  %v5098_v45 = vld [vmem:[#allocation7 + $0x1c0] ss:$8 sps:$4 sm:$0xff]  }
0x17e5   :  { %3300 = vmatpush1.bf16.msra.mxu0 %v5065_v46  ;;  %2441 = vmatprep.subr.bf16.mxu1 %v5070_v47  ;;  %v5106_v46 = vld [vmem:[#allocation7 + $0x1d4] ss:$8 sps:$4 sm:$0xff]   ;;  %v5101_v47 = vld [vmem:[#allocation7 + $0x4c0] ss:$8 sps:$4 sm:$0xff]  }
0x17e6   :  { %3301 = vmatprep.subr.bf16.mxu0 %v5073_v0  ;;  %v5109_v0 = vld [vmem:[#allocation7 + $0x4d4] ss:$8 sps:$4 sm:$0xff]  }
0x17e8   :  { %2442 = vmatpush1.bf16.msra.mxu1 %v5068_v54  ;;  %v5118_v54 = vld [vmem:[#allocation7 + $0x1f4] ss:$8 sps:$4 sm:$0xff]  }
0x17e9   :  { %3302 = vmatpush1.bf16.msra.mxu0 %v5071_v57  ;;  %2814 = vmatprep.subr.bf16.mxu1 %v5076_v1  ;;  %v5124_v57 = vld [vmem:[#allocation7 + $0x204] ss:$8 sps:$4 sm:$0xff]   ;;  %v5131_v1 = vld [vmem:[#allocation7 + $0x510] ss:$8 sps:$4 sm:$0xff]  }
0x17ea   :  { %3674 = vmatprep.subr.bf16.mxu0 %v5079_v12  ;;  %v5143_v12 = vld [vmem:[#allocation7 + $0x530] ss:$8 sps:$4 sm:$0xff]  }
0x17eb   :  { %2460 = vmatmul.mubr.bf16.vlgmr.msra.gmra.mrb[28].mxu1 %v2095_v48  ;;  %v5160_v48 = vld [vmem:[#allocation7 + $0x264] ss:$8 sps:$4 sm:$0xff]  }
0x17ec   :  { %2815 = vmatpush1.bf16.msra.mxu1 %v5074_v18  ;;  %2846 = vmatprep.mubr.bf16.mxu1 %v2523_v22  ;;  %v5157_v18 = vld [vmem:[#allocation7 + $0x554] ss:$8 sps:$4 sm:$0xff]  }
0x17ed   :  { %3320 = vmatmul.mubr.bf16.vlgmr.msra.gmra.mrb[20].mxu0 %v2954_v26  ;;  %2816 = vmatprep.subr.bf16.mxu1 %v5082_v21  ;;  %v5163_v21 = vld [vmem:[#allocation7 + $0x564] ss:$8 sps:$4 sm:$0xff]   ;;  %v5166_v22 = vld [vmem:[#allocation7 + $0x274] ss:$8 sps:$4 sm:$0xff]   ;;  %v5161_v26 = vld [vmem:[#allocation7 + $0x560] ss:$8 sps:$4 sm:$0xff]  }
0x17ee   :  { %3675 = vmatpush1.bf16.msra.mxu0 %v5077_v25  ;;  %3706 = vmatprep.mubr.bf16.mxu0 %v3383_v29  ;;  %v2483_v25 = vld [vmem:[#allocation3 + $0x48] sm:$0x1]  ;;  %v2914_v29 = vld [vmem:[#allocation3 + $0x50] sm:$0x3] }
0x17ef   :  { %3676 = vmatprep.subr.bf16.mxu0 %v5085_v28  ;;  %v2911_v28 = vld [vmem:[#allocation3 + $0x38] sm:$0xfc] }
0x17f0   :  { %2817 = vmatpush1.bf16.msra.mxu1 %v5080_v32  ;;  %v5169_v32 = vld [vmem:[#allocation7 + $0x574] ss:$8 sps:$4 sm:$0xff]  }
0x17f1   :  { %2818 = vmatprep.subr.bf16.mxu1 %v5088_v34  ;;  %v2477_v34 = vld [vmem:[#allocation3 + $0x18] sm:$0x1] }
0x17f2   :  { %3677 = vmatpush1.bf16.msra.mxu0 %v5083_v35  ;;  %v3340_v35 = vld [vmem:[#allocation3 + $0x30] sm:$0xf8] }
0x17f3   :  { %3678 = vmatprep.subr.bf16.mxu0 %v5091_v36  ;;  %v3343_v36 = vld [vmem:[#allocation3 + $0x48] sm:$0x7] }
0x17f4   :  { %2819 = vmatpush1.bf16.msra.mxu1 %v5086_v37  ;;  %v2507_v37 = vrot.slane %v2480_v24, 1  ;;  %v5208_v24 = vld [vmem:[#allocation7 + $0x364] ss:$8 sps:$4 sm:$0xff]  }
0x17f5   :  { %2820 = vmatprep.subr.bf16.mxu1 %v5094_v38  ;;  %v2508_v38 = vrot.slane %v2483_v25, 1  ;;  %v5203_v25 = vld [vmem:[#allocation7 + $0x5d0] ss:$8 sps:$4 sm:$0xff]  }
0x17f6   :  { %3679 = vmatpush1.bf16.msra.mxu0 %v5089_v39  ;;  %v2905_v39 = vld [vmem:[#allocation3 + $0x8] sm:$0xfc] }
0x17f7   :  { %3680 = vmatprep.subr.bf16.mxu0 %v5097_v40  ;;  %v2908_v40 = vld [vmem:[#allocation3 + $0x20] sm:$0x3] }
0x17f8   :  { %2821 = vmatpush1.bf16.msra.mxu1 %v5092_v41  ;;  %v2940_v41 = vrot.slane %v2911_v28, 2  ;;  %v5209_v28 = vld [vmem:[#allocation7 + $0x5e0] ss:$8 sps:$4 sm:$0xff]  }
0x17f9   :  { %2822 = vmatprep.subr.bf16.mxu1 %v5100_v42  ;;  %v2941_v42 = vrot.slane %v2914_v29, 2  ;;  %v5214_v29 = vld [vmem:[#allocation7 + $0x374] ss:$8 sps:$4 sm:$0xff]  }
0x17fa   :  { %3681 = vmatpush1.bf16.msra.mxu0 %v5095_v43  ;;  %v3334_v43 = vld [vmem:[#allocation3] sm:$0xf8] }
0x17fb   :  { %3682 = vmatprep.subr.bf16.mxu0 %v5103_v44  ;;  %v3337_v44 = vld [vmem:[#allocation3 + $0x18] sm:$0x7] }
0x17fc   :  { %2823 = vmatpush1.bf16.msra.mxu1 %v5098_v45  ;;  %v5164_v45 = vld [vmem:[#allocation7 + $0x270] ss:$8 sps:$4 sm:$0xff]  }
0x17fd   :  { %2824 = vmatprep.subr.bf16.mxu1 %v5106_v46  ;;  %v2498_v46 = vrot.slane %v2474_v27, 1  ;;  %v5206_v27 = vld [vmem:[#allocation7 + $0x360] ss:$8 sps:$4 sm:$0xff]  }
0x17fe   :  { %3683 = vmatpush1.bf16.msra.mxu0 %v5101_v47  ;;  %v2499_v47 = vrot.slane %v2477_v34, 1  ;;  %v3345_v34 = vld [vmem:[#allocation3 + $0x58] sm:$0x7] }
0x17ff   :  { %3684 = vmatprep.subr.bf16.mxu0 %v5109_v0  ;;  %v3367_v0 = vrot.slane %v3340_v35, 3  ;;  %v5212_v35 = vld [vmem:[#allocation7 + $0x370] ss:$8 sps:$4 sm:$0xff]  }
0x1800   :  { %2825 = vmatpush1.bf16.msra.mxu1 %v5104_v49  ;;  %v3368_v49 = vrot.slane %v3343_v36, 3  ;;  %v3771_v36 = vld [vmem:[#allocation3 + $0x38] sm:$0xf0] }
0x1801   :  { %2826 = vmatprep.subr.bf16.mxu1 %v5112_v50  ;;  %v5172_v50 = vld [vmem:[#allocation7 + $0x304] ss:$8 sps:$4 sm:$0xff]  }
0x1802   :  { %3685 = vmatpush1.bf16.msra.mxu0 %v5107_v51  ;;  %v2931_v51 = vrot.slane %v2905_v39, 2  ;;  %v3336_v39 = vld [vmem:[#allocation3 + $0x10] sm:$0xf8] }
0x1803   :  { %3686 = vmatprep.subr.bf16.mxu0 %v5115_v53  ;;  %v2932_v53 = vrot.slane %v2908_v40, 2  ;;  %v3339_v40 = vld [vmem:[#allocation3 + $0x28] sm:$0x7] }
0x1804   :  { %2827 = vmatpush1.bf16.msra.mxu1 %v5110_v3  ;;  %v5167_v3 = vld [vmem:[#allocation7 + $0x570] ss:$8 sps:$4 sm:$0xff]  }
0x1805   :  { %2828 = vmatprep.subr.bf16.mxu1 %v5118_v54  ;;  %v2509_v54 = vsel %vm1091_vm11, %v2507_v37, %v2508_v38  ;;  %v3774_v37 = vld [vmem:[#allocation3 + $0x50] sm:$0xf]  ;;  %v5217_v38 = vld [vmem:[#allocation7 + $0x5f4] ss:$8 sps:$4 sm:$0xff]  }
0x1806   :  { %3687 = vmatpush1.bf16.msra.mxu0 %v5113_v5  ;;  %v3358_v5 = vrot.slane %v3334_v43, 3  ;;  %v3765_v43 = vld [vmem:[#allocation3 + $0x8] sm:$0xf0] }
0x1807   :  { %3688 = vmatprep.subr.bf16.mxu0 %v5121_v55  ;;  %v3359_v55 = vrot.slane %v3337_v44, 3  ;;  %v3768_v44 = vld [vmem:[#allocation3 + $0x20] sm:$0xf] }
0x1808   :  { %2829 = vmatpush1.bf16.msra.mxu1 %v5116_v56  ;;  %v2942_v56 = vsel %vm1088_vm9, %v2940_v41, %v2941_v42  ;;  %v3374_v42 = vrot.slane %v3345_v34, 3  ;;  %v5260_v34 = vld [vmem:[#allocation7 + $0x3f0] ss:$8 sps:$4 sm:$0xff]  }
0x1809   :  { %2830 = vmatprep.subr.bf16.mxu1 %v5124_v57  ;;  %v5175_v57 = vld [vmem:[#allocation7 + $0x584] ss:$8 sps:$4 sm:$0xff]  }
0x180a   :  { %3689 = vmatpush1.bf16.msra.mxu0 %v5119_v58  ;;  %v2500_v58 = vsel %vm1091_vm11, %v2498_v46, %v2499_v47  ;;  %v3800_v46 = vrot.slane %v3771_v36, 4  ;;  %v3801_v47 = vrot.slane %v3774_v37, 4  ;;  %v5263_v37 = vld [vmem:[#allocation7 + $0x670] ss:$8 sps:$4 sm:$0xff]  }
0x180b   :  { %3690 = vmatprep.subr.bf16.mxu0 %v5127_v59  ;;  %v5170_v59 = vld [vmem:[#allocation7 + $0x300] ss:$8 sps:$4 sm:$0xff]  }
0x180c   :  { %2831 = vmatpush1.bf16.msra.mxu1 %v5122_v60  ;;  %v3369_v60 = vsel %vm1085_vm8, %v3367_v0, %v3368_v49  ;;  %v5215_v0 = vld [vmem:[#allocation7 + $0x5f0] ss:$8 sps:$4 sm:$0xff]   ;;  %v3364_v49 = vrot.slane %v3336_v39, 3  ;;  %v5268_v39 = vld [vmem:[#allocation7 + $0x684] ss:$8 sps:$4 sm:$0xff]  }
0x180d   :  { %2832 = vmatprep.subr.bf16.mxu1 %v5130_v17  ;;  %v2522_v17 = vpack.c.bf16 %v2509_v54, %v2500_v58  ;;  %v5218_v54 = vld [vmem:[#allocation7 + $0x380] ss:$8 sps:$4 sm:$0xff]  }
0x180e   :  { %3691 = vmatpush1.bf16.msra.mxu0 %v5125_v23  ;;  %v2933_v23 = vsel %vm1088_vm9, %v2931_v51, %v2932_v53  ;;  %v5223_v51 = vld [vmem:[#allocation7 + $0x604] ss:$8 sps:$4 sm:$0xff]   ;;  %v3791_v53 = vrot.slane %v3765_v43, 4  ;;  %v5221_v58 = vld [vmem:[#allocation7 + $0x600] ss:$8 sps:$4 sm:$0xff]  }
0x180f   :  { %3692 = vmatprep.subr.bf16.mxu0 %v5133_v61  ;;  %v5178_v61 = vld [vmem:[#allocation7 + $0x314] ss:$8 sps:$4 sm:$0xff]  }
0x1810   :  { %2833 = vmatpush1.bf16.msra.mxu1 %v5128_v62  ;;  %v2953_v62 = vpack.c.bf16 %v2942_v56, %v2933_v23  ;;  %v5226_v56 = vld [vmem:[#allocation7 + $0x394] ss:$8 sps:$4 sm:$0xff]  }
0x1811   :  { %2834 = vmatprep.subr.bf16.mxu1 %v5136_v63  ;;  %v3360_v63 = vsel %vm1085_vm8, %v3358_v5, %v3359_v55  ;;  %v3802_v55 = vsel %vm1082_vm7, %v3800_v46, %v3801_v47  ;;  %v5271_v43 = vld [vmem:[#allocation7 + $0x694] ss:$8 sps:$4 sm:$0xff]   ;;  %v5272_v46 = vld [vmem:[#allocation7 + $0x6a0] ss:$8 sps:$4 sm:$0xff]  }
0x1812   :  { %3693 = vmatpush1.bf16.msra.mxu0 %v5131_v1  ;;  %v5173_v1 = vld [vmem:[#allocation7 + $0x580] ss:$8 sps:$4 sm:$0xff]   ;;  %v5277_v47 = vld [vmem:[#allocation7 + $0x6b4] ss:$8 sps:$4 sm:$0xff]  }
0x1813   :  { %3694 = vmatprep.subr.bf16.mxu0 %v5139_v2  ;;  %v3382_v2 = vpack.c.bf16 %v3369_v60, %v3360_v63  ;;  %v5227_v63 = vld [vmem:[#allocation7 + $0x610] ss:$8 sps:$4 sm:$0xff]  }
0x1814   :  { %2835 = vmatpush1.bf16.msra.mxu1 %v5134_v4  ;;  %v5181_v4 = vld [vmem:[#allocation7 + $0x594] ss:$8 sps:$4 sm:$0xff]  }
0x1815   :  { %2836 = vmatprep.subr.bf16.mxu1 %v5142_v6  ;;  %v5176_v6 = vld [vmem:[#allocation7 + $0x310] ss:$8 sps:$4 sm:$0xff]  }
0x1816   :  { %3695 = vmatpush1.bf16.msra.mxu0 %v5137_v7  ;;  %v5184_v7 = vld [vmem:[#allocation7 + $0x324] ss:$8 sps:$4 sm:$0xff]  }
0x1817   :  { %3696 = vmatprep.subr.bf16.mxu0 %v5145_v8  ;;  %v5179_v8 = vld [vmem:[#allocation7 + $0x590] ss:$8 sps:$4 sm:$0xff]  }
0x1818   :  { %2837 = vmatpush1.bf16.msra.mxu1 %v5140_v9  ;;  %v5187_v9 = vld [vmem:[#allocation7 + $0x5a4] ss:$8 sps:$4 sm:$0xff]  }
0x1819   :  { %2838 = vmatprep.subr.bf16.mxu1 %v5148_v11  ;;  %v5182_v11 = vld [vmem:[#allocation7 + $0x320] ss:$8 sps:$4 sm:$0xff]  }
0x181a   :  { %3697 = vmatpush1.bf16.msra.mxu0 %v5143_v12  ;;  %v5190_v12 = vld [vmem:[#allocation7 + $0x334] ss:$8 sps:$4 sm:$0xff]  }
0x181b   :  { %3698 = vmatprep.subr.bf16.mxu0 %v5151_v13  ;;  %v5185_v13 = vld [vmem:[#allocation7 + $0x5a0] ss:$8 sps:$4 sm:$0xff]  }
0x181c   :  { %2839 = vmatpush1.bf16.msra.mxu1 %v5146_v14  ;;  %v5193_v14 = vld [vmem:[#allocation7 + $0x5b4] ss:$8 sps:$4 sm:$0xff]  }
0x181d   :  { %2840 = vmatprep.subr.bf16.mxu1 %v5154_v15  ;;  %v5188_v15 = vld [vmem:[#allocation7 + $0x330] ss:$8 sps:$4 sm:$0xff]  }
0x181e   :  { %3699 = vmatpush1.bf16.msra.mxu0 %v5149_v16  ;;  %v5196_v16 = vld [vmem:[#allocation7 + $0x344] ss:$8 sps:$4 sm:$0xff]  }
0x181f   :  { %3700 = vmatprep.subr.bf16.mxu0 %v5157_v18  ;;  %v5191_v18 = vld [vmem:[#allocation7 + $0x5b0] ss:$8 sps:$4 sm:$0xff]  }
0x1820   :  { %2841 = vmatpush1.bf16.msra.mxu1 %v5152_v19  ;;  %v5199_v19 = vld [vmem:[#allocation7 + $0x5c4] ss:$8 sps:$4 sm:$0xff]  }
0x1821   :  { %2842 = vmatprep.subr.bf16.mxu1 %v5160_v48  ;;  %v5194_v48 = vld [vmem:[#allocation7 + $0x340] ss:$8 sps:$4 sm:$0xff]  }
0x1822   :  { %3701 = vmatpush1.bf16.msra.mxu0 %v5155_v20  ;;  %v5202_v20 = vld [vmem:[#allocation7 + $0x354] ss:$8 sps:$4 sm:$0xff]  }
0x1823   :  { %3702 = vmatprep.subr.bf16.mxu0 %v5163_v21  ;;  %v5205_v21 = vld [vmem:[#allocation7 + $0x5d4] ss:$8 sps:$4 sm:$0xff]  }
0x1824   :  { %2843 = vmatpush1.bf16.msra.mxu1 %v5158_v33  ;;  %v5197_v33 = vld [vmem:[#allocation7 + $0x5c0] ss:$8 sps:$4 sm:$0xff]  }
0x1825   :  { %2844 = vmatprep.subr.bf16.mxu1 %v5166_v22  ;;  %v5200_v22 = vld [vmem:[#allocation7 + $0x350] ss:$8 sps:$4 sm:$0xff]  }
0x1826   :  { %3703 = vmatpush1.bf16.msra.mxu0 %v5161_v26  ;;  %v5211_v26 = vld [vmem:[#allocation7 + $0x5e4] ss:$8 sps:$4 sm:$0xff]  }
0x1827   :  { %3704 = vmatprep.subr.bf16.mxu0 %v5169_v32  ;;  %v3342_v32 = vld [vmem:[#allocation3 + $0x40] sm:$0xf8] }
0x1828   :  { %2845 = vmatpush1.bf16.msra.mxu1 %v5164_v45  ;;  %v3373_v41 = vrot.slane %v3342_v32, 3  ;;  %v5220_v45 = vld [vmem:[#allocation7 + $0x384] ss:$8 sps:$4 sm:$0xff]   ;;  %v5265_v32 = vld [vmem:[#allocation7 + $0x674] ss:$8 sps:$4 sm:$0xff]  }
0x1829   :  { %3244 = vmatprep.subr.bf16.mxu1 %v5172_v50  ;;  %v3365_v50 = vrot.slane %v3339_v40, 3 }
0x182a   :  { %3705 = vmatpush1.bf16.msra.mxu0 %v5167_v3  ;;  %v3792_v3 = vrot.slane %v3768_v44, 4  ;;  %v3375_v5 = vsel %vm1085_vm8, %v3373_v41, %v3374_v42  ;;  %v5266_v42 = vld [vmem:[#allocation7 + $0x680] ss:$8 sps:$4 sm:$0xff]   ;;  %v5269_v44 = vld [vmem:[#allocation7 + $0x690] ss:$8 sps:$4 sm:$0xff]  }
0x182b   :  { %2847 = vmatmul.mubr.bf16.vlgmr.msra.gmra.mrb[28].mxu1 %v2522_v17  ;;  %3717 = vmatprep.subr.bf16.mxu0 %v5175_v57  ;;  %v3366_v57 = vsel %vm1085_vm8, %v3364_v49, %v3365_v50  ;;  %v5229_v17 = vld [vmem:[#allocation7 + $0x614] ss:$8 sps:$4 sm:$0xff]   ;;  %v5280_v49 = vld [vmem:[#allocation7 + $0x6c4] ss:$8 sps:$4 sm:$0xff]   ;;  %v5278_v50 = vld [vmem:[#allocation7 + $0x6c0] ss:$8 sps:$4 sm:$0xff]  }
0x182c   :  { %3245 = vmatpush1.bf16.msra.mxu1 %v5170_v59  ;;  %3276 = vmatprep.mubr.bf16.mxu1 %v2953_v62  ;;  %v3384_v59 = vpack.c.bf16 %v3375_v5, %v3366_v57  ;;  %v3793_v60 = vsel %vm1082_vm7, %v3791_v53, %v3792_v3  ;;  %v5232_v62 = vld [vmem:[#allocation7 + $0x3a4] ss:$8 sps:$4 sm:$0xff]   ;;  %v5281_v53 = vld [vmem:[#allocation7 + $0x6d0] ss:$8 sps:$4 sm:$0xff]   ;;  %v3773_v5 = vld [vmem:[#allocation3 + $0x48] sm:$0xf] }
0x182d   :  { %3707 = vmatmul.mubr.bf16.vlgmr.msra.gmra.mrb[20].mxu0 %v3382_v2  ;;  %3246 = vmatprep.subr.bf16.mxu1 %v5178_v61  ;;  %v3813_v23 = vpack.c.bf16 %v3802_v55, %v3793_v60  ;;  %v5224_v61 = vld [vmem:[#allocation7 + $0x390] ss:$8 sps:$4 sm:$0xff]   ;;  %v5230_v2 = vld [vmem:[#allocation7 + $0x3a0] ss:$8 sps:$4 sm:$0xff]   ;;  %v5286_v3 = vld [vmem:[#allocation7 + $0x6e4] ss:$8 sps:$4 sm:$0xff]  }
0x182e   :  { %3718 = vmatpush1.bf16.msra.mxu0 %v5173_v1  ;;  %3749 = vmatprep.mubr.bf16.mxu0 %v5544_v10  ;;  %v5235_v1 = vld [vmem:[#allocation7 + $0x624] ss:$8 sps:$4 sm:$0xff]   ;;  %v5284_v55 = vld [vmem:[#allocation7 + $0x6e0] ss:$8 sps:$4 sm:$0xff]   ;;  %v3798_v60 = vrot.slane %v3773_v5, 4 }
0x182f   :  { %3719 = vmatprep.subr.bf16.mxu0 %v5181_v4  ;;  %v5238_v4 = vld [vmem:[#allocation7 + $0x3b4] ss:$8 sps:$4 sm:$0xff]   ;;  %v3764_v57 = vld [vmem:[#allocation3] sm:$0xf0] }
0x1830   :  { %3247 = vmatpush1.bf16.msra.mxu1 %v5176_v6  ;;  %v5233_v6 = vld [vmem:[#allocation7 + $0x620] ss:$8 sps:$4 sm:$0xff]  }
0x1831   :  { %3248 = vmatprep.subr.bf16.mxu1 %v5184_v7  ;;  %v5241_v7 = vld [vmem:[#allocation7 + $0x634] ss:$8 sps:$4 sm:$0xff]  }
0x1832   :  { %3720 = vmatpush1.bf16.msra.mxu0 %v5179_v8  ;;  %v5236_v8 = vld [vmem:[#allocation7 + $0x3b0] ss:$8 sps:$4 sm:$0xff]  }
0x1833   :  { %3721 = vmatprep.subr.bf16.mxu0 %v5187_v9  ;;  %v5244_v9 = vld [vmem:[#allocation7 + $0x3c4] ss:$8 sps:$4 sm:$0xff]  }
0x1834   :  { %3249 = vmatpush1.bf16.msra.mxu1 %v5182_v11  ;;  %v5239_v11 = vld [vmem:[#allocation7 + $0x630] ss:$8 sps:$4 sm:$0xff]  }
0x1835   :  { %3250 = vmatprep.subr.bf16.mxu1 %v5190_v12  ;;  %v5247_v12 = vld [vmem:[#allocation7 + $0x644] ss:$8 sps:$4 sm:$0xff]  }
0x1836   :  { %3722 = vmatpush1.bf16.msra.mxu0 %v5185_v13  ;;  %v5242_v13 = vld [vmem:[#allocation7 + $0x3c0] ss:$8 sps:$4 sm:$0xff]  }
0x1837   :  { %3723 = vmatprep.subr.bf16.mxu0 %v5193_v14  ;;  %v5250_v14 = vld [vmem:[#allocation7 + $0x3d4] ss:$8 sps:$4 sm:$0xff]  }
0x1838   :  { %3251 = vmatpush1.bf16.msra.mxu1 %v5188_v15  ;;  %v5245_v15 = vld [vmem:[#allocation7 + $0x640] ss:$8 sps:$4 sm:$0xff]  }
0x1839   :  { %3252 = vmatprep.subr.bf16.mxu1 %v5196_v16  ;;  %v5253_v16 = vld [vmem:[#allocation7 + $0x654] ss:$8 sps:$4 sm:$0xff]  }
0x183a   :  { %3724 = vmatpush1.bf16.msra.mxu0 %v5191_v18  ;;  %v5248_v18 = vld [vmem:[#allocation7 + $0x3d0] ss:$8 sps:$4 sm:$0xff]  }
0x183b   :  { %3725 = vmatprep.subr.bf16.mxu0 %v5199_v19  ;;  %v5256_v19 = vld [vmem:[#allocation7 + $0x3e4] ss:$8 sps:$4 sm:$0xff]  }
0x183c   :  { %3253 = vmatpush1.bf16.msra.mxu1 %v5194_v48  ;;  %v5251_v48 = vld [vmem:[#allocation7 + $0x650] ss:$8 sps:$4 sm:$0xff]  }
0x183d   :  { %3254 = vmatprep.subr.bf16.mxu1 %v5202_v20  ;;  %v5259_v20 = vld [vmem:[#allocation7 + $0x664] ss:$8 sps:$4 sm:$0xff]  }
0x183e   :  { %3726 = vmatpush1.bf16.msra.mxu0 %v5197_v33  ;;  %v2910_v33 = vld [vmem:[#allocation3 + $0x30] sm:$0xfc] }
0x183f   :  { %3727 = vmatprep.subr.bf16.mxu0 %v5205_v21  ;;  %v2913_v21 = vld [vmem:[#allocation3 + $0x48] sm:$0x3] }
0x1840   :  { %3255 = vmatpush1.bf16.msra.mxu1 %v5200_v22  ;;  %v5254_v22 = vld [vmem:[#allocation7 + $0x3e0] ss:$8 sps:$4 sm:$0xff]  }
0x1841   :  { %3256 = vmatprep.subr.bf16.mxu1 %v5208_v24  ;;  %v5262_v24 = vld [vmem:[#allocation7 + $0x3f4] ss:$8 sps:$4 sm:$0xff]  }
0x1842   :  { %3728 = vmatpush1.bf16.msra.mxu0 %v5203_v25  ;;  %v2904_v25 = vld [vmem:[#allocation3] sm:$0xfc] }
0x1843   :  { %3729 = vmatprep.subr.bf16.mxu0 %v5211_v26  ;;  %v2907_v26 = vld [vmem:[#allocation3 + $0x18] sm:$0x3] }
0x1844   :  { %3257 = vmatpush1.bf16.msra.mxu1 %v5206_v27  ;;  %v5257_v27 = vld [vmem:[#allocation7 + $0x660] ss:$8 sps:$4 sm:$0xff]   ;;  %v2929_v36 = vrot.slane %v2907_v26, 2 }
0x1845   :  { %3258 = vmatprep.subr.bf16.mxu1 %v5214_v29  ;;  %v2938_v29 = vrot.slane %v2913_v21, 2  ;;  %v3769_v26 = vld [vmem:[#allocation3 + $0x28] sm:$0xf] }
0x1846   :  { %3730 = vmatpush1.bf16.msra.mxu0 %v5209_v28  ;;  %v2937_v28 = vrot.slane %v2910_v33, 2  ;;  %v3775_v33 = vld [vmem:[#allocation3 + $0x58] sm:$0xf] }
0x1847   :  { %3731 = vmatprep.subr.bf16.mxu0 %v5217_v38 }
0x1848   :  { %3259 = vmatpush1.bf16.msra.mxu1 %v5212_v35  ;;  %v2928_v35 = vrot.slane %v2904_v25, 2  ;;  %v2939_v38 = vsel %vm1088_vm9, %v2937_v28, %v2938_v29  ;;  %v3766_v25 = vld [vmem:[#allocation3 + $0x10] sm:$0xf0]  ;;  %v3804_v28 = vrot.slane %v3775_v33, 4  ;;  %v5311_v29 = vld [vmem:[#allocation7 + $0x770] ss:$8 sps:$4 sm:$0xff]  }
0x1849   :  { %3260 = vmatprep.subr.bf16.mxu1 %v5220_v45  ;;  %v5274_v45 = vld [vmem:[#allocation7 + $0x6a4] ss:$8 sps:$4 sm:$0xff]  }
0x184a   :  { %3732 = vmatpush1.bf16.msra.mxu0 %v5215_v0  ;;  %v2930_v40 = vsel %vm1088_vm9, %v2928_v35, %v2929_v36  ;;  %v5275_v0 = vld [vmem:[#allocation7 + $0x6b0] ss:$8 sps:$4 sm:$0xff]  }
0x184b   :  { %4104 = vmatprep.subr.bf16.mxu0 %v5223_v51  ;;  %v2952_v41 = vpack.c.bf16 %v2939_v38, %v2930_v40  ;;  %v5283_v51 = vld [vmem:[#allocation7 + $0x6d4] ss:$8 sps:$4 sm:$0xff]   ;;  %v2073_v38 = vld [vmem:[%s6058_s8] sm:$0x3]  ;;  %s5547_s8 = smov 96  }
0x184c   :  { %3261 = vmatpush1.bf16.msra.mxu1 %v5218_v54  ;;  %v3770_v54 = vld [vmem:[#allocation3 + $0x30] sm:$0xf0]  ;;  %v2082_v40 = vrot.slane %v2073_v38, %v1129_v52 }
0x184d   :  { %3750 = vmatmul.mubr.bf16.vlgmr.msra.gmra.mrb[20].mxu0 %v3384_v59  ;;  %3262 = vmatprep.subr.bf16.mxu1 %v5226_v56  ;;  %v5289_v56 = vld [vmem:[#allocation7 + $0x6f4] ss:$8 sps:$4 sm:$0xff]   ;;  %v3797_v59 = vrot.slane %v3770_v54, 4 }
0x184e   :  { %4105 = vmatpush1.bf16.msra.mxu0 %v5221_v58  ;;  %4136 = vmatprep.mubr.bf16.mxu0 %v3813_v23  ;;  %v3767_v58 = vld [vmem:[#allocation3 + $0x18] sm:$0xf]  ;;  %v3788_v23 = vrot.slane %v3764_v57, 4 }
0x184f   :  { %4106 = vmatprep.subr.bf16.mxu0 %v5229_v17  ;;  %v5287_v17 = vld [vmem:[#allocation7 + $0x6f0] ss:$8 sps:$4 sm:$0xff]  }
0x1850   :  { %3263 = vmatpush1.bf16.msra.mxu1 %v5224_v61  ;;  %v3789_v61 = vrot.slane %v3767_v58, 4 }
0x1851   :  { %3264 = vmatprep.subr.bf16.mxu1 %v5232_v62  ;;  %v5292_v62 = vld [vmem:[#allocation7 + $0x704] ss:$8 sps:$4 sm:$0xff]  }
0x1852   :  { %4107 = vmatpush1.bf16.msra.mxu0 %v5227_v63  ;;  %v3799_v63 = vsel %vm1082_vm7, %v3797_v59, %v3798_v60 }
0x1853   :  { %4108 = vmatprep.subr.bf16.mxu0 %v5235_v1  ;;  %v3790_v1 = vsel %vm1082_vm7, %v3788_v23, %v3789_v61 }
0x1854   :  { %3265 = vmatpush1.bf16.msra.mxu1 %v5230_v2  ;;  %v5290_v2 = vld [vmem:[#allocation7 + $0x700] ss:$8 sps:$4 sm:$0xff]  }
0x1855   :  { %3266 = vmatprep.subr.bf16.mxu1 %v5238_v4  ;;  %v3812_v4 = vpack.c.bf16 %v3799_v63, %v3790_v1 }
0x1856   :  { %4109 = vmatpush1.bf16.msra.mxu0 %v5233_v6  ;;  %v5295_v6 = vld [vmem:[#allocation7 + $0x714] ss:$8 sps:$4 sm:$0xff]  }
0x1857   :  { %4110 = vmatprep.subr.bf16.mxu0 %v5241_v7  ;;  %v5293_v7 = vld [vmem:[#allocation7 + $0x710] ss:$8 sps:$4 sm:$0xff]  }
0x1858   :  { %3267 = vmatpush1.bf16.msra.mxu1 %v5236_v8  ;;  %v5298_v8 = vld [vmem:[#allocation7 + $0x724] ss:$8 sps:$4 sm:$0xff]  }
0x1859   :  { %3268 = vmatprep.subr.bf16.mxu1 %v5244_v9  ;;  %v5296_v9 = vld [vmem:[#allocation7 + $0x720] ss:$8 sps:$4 sm:$0xff]  }
0x185a   :  { %4111 = vmatpush1.bf16.msra.mxu0 %v5239_v11  ;;  %v5301_v11 = vld [vmem:[#allocation7 + $0x734] ss:$8 sps:$4 sm:$0xff]  }
0x185b   :  { %4112 = vmatprep.subr.bf16.mxu0 %v5247_v12  ;;  %v5299_v12 = vld [vmem:[#allocation7 + $0x730] ss:$8 sps:$4 sm:$0xff]  }
0x185c   :  { %3269 = vmatpush1.bf16.msra.mxu1 %v5242_v13  ;;  %v5304_v13 = vld [vmem:[#allocation7 + $0x744] ss:$8 sps:$4 sm:$0xff]  }
0x185d   :  { %3270 = vmatprep.subr.bf16.mxu1 %v5250_v14  ;;  %v5302_v14 = vld [vmem:[#allocation7 + $0x740] ss:$8 sps:$4 sm:$0xff]  }
0x185e   :  { %4113 = vmatpush1.bf16.msra.mxu0 %v5245_v15  ;;  %v5307_v15 = vld [vmem:[#allocation7 + $0x754] ss:$8 sps:$4 sm:$0xff]  }
0x185f   :  { %4114 = vmatprep.subr.bf16.mxu0 %v5253_v16  ;;  %v5305_v16 = vld [vmem:[#allocation7 + $0x750] ss:$8 sps:$4 sm:$0xff]  }
0x1860   :  { %3271 = vmatpush1.bf16.msra.mxu1 %v5248_v18 }
0x1861   :  { %3272 = vmatprep.subr.bf16.mxu1 %v5256_v19  ;;  %v5310_v19 = vld [vmem:[#allocation7 + $0x764] ss:$8 sps:$4 sm:$0xff]  }
0x1862   :  { %4115 = vmatpush1.bf16.msra.mxu0 %v5251_v48 }
0x1863   :  { %4116 = vmatprep.subr.bf16.mxu0 %v5259_v20  ;;  %v3772_v20 = vld [vmem:[#allocation3 + $0x40] sm:$0xf0] }
0x1864   :  { %3273 = vmatpush1.bf16.msra.mxu1 %v5254_v22  ;;  %v5308_v22 = vld [vmem:[#allocation7 + $0x760] ss:$8 sps:$4 sm:$0xff]  }
0x1865   :  { %3274 = vmatprep.subr.bf16.mxu1 %v5262_v24  ;;  %v5313_v24 = vld [vmem:[#allocation7 + $0x774] ss:$8 sps:$4 sm:$0xff]  }
0x1866   :  { %4117 = vmatpush1.bf16.msra.mxu0 %v5257_v27  ;;  %v3803_v27 = vrot.slane %v3772_v20, 4 }
0x1867   :  { %4118 = vmatprep.subr.bf16.mxu0 %v5265_v32  ;;  %v3794_v32 = vrot.slane %v3766_v25, 4 }
0x1868   :  { %3275 = vmatpush1.bf16.msra.mxu1 %v5260_v34  ;;  %v3795_v34 = vrot.slane %v3769_v26, 4  ;;  %v3805_v35 = vsel %vm1082_vm7, %v3803_v27, %v3804_v28 }
0x186a   :  { %4119 = vmatpush1.bf16.msra.mxu0 %v5263_v37  ;;  %v3796_v36 = vsel %vm1082_vm7, %v3794_v32, %v3795_v34 }
0x186b   :  { %3277 = vmatmul.mubr.bf16.vlgmr.msra.gmra.mrb[32].mxu1 %v2952_v41  ;;  %4120 = vmatprep.subr.bf16.mxu0 %v5268_v39  ;;  %v3814_v37 = vpack.c.bf16 %v3805_v35, %v3796_v36  ;;  %v2078_v39 = vrot.slane %v2073_v38, %v1125_v31 }
0x186e   :  { %4121 = vmatpush1.bf16.msra.mxu0 %v5266_v42 }
0x186f   :  { %4122 = vmatprep.subr.bf16.mxu0 %v5271_v43 }
0x1872   :  { %4123 = vmatpush1.bf16.msra.mxu0 %v5269_v44 }
0x1873   :  { %4124 = vmatprep.subr.bf16.mxu0 %v5274_v45 }
0x1876   :  { %4125 = vmatpush1.bf16.msra.mxu0 %v5272_v46 }
0x1877   :  { %4126 = vmatprep.subr.bf16.mxu0 %v5277_v47 }
0x187a   :  { %4127 = vmatpush1.bf16.msra.mxu0 %v5275_v0 }
0x187b   :  { %4128 = vmatprep.subr.bf16.mxu0 %v5280_v49 }
0x187e   :  { %4129 = vmatpush1.bf16.msra.mxu0 %v5278_v50 }
0x187f   :  { %4130 = vmatprep.subr.bf16.mxu0 %v5283_v51 }
0x1882   :  { %4131 = vmatpush1.bf16.msra.mxu0 %v5281_v53 }
0x1883   :  { %4132 = vmatprep.subr.bf16.mxu0 %v5286_v3 }
0x1886   :  { %4133 = vmatpush1.bf16.msra.mxu0 %v5284_v55 }
0x1887   :  { %4134 = vmatprep.subr.bf16.mxu0 %v5289_v56 }
0x188a   :  { %4135 = vmatpush1.bf16.msra.mxu0 %v5287_v17 }
0x188b   :  { %4147 = vmatprep.subr.bf16.mxu0 %v5292_v62 }
0x188d   :  { %4137 = vmatmul.mubr.bf16.vlgmr.msra.gmra.mrb[20].mxu0 %v3812_v4 }
0x188e   :  { %4148 = vmatpush1.bf16.msra.mxu0 %v5290_v2  ;;  %4179 = vmatprep.mubr.bf16.mxu0 %v5544_v10 }
0x188f   :  { %4149 = vmatprep.subr.bf16.mxu0 %v5295_v6 }
0x1892   :  { %4150 = vmatpush1.bf16.msra.mxu0 %v5293_v7 }
0x1893   :  { %4151 = vmatprep.subr.bf16.mxu0 %v5298_v8 }
0x1896   :  { %4152 = vmatpush1.bf16.msra.mxu0 %v5296_v9 }
0x1897   :  { %4153 = vmatprep.subr.bf16.mxu0 %v5301_v11 }
0x189a   :  { %4154 = vmatpush1.bf16.msra.mxu0 %v5299_v12 }
0x189b   :  { %4155 = vmatprep.subr.bf16.mxu0 %v5304_v13 }
0x189e   :  { %4156 = vmatpush1.bf16.msra.mxu0 %v5302_v14 }
0x189f   :  { %v2891_v18 = vpop.f32.mrb[16].mxu0  ;;  %4157 = vmatprep.subr.bf16.mxu0 %v5307_v15 }
0x18a0   :  { %v2893_v10 = vpop.f32.mrb[17].mxu0 }
0x18a1   :  { %v2895_v48 = vpop.f32.mrb[18].mxu0 }
0x18a2   :  { %4158 = vmatpush1.bf16.msra.mxu0 %v5305_v16  ;;  %v2897_v21 = vpop.f32.mrb[19].mxu0 }
0x18a3   :  { %4159 = vmatprep.subr.bf16.mxu0 %v5310_v19 }
0x18a6   :  { %4160 = vmatpush1.bf16.msra.mxu0 %v5308_v22 }
0x18a7   :  { %4161 = vmatprep.subr.bf16.mxu0 %v5313_v24 }
0x18aa   :  { %4162 = vmatpush1.bf16.msra.mxu0 %v5311_v29 }
0x18ad   :  { %4180 = vmatmul.mubr.bf16.vlgmr.msra.gmra.mrb[20].mxu0 %v3814_v37 }
0x18fe   :  { %v2848_v41 = vpop.f32.mrb[28].mxu1 }
0x18ff   :  { %v4783_v42 = vadd.f32 %v2848_v41, %v2078_v39  ;;  %v2850_v43 = vpop.f32.mrb[29].mxu1 }
0x1900   :  { %v4787_v44 = vadd.f32 %v2850_v43, %v2082_v40  ;;  %v2852_v45 = vpop.f32.mrb[30].mxu1 }
0x1901   :  { %v4791_v46 = vadd.f32 %v2852_v45, %v2078_v39  ;;  %v2854_v47 = vpop.f32.mrb[31].mxu1  ;;  %v4784_v0 = vadd.f32 %v4783_v42, %v2891_v18 }
0x1902   :  { %v4795_v49 = vadd.f32 %v2854_v47, %v2082_v40  ;;  %v4788_v50 = vadd.f32 %v4787_v44, %v2893_v10 }
0x1903   :  { %v4792_v51 = vadd.f32 %v4791_v46, %v2895_v48 }
0x1904   :  { %v4796_v53 = vadd.f32 %v4795_v49, %v2897_v21 }
0x193e   :  { %v3278_v3 = vpop.f32.mrb[32].mxu1 }
0x193f   :  { %v4785_v54 = vadd.f32 %v4784_v0, %v3278_v3  ;;  %v3280_v5 = vpop.f32.mrb[33].mxu1 }
0x1940   :  { %v4789_v55 = vadd.f32 %v4788_v50, %v3280_v5  ;;  %v3282_v31 = vpop.f32.mrb[34].mxu1 }
0x1941   :  { %v4793_v56 = vadd.f32 %v4792_v51, %v3282_v31  ;;  %v3284_v30 = vpop.f32.mrb[35].mxu1 }
0x1942   :  { %v4797_v52 = vadd.f32 %v4796_v53, %v3284_v30 }
0x1980   :  { %v4181_v57 = vpop.f32.mrb[20].mxu0 }
0x1981   :  { %v4786_v58 = vadd.f32 %v4785_v54, %v4181_v57  ;;  %v4183_v59 = vpop.f32.mrb[21].mxu0 }
0x1982   :  { %v4790_v60 = vadd.f32 %v4789_v55, %v4183_v59  ;;  %v4185_v17 = vpop.f32.mrb[22].mxu0 }
0x1983   :  { %5454 = vtanh.f32 %v4786_v58  ;;  %v4794_v23 = vadd.f32 %v4793_v56, %v4185_v17  ;;  %v4187_v61 = vpop.f32.mrb[23].mxu0 }
0x1984   :  { %v4798_v62 = vadd.f32 %v4797_v52, %v4187_v61 }
0x1985   :  { %5456 = vtanh.f32 %v4794_v23 }
0x1986   :  { %5458 = vtanh.f32 %v4790_v60 }
0x1987   :  { %5460 = vtanh.f32 %v4798_v62 }
0x198d   :  { %v5455_v63 = vpop.eup %5454 }
0x198e   :  { %4200 = vrot.lane.b32.xlu1 %v5455_v63, %s5547_s8 }
0x198f   :  { %v5457_v1 = vpop.eup %5456 }
0x1990   :  { %4202 = vrot.lane.b32.xlu0 %v5457_v1, %s5547_s8  ;;  %v5459_v15 = vpop.eup %5458 }
0x1991   :  { %v5461_v10 = vpop.eup %5460 }
0x1992   :  { %4208 = vrot.lane.b32.xlu1 %v5455_v63, %s5545_s30 }
0x1994   :  { %4210 = vrot.lane.b32.xlu0 %v5457_v1, %s5545_s30 }
0x1996   :  { %4216 = vrot.lane.b32.xlu1 %v5455_v63, %s5546_s4 }
0x1998   :  { %4218 = vrot.lane.b32.xlu0 %v5457_v1, %s5546_s4 }
0x1a00   :  { %v4201_v2 = vpop.permute.xlu1 %4200 }
0x1a01   :  { %v4206_v7 = vadd.f32 %v5455_v63, %v4201_v2 }
0x1a02   :  { %v4203_v4 = vpop.permute.xlu0 %4202 }
0x1a03   :  { %v4207_v9 = vadd.f32 %v5457_v1, %v4203_v4 }
0x1a04   :  { %v4209_v6 = vpop.permute.xlu1 %4208 }
0x1a05   :  { %v4214_v11 = vadd.f32 %v4209_v6, %v4206_v7 }
0x1a06   :  { %v4211_v8 = vpop.permute.xlu0 %4210 }
0x1a07   :  { %v4215_v13 = vadd.f32 %v4211_v8, %v4207_v9 }
0x1a08   :  { %v4217_v12 = vpop.permute.xlu1 %4216 }
0x1a09   :  { %v4222_v14 = vadd.f32 %v4217_v12, %v4214_v11 }
0x1a0a   :  { %v4219_v16 = vpop.permute.xlu0 %4218 }
0x1a0b   :  { %v4224_v18 = vadd.f32 %v5459_v15, %v4222_v14  ;;  %v4223_v19 = vadd.f32 %v4219_v16, %v4215_v13 }
0x1a0d   :  { %4226 = vst.msk [vmem:[#allocation9] sm:$0xff] %vm165_vm3, %v4224_v18  ;;  %v4225_v48 = vadd.f32 %v5461_v10, %v4223_v19 }
0x1a0f   :  { %4227 = vst.msk [vmem:[#allocation9 + $0x8] sm:$0xff] %vm165_vm3, %v4225_v48 }
0x1a10   :  { %5519 = shalt.err (!%p5516_p6)
}
0x1a11   :  { %s5520_s24 = scalar_lea.hbm %s6059_s9, 256 }
0x1a12   :  { %p5521_p7 = scmp.ne.s32.totalorder %s6059_s9, %s5520_s24  ;;  %p5524_p8 = scmp.lt.u32.totalorder %s5520_s24, %s6059_s9 }
0x1a14   :  { %p5526_p9 = pnand %p5524_p8, %p5521_p7 }
0x1a16   :  { %5529 = shalt.err (!%p5526_p9)
}
0x1a17   :  { %4239 = dma.vmem_to_hbm [thread:$0]  %s4234_s20, 256, %s6059_s9, [#allocation6], %s5540_s5, %s5540_s5, %s5541_s10  }
0x1a18   :  { %5534 = dma.done.wait [#allocation6], 256  }
0x1a19   :  { %5535 = vsyncadd [#allocation6], 4294967040 }
0x1a1a   :  { %4243 = vsyncpa [#allocation5], 1 }
0x1a1b   :  { %4244 = vsyncpa [#allocation8], 1 }
0x1a1c   :  { %4245 = vsyncpa [#allocation6], 1 }

</bundles_post_ra>
